<compile_context>
chip_gen: v7x
topology: tpu7x:2x2x1
jax: 0.10.0
libtpu: 0.0.40
codegen_flags: <defaults>
</compile_context>

<pallas_src>
import functools

import jax
import jax.numpy as jnp
from jax.experimental import pallas as pl
from jax.experimental.pallas import tpu as pltpu


# --------------------------------------------------------------------------- #
# Pallas kernel 1: frequency-domain threshold + 3-mult complex channel
# contraction (one image per grid step).
# --------------------------------------------------------------------------- #
def _fft_contract_kernel(xr_ref, xi_ref, wr_ref, ws_ref, wd_ref,
                         yr_ref, yi_ref, *, thresh):
    # xr/xi: (1, Cin, Kf) block for one image.
    # wr/ws/wd: (Cin, Cout, Kf) resident weight spectra, ws = wr+wi, wd = wi-wr.
    cin = xr_ref.shape[1]

    xr = xr_ref[0]                                   # (Cin, Kf)
    xi = xi_ref[0]
    keep = jnp.abs(xr) >= thresh                     # torch zeros where |Re| < thresh
    xr = jnp.where(keep, xr, 0.0)
    xi = jnp.where(keep, xi, 0.0)
    sx = xr + xi                                     # Karatsuba x-sum, reused over Cout

    acc_r = None
    acc_i = None
    for c in range(cin):                             # unrolled; Cin is small
        wr = wr_ref[c]                               # (Cout, Kf)
        ws = ws_ref[c]
        wd = wd_ref[c]
        k1 = wr * sx[c:c + 1, :]                     # wr*(xr+xi)        (1 mul)
        tr = k1 - xi[c:c + 1, :] * ws                # = xr*wr - xi*wi   (1 mul)
        ti = k1 + xr[c:c + 1, :] * wd                # = xr*wi + xi*wr   (1 mul)
        acc_r = tr if acc_r is None else acc_r + tr
        acc_i = ti if acc_i is None else acc_i + ti

    yr_ref[0] = acc_r
    yi_ref[0] = acc_i


def fft_conv2d_thresh(x, w, padding, thresh=0.5):
    """FFTConv1d_thresh.forward, minus the bias add (exactly cancelled by the
    following training-mode BatchNorm) and with the post-iFFT torch.roll(y, 1)
    folded into the weight spectrum.  Returns (y_flat, (Hp, Wp), (ans_r, ans_c))
    where y_flat has shape (T, Cout, Hp*Wp) — the un-cropped result."""
    T, Cin, _, _ = x.shape
    Cout, _, kh, kw = w.shape

    # ZeroPad2d((p0, p0, p1, p1)): left/right = padding[0], top/bottom = padding[1]
    xp = jnp.pad(x, ((0, 0), (0, 0),
                     (padding[1], padding[1]), (padding[0], padding[0])))
    Hp, Wp = xp.shape[2], xp.shape[3]
    N = Hp * Wp
    Nf = N // 2 + 1                          # rfft bins (x, w real -> Hermitian)
    Kf = ((Nf + 127) // 128) * 128           # lane-pad frequencies to 128-multiple
    fpad = ((0, 0), (0, 0), (0, Kf - Nf))

    x_fft = jnp.fft.rfft(xp.reshape(T, Cin, N), axis=-1)
    xr = jnp.pad(jnp.real(x_fft).astype(jnp.float32), fpad)
    xi = jnp.pad(jnp.imag(x_fft).astype(jnp.float32), fpad)

    # Weight spectrum: pad right/bottom to (Hp, Wp), flatten, flip last axis
    # (the reference's double flip over dims [0,1] cancels), then roll by 1 —
    # folding torch.roll(y, 1) (a circular spatial shift) into the spectrum.
    w_pad = jnp.pad(w, ((0, 0), (0, 0), (0, Hp - kh), (0, Wp - kw)))
    w_sp = jnp.roll(w_pad.reshape(Cout, Cin, N)[:, :, ::-1], 1, axis=-1)
    w_fft = jnp.fft.rfft(w_sp, axis=-1)
    wr = jnp.real(w_fft).astype(jnp.float32)
    wi = jnp.imag(w_fft).astype(jnp.float32)
    # 3-mult complex product needs wr, wr+wi, wi-wr; transpose so Cin leads
    # (the kernel indexes the leading axis).  All tiny one-time glue.
    wr_t = jnp.transpose(jnp.pad(wr, fpad), (1, 0, 2))        # (Cin, Cout, Kf)
    ws_t = jnp.transpose(jnp.pad(wr + wi, fpad), (1, 0, 2))
    wd_t = jnp.transpose(jnp.pad(wi - wr, fpad), (1, 0, 2))

    kernel = functools.partial(_fft_contract_kernel, thresh=float(thresh))
    yr, yi = pl.pallas_call(
        kernel,
        out_shape=(jax.ShapeDtypeStruct((T, Cout, Kf), jnp.float32),
                   jax.ShapeDtypeStruct((T, Cout, Kf), jnp.float32)),
        grid=(T,),
        in_specs=[
            pl.BlockSpec((1, Cin, Kf), lambda t: (t, 0, 0)),
            pl.BlockSpec((1, Cin, Kf), lambda t: (t, 0, 0)),
            pl.BlockSpec((Cin, Cout, Kf), lambda t: (0, 0, 0)),
            pl.BlockSpec((Cin, Cout, Kf), lambda t: (0, 0, 0)),
            pl.BlockSpec((Cin, Cout, Kf), lambda t: (0, 0, 0)),
        ],
        out_specs=(
            pl.BlockSpec((1, Cout, Kf), lambda t: (t, 0, 0)),
            pl.BlockSpec((1, Cout, Kf), lambda t: (t, 0, 0)),
        ),
        # T axis is fully independent -> megacore-shardable on v7x; harmless on
        # single-TC v5e/v6e.  (Weights stay resident across the T grid.)
        compiler_params=pltpu.CompilerParams(dimension_semantics=("parallel",)),
    )(xr, xi, wr_t, ws_t, wd_t)

    # iFFT is linear, so summing over input channels before it (in-kernel) is exact.
    # TODO(synk): no Pallas FFT primitive -> irfft in XLA glue.
    y = jnp.fft.irfft(jax.lax.complex(yr[:, :, :Nf], yi[:, :, :Nf]), n=N, axis=-1)
    ans_r, ans_c = Hp - kh + 1, Wp - kw + 1             # stride == (1, 1)
    return y.astype(jnp.float32), (Hp, Wp), (ans_r, ans_c)


# --------------------------------------------------------------------------- #
# Pallas kernel 2: fused {crop-to-valid-window, BatchNorm2d (training-mode batch
# stats), ReLU}.  One grid step, channels vectorized on the sublane axis.
# --------------------------------------------------------------------------- #
def _bn_relu_kernel(y_ref, g_ref, b_ref, o_ref, *, eps, crop):
    y = y_ref[...]
    if crop is not None:                      # (T, C, Hp, Wp) -> crop valid window
        hr, wc = crop
        y = y[:, :, :hr, :wc]
    red = tuple(a for a in range(y.ndim) if a != 1)
    cnt = 1.0
    for a in red:
        cnt *= y.shape[a]
    s = y
    for a in red:                             # chained single-axis reductions
        s = jnp.sum(s, axis=a, keepdims=True)
    mean = s / cnt
    d = y - mean
    s2 = jnp.square(d)
    for a in red:
        s2 = jnp.sum(s2, axis=a, keepdims=True)
    var = s2 / cnt                            # biased variance (torch train mode)
    inv = jax.lax.rsqrt(var + eps)
    o_ref[...] = jnp.maximum(d * inv * g_ref[...] + b_ref[...], 0.0)


def crop_bn_relu(y_flat, hpwp, ans, gamma, beta, eps=1e-5):
    """y_flat: (T, C, Hp*Wp) pre-BN conv output.  Returns (T, C, ans_r, ans_c)."""
    T, C, N = y_flat.shape
    Hp, Wp = hpwp
    hr, wc = ans
    if (hr, wc) == (Hp, Wp):
        # 1x1 convs: no crop -> run on the flat layout, lane-dense (N-wide) I/O.
        out = pl.pallas_call(
            functools.partial(_bn_relu_kernel, eps=float(eps), crop=None),
            out_shape=jax.ShapeDtypeStruct((T, C, N), jnp.float32),
        )(y_flat,
          gamma.reshape(1, C, 1).astype(jnp.float32),
          beta.reshape(1, C, 1).astype(jnp.float32))
        return out.reshape(T, C, hr, wc)      # free reshape (contiguous)

    # 3x3 convs: crop fused into the kernel on the 4-D view.
    # TODO(synk): output here uses W(=16)-lane stores; a lane-dense (T,C,hr*wc)
    # store would need an in-kernel minor-dim repack — skipped for robustness
    # (tensor is only ~tens of KB).
    y4 = y_flat.reshape(T, C, Hp, Wp)         # free reshape (contiguous)
    return pl.pallas_call(
        functools.partial(_bn_relu_kernel, eps=float(eps), crop=(hr, wc)),
        out_shape=jax.ShapeDtypeStruct((T, C, hr, wc), jnp.float32),
    )(y4,
      gamma.reshape(1, C, 1, 1).astype(jnp.float32),
      beta.reshape(1, C, 1, 1).astype(jnp.float32))


# --------------------------------------------------------------------------- #
# Pallas kernel 3: MaxPool2d(kernel=3, stride=1, padding=1) — single grid step,
# separable 3x3 max (row pass then column pass), all (t, c) vectorized.
# --------------------------------------------------------------------------- #
def _maxpool3_kernel(x_ref, o_ref):
    xp = x_ref[...]                            # (T, C, H+2, W+2), -inf padded
    H, W = o_ref.shape[2], o_ref.shape[3]
    cm = jnp.maximum(jnp.maximum(xp[:, :, :, 0:W], xp[:, :, :, 1:W + 1]),
                     xp[:, :, :, 2:W + 2])     # (T, C, H+2, W)  — column pass
    o_ref[...] = jnp.maximum(jnp.maximum(cm[:, :, 0:H, :], cm[:, :, 1:H + 1, :]),
                             cm[:, :, 2:H + 2, :])


def maxpool3x3_s1_p1(x):
    T, C, H, W = x.shape
    # PyTorch max-pool pads implicitly with -inf.
    # TODO(synk): the -inf pad is one tiny XLA pass; folding it into the kernel
    # needs in-kernel lane shifts (pltpu.roll / minor-dim concat) — kept out for
    # lowering robustness at these sizes.
    xp = jnp.pad(x, ((0, 0), (0, 0), (1, 1), (1, 1)), constant_values=-jnp.inf)
    return pl.pallas_call(
        _maxpool3_kernel,
        out_shape=jax.ShapeDtypeStruct((T, C, H, W), x.dtype),
    )(xp)


# --------------------------------------------------------------------------- #
# Parameter construction (deterministic, mimics Conv2d/BN default init shapes)
# --------------------------------------------------------------------------- #
def _init_conv(key, cout, cin, k):
    wk, bk = jax.random.split(key)
    bound = (cin * k * k) ** -0.5
    w = jax.random.uniform(wk, (cout, cin, k, k), jnp.float32, -bound, bound)
    b = jax.random.uniform(bk, (cout,), jnp.float32, -bound, bound)
    return w, b


def _init_bn(c):
    return jnp.ones((c,), jnp.float32), jnp.zeros((c,), jnp.float32)


def make_inception_params(key, cin, n1x1, n3x3_reduce, n3x3, n5x5_reduce, n5x5, pool_proj):
    keys = jax.random.split(key, 8)
    p = {}
    # NOTE: conv biases are created for parameter fidelity but never added in the
    # forward pass — a per-channel bias is exactly cancelled by the training-mode
    # BatchNorm mean subtraction that immediately follows every conv.
    p["b1_w"], p["b1_b"] = _init_conv(keys[0], n1x1, cin, 1)
    p["b1_g"], p["b1_be"] = _init_bn(n1x1)

    p["b2_w1"], p["b2_b1"] = _init_conv(keys[1], n3x3_reduce, cin, 1)
    p["b2_g1"], p["b2_be1"] = _init_bn(n3x3_reduce)
    p["b2_w2"], p["b2_b2"] = _init_conv(keys[2], n3x3, n3x3_reduce, 3)
    p["b2_g2"], p["b2_be2"] = _init_bn(n3x3)

    p["b3_w1"], p["b3_b1"] = _init_conv(keys[3], n5x5_reduce, cin, 1)
    p["b3_g1"], p["b3_be1"] = _init_bn(n5x5_reduce)
    p["b3_w2"], p["b3_b2"] = _init_conv(keys[4], n5x5, n5x5_reduce, 3)
    p["b3_g2"], p["b3_be2"] = _init_bn(n5x5)
    p["b3_w3"], p["b3_b3"] = _init_conv(keys[5], n5x5, n5x5, 3)
    p["b3_g3"], p["b3_be3"] = _init_bn(n5x5)

    p["b4_w"], p["b4_b"] = _init_conv(keys[6], pool_proj, cin, 1)
    p["b4_g"], p["b4_be"] = _init_bn(pool_proj)
    return p


# --------------------------------------------------------------------------- #
# Inception forward
# --------------------------------------------------------------------------- #
def inception_forward(params, x, n5x5_eps):
    p = params

    # ---- branches 1/2/3 heads: three 1x1 convs over the SAME x — fuse into one
    # contraction (fft(x) computed once) + one fused BN/ReLU, then split. ----
    w_head = jnp.concatenate([p["b1_w"], p["b2_w1"], p["b3_w1"]], axis=0)
    g_head = jnp.concatenate([p["b1_g"], p["b2_g1"], p["b3_g1"]], axis=0)
    b_head = jnp.concatenate([p["b1_be"], p["b2_be1"], p["b3_be1"]], axis=0)
    yh, hpwp, ans = fft_conv2d_thresh(x, w_head, (0, 0))
    yh = crop_bn_relu(yh, hpwp, ans, g_head, b_head)          # per-channel BN => exact
    c1 = p["b1_w"].shape[0]
    c2 = p["b2_w1"].shape[0]
    c3 = p["b3_w1"].shape[0]
    y1 = yh[:, :c1]
    y2 = yh[:, c1:c1 + c2]
    y3 = yh[:, c1 + c2:c1 + c2 + c3]

    # branch 2 tail: 3x3(p=1) -> BN/ReLU
    t2, hpwp, ans = fft_conv2d_thresh(y2, p["b2_w2"], (1, 1))
    y2 = crop_bn_relu(t2, hpwp, ans, p["b2_g2"], p["b2_be2"])

    # branch 3 tail: 3x3(p=1) -> BN(eps=n5x5)/ReLU -> 3x3(p=1) -> BN/ReLU
    t3, hpwp, ans = fft_conv2d_thresh(y3, p["b3_w2"], (1, 1))
    y3 = crop_bn_relu(t3, hpwp, ans, p["b3_g2"], p["b3_be2"], eps=n5x5_eps)
    t3, hpwp, ans = fft_conv2d_thresh(y3, p["b3_w3"], (1, 1))
    y3 = crop_bn_relu(t3, hpwp, ans, p["b3_g3"], p["b3_be3"])

    # branch 4: maxpool 3x3 s1 p1 -> 1x1 conv -> BN/ReLU
    y4 = maxpool3x3_s1_p1(x)
    t4, hpwp, ans = fft_conv2d_thresh(y4, p["b4_w"], (0, 0))
    y4 = crop_bn_relu(t4, hpwp, ans, p["b4_g"], p["b4_be"])

    return jnp.concatenate([y1, y2, y3, y4], axis=1)


# --------------------------------------------------------------------------- #
if __name__ == "__main__":
    key = jax.random.PRNGKey(0)
    pkey, xkey = jax.random.split(key)

    input_channels, n1x1, n3x3_reduce, n3x3, n5x5_reduce, n5x5, pool_proj = 4, 4, 4, 8, 4, 4, 4
    params = make_inception_params(pkey, input_channels, n1x1, n3x3_reduce, n3x3,
                                   n5x5_reduce, n5x5, pool_proj)

    x = jax.random.normal(xkey, (2, input_channels, 16, 16), jnp.float32)

    fwd = jax.jit(lambda prm, xx: inception_forward(prm, xx, n5x5_eps=float(n5x5)))
    out = fwd(params, x)
    out = jax.block_until_ready(out)

    expected_channels = n1x1 + n3x3 + n5x5 + pool_proj
    assert out.shape == (2, expected_channels, 16, 16), out.shape
    assert jnp.all(jnp.isfinite(out))
    print("KERNEL_OK")
</pallas_src>

<mosaic_0001>
module attributes {stable_mosaic.version = 11 : i64} {
  func.func @_maxpool3_kernel(%arg0: memref<2x4x18x18xf32, #tpu.memory_space<vmem>>, %arg1: memref<2x4x16x16xf32, #tpu.memory_space<vmem>>) attributes {dimension_semantics = [], scalar_prefetch = 0 : i64, scratch_operands = 0 : i64, tpu.core_type = #tpu.core_type<tc>} {
    %c0 = arith.constant 0 : index
    %c0_0 = arith.constant 0 : index
    %c0_1 = arith.constant 0 : index
    %c0_2 = arith.constant 0 : index
    %0 = vector.load %arg0[%c0, %c0_0, %c0_1, %c0_2] : memref<2x4x18x18xf32, #tpu.memory_space<vmem>>, vector<2x4x18x18xf32>
    %1 = vector.extract_strided_slice %0 {offsets = [0, 0, 0, 0], sizes = [2, 4, 18, 16], strides = [1, 1, 1, 1]} : vector<2x4x18x18xf32> to vector<2x4x18x16xf32>
    %2 = vector.extract_strided_slice %0 {offsets = [0, 0, 0, 1], sizes = [2, 4, 18, 16], strides = [1, 1, 1, 1]} : vector<2x4x18x18xf32> to vector<2x4x18x16xf32>
    %3 = arith.maximumf %1, %2 : vector<2x4x18x16xf32>
    %4 = vector.extract_strided_slice %0 {offsets = [0, 0, 0, 2], sizes = [2, 4, 18, 16], strides = [1, 1, 1, 1]} : vector<2x4x18x18xf32> to vector<2x4x18x16xf32>
    %5 = arith.maximumf %3, %4 : vector<2x4x18x16xf32>
    %6 = vector.extract_strided_slice %5 {offsets = [0, 0, 0, 0], sizes = [2, 4, 16, 16], strides = [1, 1, 1, 1]} : vector<2x4x18x16xf32> to vector<2x4x16x16xf32>
    %7 = vector.extract_strided_slice %5 {offsets = [0, 0, 1, 0], sizes = [2, 4, 16, 16], strides = [1, 1, 1, 1]} : vector<2x4x18x16xf32> to vector<2x4x16x16xf32>
    %8 = arith.maximumf %6, %7 : vector<2x4x16x16xf32>
    %9 = vector.extract_strided_slice %5 {offsets = [0, 0, 2, 0], sizes = [2, 4, 16, 16], strides = [1, 1, 1, 1]} : vector<2x4x18x16xf32> to vector<2x4x16x16xf32>
    %10 = arith.maximumf %8, %9 : vector<2x4x16x16xf32>
    %c0_3 = arith.constant 0 : index
    %c0_4 = arith.constant 0 : index
    %c0_5 = arith.constant 0 : index
    %c0_6 = arith.constant 0 : index
    %11 = vector.load %arg1[%c0_3, %c0_4, %c0_5, %c0_6] : memref<2x4x16x16xf32, #tpu.memory_space<vmem>>, vector<2x4x16x16xf32>
    tpu.vector_store %arg1[%c0_3, %c0_4, %c0_5, %c0_6], %10 {strides = array<i32>} : memref<2x4x16x16xf32, #tpu.memory_space<vmem>>, vector<2x4x16x16xf32>,
    return
  }
}

module attributes {stable_mosaic.version = 11 : i64} {
  func.func @_fft_contract_kernel(%arg0: i32, %arg1: memref<1x4x256xf32, #tpu.memory_space<vmem>>, %arg2: memref<1x4x256xf32, #tpu.memory_space<vmem>>, %arg3: memref<4x4x256xf32, #tpu.memory_space<vmem>>, %arg4: memref<4x4x256xf32, #tpu.memory_space<vmem>>, %arg5: memref<4x4x256xf32, #tpu.memory_space<vmem>>, %arg6: memref<1x4x256xf32, #tpu.memory_space<vmem>>, %arg7: memref<1x4x256xf32, #tpu.memory_space<vmem>>) attributes {dimension_semantics = [#tpu.dimension_semantics<parallel>], iteration_bounds = array<i64: 2>, scalar_prefetch = 0 : i64, scratch_operands = 0 : i64, tpu.core_type = #tpu.core_type<tc>, window_params = [{transform_indices = @transform_0, window_bounds = array<i64: 1, 4, 256>}, {transform_indices = @transform_1, window_bounds = array<i64: 1, 4, 256>}, {pipeline_mode = #tpu.pipeline_mode<synchronous>, transform_indices = @transform_2, window_bounds = array<i64: 4, 4, 256>}, {pipeline_mode = #tpu.pipeline_mode<synchronous>, transform_indices = @transform_3, window_bounds = array<i64: 4, 4, 256>}, {pipeline_mode = #tpu.pipeline_mode<synchronous>, transform_indices = @transform_4, window_bounds = array<i64: 4, 4, 256>}, {transform_indices = @transform_5, window_bounds = array<i64: 1, 4, 256>}, {transform_indices = @transform_6, window_bounds = array<i64: 1, 4, 256>}]} {
    %c0 = arith.constant 0 : index
    %c0_0 = arith.constant 0 : index
    %c0_1 = arith.constant 0 : index
    %0 = vector.load %arg1[%c0, %c0_0, %c0_1] : memref<1x4x256xf32, #tpu.memory_space<vmem>>, vector<1x4x256xf32>
    %1 = vector.shape_cast %0 : vector<1x4x256xf32> to vector<4x256xf32>
    %c0_2 = arith.constant 0 : index
    %c0_3 = arith.constant 0 : index
    %c0_4 = arith.constant 0 : index
    %2 = vector.load %arg2[%c0_2, %c0_3, %c0_4] : memref<1x4x256xf32, #tpu.memory_space<vmem>>, vector<1x4x256xf32>
    %3 = vector.shape_cast %2 : vector<1x4x256xf32> to vector<4x256xf32>
    %4 = math.absf %1 : vector<4x256xf32>
    %cst = arith.constant 5.000000e-01 : f32
    %5 = vector.broadcast %cst : f32 to vector<4x256xf32>
    %6 = arith.cmpf oge, %4, %5 : vector<4x256xf32>
    %cst_5 = arith.constant 0.000000e+00 : f32
    %7 = vector.broadcast %cst_5 : f32 to vector<4x256xf32>
    %8 = arith.select %6, %1, %7 : vector<4x256xi1>, vector<4x256xf32>
    %cst_6 = arith.constant 0.000000e+00 : f32
    %9 = vector.broadcast %cst_6 : f32 to vector<4x256xf32>
    %10 = arith.select %6, %3, %9 : vector<4x256xi1>, vector<4x256xf32>
    %11 = arith.addf %8, %10 : vector<4x256xf32>
    %c0_7 = arith.constant 0 : index
    %c0_8 = arith.constant 0 : index
    %c0_9 = arith.constant 0 : index
    %12 = vector.load %arg3[%c0_7, %c0_8, %c0_9] : memref<4x4x256xf32, #tpu.memory_space<vmem>>, vector<1x4x256xf32>
    %13 = vector.shape_cast %12 : vector<1x4x256xf32> to vector<4x256xf32>
    %c0_10 = arith.constant 0 : index
    %c0_11 = arith.constant 0 : index
    %c0_12 = arith.constant 0 : index
    %14 = vector.load %arg4[%c0_10, %c0_11, %c0_12] : memref<4x4x256xf32, #tpu.memory_space<vmem>>, vector<1x4x256xf32>
    %15 = vector.shape_cast %14 : vector<1x4x256xf32> to vector<4x256xf32>
    %c0_13 = arith.constant 0 : index
    %c0_14 = arith.constant 0 : index
    %c0_15 = arith.constant 0 : index
    %16 = vector.load %arg5[%c0_13, %c0_14, %c0_15] : memref<4x4x256xf32, #tpu.memory_space<vmem>>, vector<1x4x256xf32>
    %17 = vector.shape_cast %16 : vector<1x4x256xf32> to vector<4x256xf32>
    %18 = vector.extract_strided_slice %11 {offsets = [0, 0], sizes = [1, 256], strides = [1, 1]} : vector<4x256xf32> to vector<1x256xf32>
    %19 = vector.broadcast %18 : vector<1x256xf32> to vector<4x256xf32>
    %20 = arith.mulf %13, %19 : vector<4x256xf32>
    %21 = vector.extract_strided_slice %10 {offsets = [0, 0], sizes = [1, 256], strides = [1, 1]} : vector<4x256xf32> to vector<1x256xf32>
    %22 = vector.broadcast %21 : vector<1x256xf32> to vector<4x256xf32>
    %23 = arith.mulf %22, %15 : vector<4x256xf32>
    %24 = arith.subf %20, %23 : vector<4x256xf32>
    %25 = vector.extract_strided_slice %8 {offsets = [0, 0], sizes = [1, 256], strides = [1, 1]} : vector<4x256xf32> to vector<1x256xf32>
    %26 = vector.broadcast %25 : vector<1x256xf32> to vector<4x256xf32>
    %27 = arith.mulf %26, %17 : vector<4x256xf32>
    %28 = arith.addf %20, %27 : vector<4x256xf32>
    %c1 = arith.constant 1 : index
    %c0_16 = arith.constant 0 : index
    %c0_17 = arith.constant 0 : index
    %29 = vector.load %arg3[%c1, %c0_16, %c0_17] : memref<4x4x256xf32, #tpu.memory_space<vmem>>, vector<1x4x256xf32>
    %30 = vector.shape_cast %29 : vector<1x4x256xf32> to vector<4x256xf32>
    %c1_18 = arith.constant 1 : index
    %c0_19 = arith.constant 0 : index
    %c0_20 = arith.constant 0 : index
    %31 = vector.load %arg4[%c1_18, %c0_19, %c0_20] : memref<4x4x256xf32, #tpu.memory_space<vmem>>, vector<1x4x256xf32>
    %32 = vector.shape_cast %31 : vector<1x4x256xf32> to vector<4x256xf32>
    %c1_21 = arith.constant 1 : index
    %c0_22 = arith.constant 0 : index
    %c0_23 = arith.constant 0 : index
    %33 = vector.load %arg5[%c1_21, %c0_22, %c0_23] : memref<4x4x256xf32, #tpu.memory_space<vmem>>, vector<1x4x256xf32>
    %34 = vector.shape_cast %33 : vector<1x4x256xf32> to vector<4x256xf32>
    %35 = vector.extract_strided_slice %11 {offsets = [1, 0], sizes = [1, 256], strides = [1, 1]} : vector<4x256xf32> to vector<1x256xf32>
    %36 = vector.broadcast %35 : vector<1x256xf32> to vector<4x256xf32>
    %37 = arith.mulf %30, %36 : vector<4x256xf32>
    %38 = vector.extract_strided_slice %10 {offsets = [1, 0], sizes = [1, 256], strides = [1, 1]} : vector<4x256xf32> to vector<1x256xf32>
    %39 = vector.broadcast %38 : vector<1x256xf32> to vector<4x256xf32>
    %40 = arith.mulf %39, %32 : vector<4x256xf32>
    %41 = arith.subf %37, %40 : vector<4x256xf32>
    %42 = vector.extract_strided_slice %8 {offsets = [1, 0], sizes = [1, 256], strides = [1, 1]} : vector<4x256xf32> to vector<1x256xf32>
    %43 = vector.broadcast %42 : vector<1x256xf32> to vector<4x256xf32>
    %44 = arith.mulf %43, %34 : vector<4x256xf32>
    %45 = arith.addf %37, %44 : vector<4x256xf32>
    %46 = arith.addf %24, %41 : vector<4x256xf32>
    %47 = arith.addf %28, %45 : vector<4x256xf32>
    %c2 = arith.constant 2 : index
    %c0_24 = arith.constant 0 : index
    %c0_25 = arith.constant 0 : index
    %48 = vector.load %arg3[%c2, %c0_24, %c0_25] : memref<4x4x256xf32, #tpu.memory_space<vmem>>, vector<1x4x256xf32>
    %49 = vector.shape_cast %48 : vector<1x4x256xf32> to vector<4x256xf32>
    %c2_26 = arith.constant 2 : index
    %c0_27 = arith.constant 0 : index
    %c0_28 = arith.constant 0 : index
    %50 = vector.load %arg4[%c2_26, %c0_27, %c0_28] : memref<4x4x256xf32, #tpu.memory_space<vmem>>, vector<1x4x256xf32>
    %51 = vector.shape_cast %50 : vector<1x4x256xf32> to vector<4x256xf32>
    %c2_29 = arith.constant 2 : index
    %c0_30 = arith.constant 0 : index
    %c0_31 = arith.constant 0 : index
    %52 = vector.load %arg5[%c2_29, %c0_30, %c0_31] : memref<4x4x256xf32, #tpu.memory_space<vmem>>, vector<1x4x256xf32>
    %53 = vector.shape_cast %52 : vector<1x4x256xf32> to vector<4x256xf32>
    %54 = vector.extract_strided_slice %11 {offsets = [2, 0], sizes = [1, 256], strides = [1, 1]} : vector<4x256xf32> to vector<1x256xf32>
    %55 = vector.broadcast %54 : vector<1x256xf32> to vector<4x256xf32>
    %56 = arith.mulf %49, %55 : vector<4x256xf32>
    %57 = vector.extract_strided_slice %10 {offsets = [2, 0], sizes = [1, 256], strides = [1, 1]} : vector<4x256xf32> to vector<1x256xf32>
    %58 = vector.broadcast %57 : vector<1x256xf32> to vector<4x256xf32>
    %59 = arith.mulf %58, %51 : vector<4x256xf32>
    %60 = arith.subf %56, %59 : vector<4x256xf32>
    %61 = vector.extract_strided_slice %8 {offsets = [2, 0], sizes = [1, 256], strides = [1, 1]} : vector<4x256xf32> to vector<1x256xf32>
    %62 = vector.broadcast %61 : vector<1x256xf32> to vector<4x256xf32>
    %63 = arith.mulf %62, %53 : vector<4x256xf32>
    %64 = arith.addf %56, %63 : vector<4x256xf32>
    %65 = arith.addf %46, %60 : vector<4x256xf32>
    %66 = arith.addf %47, %64 : vector<4x256xf32>
    %c3 = arith.constant 3 : index
    %c0_32 = arith.constant 0 : index
    %c0_33 = arith.constant 0 : index
    %67 = vector.load %arg3[%c3, %c0_32, %c0_33] : memref<4x4x256xf32, #tpu.memory_space<vmem>>, vector<1x4x256xf32>
    %68 = vector.shape_cast %67 : vector<1x4x256xf32> to vector<4x256xf32>
    %c3_34 = arith.constant 3 : index
    %c0_35 = arith.constant 0 : index
    %c0_36 = arith.constant 0 : index
    %69 = vector.load %arg4[%c3_34, %c0_35, %c0_36] : memref<4x4x256xf32, #tpu.memory_space<vmem>>, vector<1x4x256xf32>
    %70 = vector.shape_cast %69 : vector<1x4x256xf32> to vector<4x256xf32>
    %c3_37 = arith.constant 3 : index
    %c0_38 = arith.constant 0 : index
    %c0_39 = arith.constant 0 : index
    %71 = vector.load %arg5[%c3_37, %c0_38, %c0_39] : memref<4x4x256xf32, #tpu.memory_space<vmem>>, vector<1x4x256xf32>
    %72 = vector.shape_cast %71 : vector<1x4x256xf32> to vector<4x256xf32>
    %73 = vector.extract_strided_slice %11 {offsets = [3, 0], sizes = [1, 256], strides = [1, 1]} : vector<4x256xf32> to vector<1x256xf32>
    %74 = vector.broadcast %73 : vector<1x256xf32> to vector<4x256xf32>
    %75 = arith.mulf %68, %74 : vector<4x256xf32>
    %76 = vector.extract_strided_slice %10 {offsets = [3, 0], sizes = [1, 256], strides = [1, 1]} : vector<4x256xf32> to vector<1x256xf32>
    %77 = vector.broadcast %76 : vector<1x256xf32> to vector<4x256xf32>
    %78 = arith.mulf %77, %70 : vector<4x256xf32>
    %79 = arith.subf %75, %78 : vector<4x256xf32>
    %80 = vector.extract_strided_slice %8 {offsets = [3, 0], sizes = [1, 256], strides = [1, 1]} : vector<4x256xf32> to vector<1x256xf32>
    %81 = vector.broadcast %80 : vector<1x256xf32> to vector<4x256xf32>
    %82 = arith.mulf %81, %72 : vector<4x256xf32>
    %83 = arith.addf %75, %82 : vector<4x256xf32>
    %84 = arith.addf %65, %79 : vector<4x256xf32>
    %85 = arith.addf %66, %83 : vector<4x256xf32>
    %c0_40 = arith.constant 0 : index
    %c0_41 = arith.constant 0 : index
    %c0_42 = arith.constant 0 : index
    %86 = vector.load %arg6[%c0_40, %c0_41, %c0_42] : memref<1x4x256xf32, #tpu.memory_space<vmem>>, vector<1x4x256xf32>
    %87 = vector.shape_cast %86 : vector<1x4x256xf32> to vector<4x256xf32>
    %88 = vector.shape_cast %84 : vector<4x256xf32> to vector<1x4x256xf32>
    tpu.vector_store %arg6[%c0_40, %c0_41, %c0_42], %88 {strides = array<i32>} : memref<1x4x256xf32, #tpu.memory_space<vmem>>, vector<1x4x256xf32>,
    %c0_43 = arith.constant 0 : index
    %c0_44 = arith.constant 0 : index
    %c0_45 = arith.constant 0 : index
    %89 = vector.load %arg7[%c0_43, %c0_44, %c0_45] : memref<1x4x256xf32, #tpu.memory_space<vmem>>, vector<1x4x256xf32>
    %90 = vector.shape_cast %89 : vector<1x4x256xf32> to vector<4x256xf32>
    %91 = vector.shape_cast %85 : vector<4x256xf32> to vector<1x4x256xf32>
    tpu.vector_store %arg7[%c0_43, %c0_44, %c0_45], %91 {strides = array<i32>} : memref<1x4x256xf32, #tpu.memory_space<vmem>>, vector<1x4x256xf32>,
    return
  }
  func.func @transform_0(%arg0: i32) -> (i32, i32, i32) {
    %c0_i32 = arith.constant 0 : i32
    %c0_i32_0 = arith.constant 0 : i32
    %c0_i32_1 = arith.constant 0 : i32
    return %arg0, %c0_i32, %c0_i32_0 : i32, i32, i32
  }
  func.func @transform_1(%arg0: i32) -> (i32, i32, i32) {
    %c0_i32 = arith.constant 0 : i32
    %c0_i32_0 = arith.constant 0 : i32
    %c0_i32_1 = arith.constant 0 : i32
    return %arg0, %c0_i32, %c0_i32_0 : i32, i32, i32
  }
  func.func @transform_2(%arg0: i32) -> (i32, i32, i32) {
    %c0_i32 = arith.constant 0 : i32
    %c0_i32_0 = arith.constant 0 : i32
    %c0_i32_1 = arith.constant 0 : i32
    %c0_i32_2 = arith.constant 0 : i32
    return %c0_i32, %c0_i32_0, %c0_i32_1 : i32, i32, i32
  }
  func.func @transform_3(%arg0: i32) -> (i32, i32, i32) {
    %c0_i32 = arith.constant 0 : i32
    %c0_i32_0 = arith.constant 0 : i32
    %c0_i32_1 = arith.constant 0 : i32
    %c0_i32_2 = arith.constant 0 : i32
    return %c0_i32, %c0_i32_0, %c0_i32_1 : i32, i32, i32
  }
  func.func @transform_4(%arg0: i32) -> (i32, i32, i32) {
    %c0_i32 = arith.constant 0 : i32
    %c0_i32_0 = arith.constant 0 : i32
    %c0_i32_1 = arith.constant 0 : i32
    %c0_i32_2 = arith.constant 0 : i32
    return %c0_i32, %c0_i32_0, %c0_i32_1 : i32, i32, i32
  }
  func.func @transform_5(%arg0: i32) -> (i32, i32, i32) {
    %c0_i32 = arith.constant 0 : i32
    %c0_i32_0 = arith.constant 0 : i32
    %c0_i32_1 = arith.constant 0 : i32
    return %arg0, %c0_i32, %c0_i32_0 : i32, i32, i32
  }
  func.func @transform_6(%arg0: i32) -> (i32, i32, i32) {
    %c0_i32 = arith.constant 0 : i32
    %c0_i32_0 = arith.constant 0 : i32
    %c0_i32_1 = arith.constant 0 : i32
    return %arg0, %c0_i32, %c0_i32_0 : i32, i32, i32
  }
}

module attributes {stable_mosaic.version = 11 : i64} {
  func.func @_bn_relu_kernel(%arg0: memref<2x4x256xf32, #tpu.memory_space<vmem>>, %arg1: memref<1x4x1xf32, #tpu.memory_space<vmem>>, %arg2: memref<1x4x1xf32, #tpu.memory_space<vmem>>, %arg3: memref<2x4x256xf32, #tpu.memory_space<vmem>>) attributes {dimension_semantics = [], scalar_prefetch = 0 : i64, scratch_operands = 0 : i64, tpu.core_type = #tpu.core_type<tc>} {
    %c0 = arith.constant 0 : index
    %c0_0 = arith.constant 0 : index
    %c0_1 = arith.constant 0 : index
    %0 = vector.load %arg0[%c0, %c0_0, %c0_1] : memref<2x4x256xf32, #tpu.memory_space<vmem>>, vector<2x4x256xf32>
    %cst = arith.constant dense<0.000000e+00> : vector<4x256xf32>
    %1 = vector.multi_reduction <add>, %0, %cst [0] : vector<2x4x256xf32> to vector<4x256xf32>
    %2 = vector.shape_cast %1 : vector<4x256xf32> to vector<1x4x256xf32>
    %cst_2 = arith.constant dense<0.000000e+00> : vector<1x4xf32>
    %3 = vector.multi_reduction <add>, %2, %cst_2 [2] : vector<1x4x256xf32> to vector<1x4xf32>
    %4 = vector.shape_cast %3 : vector<1x4xf32> to vector<1x4x1xf32>
    %cst_3 = arith.constant 5.120000e+02 : f32
    %5 = vector.broadcast %cst_3 : f32 to vector<1x4x1xf32>
    %6 = arith.divf %4, %5 : vector<1x4x1xf32>
    %7 = vector.broadcast %6 : vector<1x4x1xf32> to vector<2x4x256xf32>
    %8 = arith.subf %0, %7 : vector<2x4x256xf32>
    %9 = arith.mulf %8, %8 : vector<2x4x256xf32>
    %cst_4 = arith.constant dense<0.000000e+00> : vector<4x256xf32>
    %10 = vector.multi_reduction <add>, %9, %cst_4 [0] : vector<2x4x256xf32> to vector<4x256xf32>
    %11 = vector.shape_cast %10 : vector<4x256xf32> to vector<1x4x256xf32>
    %cst_5 = arith.constant dense<0.000000e+00> : vector<1x4xf32>
    %12 = vector.multi_reduction <add>, %11, %cst_5 [2] : vector<1x4x256xf32> to vector<1x4xf32>
    %13 = vector.shape_cast %12 : vector<1x4xf32> to vector<1x4x1xf32>
    %cst_6 = arith.constant 5.120000e+02 : f32
    %14 = vector.broadcast %cst_6 : f32 to vector<1x4x1xf32>
    %15 = arith.divf %13, %14 : vector<1x4x1xf32>
    %cst_7 = arith.constant 9.99999974E-6 : f32
    %16 = vector.broadcast %cst_7 : f32 to vector<1x4x1xf32>
    %17 = arith.addf %15, %16 : vector<1x4x1xf32>
    %18 = math.rsqrt %17 : vector<1x4x1xf32>
    %19 = vector.broadcast %18 : vector<1x4x1xf32> to vector<2x4x256xf32>
    %20 = arith.mulf %8, %19 : vector<2x4x256xf32>
    %c0_8 = arith.constant 0 : index
    %c0_9 = arith.constant 0 : index
    %c0_10 = arith.constant 0 : index
    %21 = vector.load %arg1[%c0_8, %c0_9, %c0_10] : memref<1x4x1xf32, #tpu.memory_space<vmem>>, vector<1x4x1xf32>
    %22 = vector.broadcast %21 : vector<1x4x1xf32> to vector<2x4x256xf32>
    %23 = arith.mulf %20, %22 : vector<2x4x256xf32>
    %c0_11 = arith.constant 0 : index
    %c0_12 = arith.constant 0 : index
    %c0_13 = arith.constant 0 : index
    %24 = vector.load %arg2[%c0_11, %c0_12, %c0_13] : memref<1x4x1xf32, #tpu.memory_space<vmem>>, vector<1x4x1xf32>
    %25 = vector.broadcast %24 : vector<1x4x1xf32> to vector<2x4x256xf32>
    %26 = arith.addf %23, %25 : vector<2x4x256xf32>
    %cst_14 = arith.constant 0.000000e+00 : f32
    %27 = vector.broadcast %cst_14 : f32 to vector<2x4x256xf32>
    %28 = arith.maximumf %26, %27 : vector<2x4x256xf32>
    %c0_15 = arith.constant 0 : index
    %c0_16 = arith.constant 0 : index
    %c0_17 = arith.constant 0 : index
    %29 = vector.load %arg3[%c0_15, %c0_16, %c0_17] : memref<2x4x256xf32, #tpu.memory_space<vmem>>, vector<2x4x256xf32>
    tpu.vector_store %arg3[%c0_15, %c0_16, %c0_17], %28 {strides = array<i32>} : memref<2x4x256xf32, #tpu.memory_space<vmem>>, vector<2x4x256xf32>,
    return
  }
}

module attributes {stable_mosaic.version = 11 : i64} {
  func.func @_fft_contract_kernel(%arg0: i32, %arg1: memref<1x4x256xf32, #tpu.memory_space<vmem>>, %arg2: memref<1x4x256xf32, #tpu.memory_space<vmem>>, %arg3: memref<4x12x256xf32, #tpu.memory_space<vmem>>, %arg4: memref<4x12x256xf32, #tpu.memory_space<vmem>>, %arg5: memref<4x12x256xf32, #tpu.memory_space<vmem>>, %arg6: memref<1x12x256xf32, #tpu.memory_space<vmem>>, %arg7: memref<1x12x256xf32, #tpu.memory_space<vmem>>) attributes {dimension_semantics = [#tpu.dimension_semantics<parallel>], iteration_bounds = array<i64: 2>, scalar_prefetch = 0 : i64, scratch_operands = 0 : i64, tpu.core_type = #tpu.core_type<tc>, window_params = [{transform_indices = @transform_0, window_bounds = array<i64: 1, 4, 256>}, {transform_indices = @transform_1, window_bounds = array<i64: 1, 4, 256>}, {pipeline_mode = #tpu.pipeline_mode<synchronous>, transform_indices = @transform_2, window_bounds = array<i64: 4, 12, 256>}, {pipeline_mode = #tpu.pipeline_mode<synchronous>, transform_indices = @transform_3, window_bounds = array<i64: 4, 12, 256>}, {pipeline_mode = #tpu.pipeline_mode<synchronous>, transform_indices = @transform_4, window_bounds = array<i64: 4, 12, 256>}, {transform_indices = @transform_5, window_bounds = array<i64: 1, 12, 256>}, {transform_indices = @transform_6, window_bounds = array<i64: 1, 12, 256>}]} {
    %c0 = arith.constant 0 : index
    %c0_0 = arith.constant 0 : index
    %c0_1 = arith.constant 0 : index
    %0 = vector.load %arg1[%c0, %c0_0, %c0_1] : memref<1x4x256xf32, #tpu.memory_space<vmem>>, vector<1x4x256xf32>
    %1 = vector.shape_cast %0 : vector<1x4x256xf32> to vector<4x256xf32>
    %c0_2 = arith.constant 0 : index
    %c0_3 = arith.constant 0 : index
    %c0_4 = arith.constant 0 : index
    %2 = vector.load %arg2[%c0_2, %c0_3, %c0_4] : memref<1x4x256xf32, #tpu.memory_space<vmem>>, vector<1x4x256xf32>
    %3 = vector.shape_cast %2 : vector<1x4x256xf32> to vector<4x256xf32>
    %4 = math.absf %1 : vector<4x256xf32>
    %cst = arith.constant 5.000000e-01 : f32
    %5 = vector.broadcast %cst : f32 to vector<4x256xf32>
    %6 = arith.cmpf oge, %4, %5 : vector<4x256xf32>
    %cst_5 = arith.constant 0.000000e+00 : f32
    %7 = vector.broadcast %cst_5 : f32 to vector<4x256xf32>
    %8 = arith.select %6, %1, %7 : vector<4x256xi1>, vector<4x256xf32>
    %cst_6 = arith.constant 0.000000e+00 : f32
    %9 = vector.broadcast %cst_6 : f32 to vector<4x256xf32>
    %10 = arith.select %6, %3, %9 : vector<4x256xi1>, vector<4x256xf32>
    %11 = arith.addf %8, %10 : vector<4x256xf32>
    %c0_7 = arith.constant 0 : index
    %c0_8 = arith.constant 0 : index
    %c0_9 = arith.constant 0 : index
    %12 = vector.load %arg3[%c0_7, %c0_8, %c0_9] : memref<4x12x256xf32, #tpu.memory_space<vmem>>, vector<1x12x256xf32>
    %13 = vector.shape_cast %12 : vector<1x12x256xf32> to vector<12x256xf32>
    %c0_10 = arith.constant 0 : index
    %c0_11 = arith.constant 0 : index
    %c0_12 = arith.constant 0 : index
    %14 = vector.load %arg4[%c0_10, %c0_11, %c0_12] : memref<4x12x256xf32, #tpu.memory_space<vmem>>, vector<1x12x256xf32>
    %15 = vector.shape_cast %14 : vector<1x12x256xf32> to vector<12x256xf32>
    %c0_13 = arith.constant 0 : index
    %c0_14 = arith.constant 0 : index
    %c0_15 = arith.constant 0 : index
    %16 = vector.load %arg5[%c0_13, %c0_14, %c0_15] : memref<4x12x256xf32, #tpu.memory_space<vmem>>, vector<1x12x256xf32>
    %17 = vector.shape_cast %16 : vector<1x12x256xf32> to vector<12x256xf32>
    %18 = vector.extract_strided_slice %11 {offsets = [0, 0], sizes = [1, 256], strides = [1, 1]} : vector<4x256xf32> to vector<1x256xf32>
    %19 = vector.broadcast %18 : vector<1x256xf32> to vector<12x256xf32>
    %20 = arith.mulf %13, %19 : vector<12x256xf32>
    %21 = vector.extract_strided_slice %10 {offsets = [0, 0], sizes = [1, 256], strides = [1, 1]} : vector<4x256xf32> to vector<1x256xf32>
    %22 = vector.broadcast %21 : vector<1x256xf32> to vector<12x256xf32>
    %23 = arith.mulf %22, %15 : vector<12x256xf32>
    %24 = arith.subf %20, %23 : vector<12x256xf32>
    %25 = vector.extract_strided_slice %8 {offsets = [0, 0], sizes = [1, 256], strides = [1, 1]} : vector<4x256xf32> to vector<1x256xf32>
    %26 = vector.broadcast %25 : vector<1x256xf32> to vector<12x256xf32>
    %27 = arith.mulf %26, %17 : vector<12x256xf32>
    %28 = arith.addf %20, %27 : vector<12x256xf32>
    %c1 = arith.constant 1 : index
    %c0_16 = arith.constant 0 : index
    %c0_17 = arith.constant 0 : index
    %29 = vector.load %arg3[%c1, %c0_16, %c0_17] : memref<4x12x256xf32, #tpu.memory_space<vmem>>, vector<1x12x256xf32>
    %30 = vector.shape_cast %29 : vector<1x12x256xf32> to vector<12x256xf32>
    %c1_18 = arith.constant 1 : index
    %c0_19 = arith.constant 0 : index
    %c0_20 = arith.constant 0 : index
    %31 = vector.load %arg4[%c1_18, %c0_19, %c0_20] : memref<4x12x256xf32, #tpu.memory_space<vmem>>, vector<1x12x256xf32>
    %32 = vector.shape_cast %31 : vector<1x12x256xf32> to vector<12x256xf32>
    %c1_21 = arith.constant 1 : index
    %c0_22 = arith.constant 0 : index
    %c0_23 = arith.constant 0 : index
    %33 = vector.load %arg5[%c1_21, %c0_22, %c0_23] : memref<4x12x256xf32, #tpu.memory_space<vmem>>, vector<1x12x256xf32>
    %34 = vector.shape_cast %33 : vector<1x12x256xf32> to vector<12x256xf32>
    %35 = vector.extract_strided_slice %11 {offsets = [1, 0], sizes = [1, 256], strides = [1, 1]} : vector<4x256xf32> to vector<1x256xf32>
    %36 = vector.broadcast %35 : vector<1x256xf32> to vector<12x256xf32>
    %37 = arith.mulf %30, %36 : vector<12x256xf32>
    %38 = vector.extract_strided_slice %10 {offsets = [1, 0], sizes = [1, 256], strides = [1, 1]} : vector<4x256xf32> to vector<1x256xf32>
    %39 = vector.broadcast %38 : vector<1x256xf32> to vector<12x256xf32>
    %40 = arith.mulf %39, %32 : vector<12x256xf32>
    %41 = arith.subf %37, %40 : vector<12x256xf32>
    %42 = vector.extract_strided_slice %8 {offsets = [1, 0], sizes = [1, 256], strides = [1, 1]} : vector<4x256xf32> to vector<1x256xf32>
    %43 = vector.broadcast %42 : vector<1x256xf32> to vector<12x256xf32>
    %44 = arith.mulf %43, %34 : vector<12x256xf32>
    %45 = arith.addf %37, %44 : vector<12x256xf32>
    %46 = arith.addf %24, %41 : vector<12x256xf32>
    %47 = arith.addf %28, %45 : vector<12x256xf32>
    %c2 = arith.constant 2 : index
    %c0_24 = arith.constant 0 : index
    %c0_25 = arith.constant 0 : index
    %48 = vector.load %arg3[%c2, %c0_24, %c0_25] : memref<4x12x256xf32, #tpu.memory_space<vmem>>, vector<1x12x256xf32>
    %49 = vector.shape_cast %48 : vector<1x12x256xf32> to vector<12x256xf32>
    %c2_26 = arith.constant 2 : index
    %c0_27 = arith.constant 0 : index
    %c0_28 = arith.constant 0 : index
    %50 = vector.load %arg4[%c2_26, %c0_27, %c0_28] : memref<4x12x256xf32, #tpu.memory_space<vmem>>, vector<1x12x256xf32>
    %51 = vector.shape_cast %50 : vector<1x12x256xf32> to vector<12x256xf32>
    %c2_29 = arith.constant 2 : index
    %c0_30 = arith.constant 0 : index
    %c0_31 = arith.constant 0 : index
    %52 = vector.load %arg5[%c2_29, %c0_30, %c0_31] : memref<4x12x256xf32, #tpu.memory_space<vmem>>, vector<1x12x256xf32>
    %53 = vector.shape_cast %52 : vector<1x12x256xf32> to vector<12x256xf32>
    %54 = vector.extract_strided_slice %11 {offsets = [2, 0], sizes = [1, 256], strides = [1, 1]} : vector<4x256xf32> to vector<1x256xf32>
    %55 = vector.broadcast %54 : vector<1x256xf32> to vector<12x256xf32>
    %56 = arith.mulf %49, %55 : vector<12x256xf32>
    %57 = vector.extract_strided_slice %10 {offsets = [2, 0], sizes = [1, 256], strides = [1, 1]} : vector<4x256xf32> to vector<1x256xf32>
    %58 = vector.broadcast %57 : vector<1x256xf32> to vector<12x256xf32>
    %59 = arith.mulf %58, %51 : vector<12x256xf32>
    %60 = arith.subf %56, %59 : vector<12x256xf32>
    %61 = vector.extract_strided_slice %8 {offsets = [2, 0], sizes = [1, 256], strides = [1, 1]} : vector<4x256xf32> to vector<1x256xf32>
    %62 = vector.broadcast %61 : vector<1x256xf32> to vector<12x256xf32>
    %63 = arith.mulf %62, %53 : vector<12x256xf32>
    %64 = arith.addf %56, %63 : vector<12x256xf32>
    %65 = arith.addf %46, %60 : vector<12x256xf32>
    %66 = arith.addf %47, %64 : vector<12x256xf32>
    %c3 = arith.constant 3 : index
    %c0_32 = arith.constant 0 : index
    %c0_33 = arith.constant 0 : index
    %67 = vector.load %arg3[%c3, %c0_32, %c0_33] : memref<4x12x256xf32, #tpu.memory_space<vmem>>, vector<1x12x256xf32>
    %68 = vector.shape_cast %67 : vector<1x12x256xf32> to vector<12x256xf32>
    %c3_34 = arith.constant 3 : index
    %c0_35 = arith.constant 0 : index
    %c0_36 = arith.constant 0 : index
    %69 = vector.load %arg4[%c3_34, %c0_35, %c0_36] : memref<4x12x256xf32, #tpu.memory_space<vmem>>, vector<1x12x256xf32>
    %70 = vector.shape_cast %69 : vector<1x12x256xf32> to vector<12x256xf32>
    %c3_37 = arith.constant 3 : index
    %c0_38 = arith.constant 0 : index
    %c0_39 = arith.constant 0 : index
    %71 = vector.load %arg5[%c3_37, %c0_38, %c0_39] : memref<4x12x256xf32, #tpu.memory_space<vmem>>, vector<1x12x256xf32>
    %72 = vector.shape_cast %71 : vector<1x12x256xf32> to vector<12x256xf32>
    %73 = vector.extract_strided_slice %11 {offsets = [3, 0], sizes = [1, 256], strides = [1, 1]} : vector<4x256xf32> to vector<1x256xf32>
    %74 = vector.broadcast %73 : vector<1x256xf32> to vector<12x256xf32>
    %75 = arith.mulf %68, %74 : vector<12x256xf32>
    %76 = vector.extract_strided_slice %10 {offsets = [3, 0], sizes = [1, 256], strides = [1, 1]} : vector<4x256xf32> to vector<1x256xf32>
    %77 = vector.broadcast %76 : vector<1x256xf32> to vector<12x256xf32>
    %78 = arith.mulf %77, %70 : vector<12x256xf32>
    %79 = arith.subf %75, %78 : vector<12x256xf32>
    %80 = vector.extract_strided_slice %8 {offsets = [3, 0], sizes = [1, 256], strides = [1, 1]} : vector<4x256xf32> to vector<1x256xf32>
    %81 = vector.broadcast %80 : vector<1x256xf32> to vector<12x256xf32>
    %82 = arith.mulf %81, %72 : vector<12x256xf32>
    %83 = arith.addf %75, %82 : vector<12x256xf32>
    %84 = arith.addf %65, %79 : vector<12x256xf32>
    %85 = arith.addf %66, %83 : vector<12x256xf32>
    %c0_40 = arith.constant 0 : index
    %c0_41 = arith.constant 0 : index
    %c0_42 = arith.constant 0 : index
    %86 = vector.load %arg6[%c0_40, %c0_41, %c0_42] : memref<1x12x256xf32, #tpu.memory_space<vmem>>, vector<1x12x256xf32>
    %87 = vector.shape_cast %86 : vector<1x12x256xf32> to vector<12x256xf32>
    %88 = vector.shape_cast %84 : vector<12x256xf32> to vector<1x12x256xf32>
    tpu.vector_store %arg6[%c0_40, %c0_41, %c0_42], %88 {strides = array<i32>} : memref<1x12x256xf32, #tpu.memory_space<vmem>>, vector<1x12x256xf32>,
    %c0_43 = arith.constant 0 : index
    %c0_44 = arith.constant 0 : index
    %c0_45 = arith.constant 0 : index
    %89 = vector.load %arg7[%c0_43, %c0_44, %c0_45] : memref<1x12x256xf32, #tpu.memory_space<vmem>>, vector<1x12x256xf32>
    %90 = vector.shape_cast %89 : vector<1x12x256xf32> to vector<12x256xf32>
    %91 = vector.shape_cast %85 : vector<12x256xf32> to vector<1x12x256xf32>
    tpu.vector_store %arg7[%c0_43, %c0_44, %c0_45], %91 {strides = array<i32>} : memref<1x12x256xf32, #tpu.memory_space<vmem>>, vector<1x12x256xf32>,
    return
  }
  func.func @transform_0(%arg0: i32) -> (i32, i32, i32) {
    %c0_i32 = arith.constant 0 : i32
    %c0_i32_0 = arith.constant 0 : i32
    %c0_i32_1 = arith.constant 0 : i32
    return %arg0, %c0_i32, %c0_i32_0 : i32, i32, i32
  }
  func.func @transform_1(%arg0: i32) -> (i32, i32, i32) {
    %c0_i32 = arith.constant 0 : i32
    %c0_i32_0 = arith.constant 0 : i32
    %c0_i32_1 = arith.constant 0 : i32
    return %arg0, %c0_i32, %c0_i32_0 : i32, i32, i32
  }
  func.func @transform_2(%arg0: i32) -> (i32, i32, i32) {
    %c0_i32 = arith.constant 0 : i32
    %c0_i32_0 = arith.constant 0 : i32
    %c0_i32_1 = arith.constant 0 : i32
    %c0_i32_2 = arith.constant 0 : i32
    return %c0_i32, %c0_i32_0, %c0_i32_1 : i32, i32, i32
  }
  func.func @transform_3(%arg0: i32) -> (i32, i32, i32) {
    %c0_i32 = arith.constant 0 : i32
    %c0_i32_0 = arith.constant 0 : i32
    %c0_i32_1 = arith.constant 0 : i32
    %c0_i32_2 = arith.constant 0 : i32
    return %c0_i32, %c0_i32_0, %c0_i32_1 : i32, i32, i32
  }
  func.func @transform_4(%arg0: i32) -> (i32, i32, i32) {
    %c0_i32 = arith.constant 0 : i32
    %c0_i32_0 = arith.constant 0 : i32
    %c0_i32_1 = arith.constant 0 : i32
    %c0_i32_2 = arith.constant 0 : i32
    return %c0_i32, %c0_i32_0, %c0_i32_1 : i32, i32, i32
  }
  func.func @transform_5(%arg0: i32) -> (i32, i32, i32) {
    %c0_i32 = arith.constant 0 : i32
    %c0_i32_0 = arith.constant 0 : i32
    %c0_i32_1 = arith.constant 0 : i32
    return %arg0, %c0_i32, %c0_i32_0 : i32, i32, i32
  }
  func.func @transform_6(%arg0: i32) -> (i32, i32, i32) {
    %c0_i32 = arith.constant 0 : i32
    %c0_i32_0 = arith.constant 0 : i32
    %c0_i32_1 = arith.constant 0 : i32
    return %arg0, %c0_i32, %c0_i32_0 : i32, i32, i32
  }
}

module attributes {stable_mosaic.version = 11 : i64} {
  func.func @_bn_relu_kernel(%arg0: memref<2x12x256xf32, #tpu.memory_space<vmem>>, %arg1: memref<1x12x1xf32, #tpu.memory_space<vmem>>, %arg2: memref<1x12x1xf32, #tpu.memory_space<vmem>>, %arg3: memref<2x12x256xf32, #tpu.memory_space<vmem>>) attributes {dimension_semantics = [], scalar_prefetch = 0 : i64, scratch_operands = 0 : i64, tpu.core_type = #tpu.core_type<tc>} {
    %c0 = arith.constant 0 : index
    %c0_0 = arith.constant 0 : index
    %c0_1 = arith.constant 0 : index
    %0 = vector.load %arg0[%c0, %c0_0, %c0_1] : memref<2x12x256xf32, #tpu.memory_space<vmem>>, vector<2x12x256xf32>
    %cst = arith.constant dense<0.000000e+00> : vector<12x256xf32>
    %1 = vector.multi_reduction <add>, %0, %cst [0] : vector<2x12x256xf32> to vector<12x256xf32>
    %2 = vector.shape_cast %1 : vector<12x256xf32> to vector<1x12x256xf32>
    %cst_2 = arith.constant dense<0.000000e+00> : vector<1x12xf32>
    %3 = vector.multi_reduction <add>, %2, %cst_2 [2] : vector<1x12x256xf32> to vector<1x12xf32>
    %4 = vector.shape_cast %3 : vector<1x12xf32> to vector<1x12x1xf32>
    %cst_3 = arith.constant 5.120000e+02 : f32
    %5 = vector.broadcast %cst_3 : f32 to vector<1x12x1xf32>
    %6 = arith.divf %4, %5 : vector<1x12x1xf32>
    %7 = vector.broadcast %6 : vector<1x12x1xf32> to vector<2x12x256xf32>
    %8 = arith.subf %0, %7 : vector<2x12x256xf32>
    %9 = arith.mulf %8, %8 : vector<2x12x256xf32>
    %cst_4 = arith.constant dense<0.000000e+00> : vector<12x256xf32>
    %10 = vector.multi_reduction <add>, %9, %cst_4 [0] : vector<2x12x256xf32> to vector<12x256xf32>
    %11 = vector.shape_cast %10 : vector<12x256xf32> to vector<1x12x256xf32>
    %cst_5 = arith.constant dense<0.000000e+00> : vector<1x12xf32>
    %12 = vector.multi_reduction <add>, %11, %cst_5 [2] : vector<1x12x256xf32> to vector<1x12xf32>
    %13 = vector.shape_cast %12 : vector<1x12xf32> to vector<1x12x1xf32>
    %cst_6 = arith.constant 5.120000e+02 : f32
    %14 = vector.broadcast %cst_6 : f32 to vector<1x12x1xf32>
    %15 = arith.divf %13, %14 : vector<1x12x1xf32>
    %cst_7 = arith.constant 9.99999974E-6 : f32
    %16 = vector.broadcast %cst_7 : f32 to vector<1x12x1xf32>
    %17 = arith.addf %15, %16 : vector<1x12x1xf32>
    %18 = math.rsqrt %17 : vector<1x12x1xf32>
    %19 = vector.broadcast %18 : vector<1x12x1xf32> to vector<2x12x256xf32>
    %20 = arith.mulf %8, %19 : vector<2x12x256xf32>
    %c0_8 = arith.constant 0 : index
    %c0_9 = arith.constant 0 : index
    %c0_10 = arith.constant 0 : index
    %21 = vector.load %arg1[%c0_8, %c0_9, %c0_10] : memref<1x12x1xf32, #tpu.memory_space<vmem>>, vector<1x12x1xf32>
    %22 = vector.broadcast %21 : vector<1x12x1xf32> to vector<2x12x256xf32>
    %23 = arith.mulf %20, %22 : vector<2x12x256xf32>
    %c0_11 = arith.constant 0 : index
    %c0_12 = arith.constant 0 : index
    %c0_13 = arith.constant 0 : index
    %24 = vector.load %arg2[%c0_11, %c0_12, %c0_13] : memref<1x12x1xf32, #tpu.memory_space<vmem>>, vector<1x12x1xf32>
    %25 = vector.broadcast %24 : vector<1x12x1xf32> to vector<2x12x256xf32>
    %26 = arith.addf %23, %25 : vector<2x12x256xf32>
    %cst_14 = arith.constant 0.000000e+00 : f32
    %27 = vector.broadcast %cst_14 : f32 to vector<2x12x256xf32>
    %28 = arith.maximumf %26, %27 : vector<2x12x256xf32>
    %c0_15 = arith.constant 0 : index
    %c0_16 = arith.constant 0 : index
    %c0_17 = arith.constant 0 : index
    %29 = vector.load %arg3[%c0_15, %c0_16, %c0_17] : memref<2x12x256xf32, #tpu.memory_space<vmem>>, vector<2x12x256xf32>
    tpu.vector_store %arg3[%c0_15, %c0_16, %c0_17], %28 {strides = array<i32>} : memref<2x12x256xf32, #tpu.memory_space<vmem>>, vector<2x12x256xf32>,
    return
  }
}

module attributes {stable_mosaic.version = 11 : i64} {
  func.func @_bn_relu_kernel(%arg0: memref<2x4x18x18xf32, #tpu.memory_space<vmem>>, %arg1: memref<1x4x1x1xf32, #tpu.memory_space<vmem>>, %arg2: memref<1x4x1x1xf32, #tpu.memory_space<vmem>>, %arg3: memref<2x4x16x16xf32, #tpu.memory_space<vmem>>) attributes {dimension_semantics = [], scalar_prefetch = 0 : i64, scratch_operands = 0 : i64, tpu.core_type = #tpu.core_type<tc>} {
    %c0 = arith.constant 0 : index
    %c0_0 = arith.constant 0 : index
    %c0_1 = arith.constant 0 : index
    %c0_2 = arith.constant 0 : index
    %0 = vector.load %arg0[%c0, %c0_0, %c0_1, %c0_2] : memref<2x4x18x18xf32, #tpu.memory_space<vmem>>, vector<2x4x18x18xf32>
    %1 = vector.extract_strided_slice %0 {offsets = [0, 0, 0, 0], sizes = [2, 4, 16, 16], strides = [1, 1, 1, 1]} : vector<2x4x18x18xf32> to vector<2x4x16x16xf32>
    %cst = arith.constant dense<0.000000e+00> : vector<4x16x16xf32>
    %2 = vector.multi_reduction <add>, %1, %cst [0] : vector<2x4x16x16xf32> to vector<4x16x16xf32>
    %3 = vector.shape_cast %2 : vector<4x16x16xf32> to vector<1x4x16x16xf32>
    %cst_3 = arith.constant dense<0.000000e+00> : vector<1x4x16xf32>
    %4 = vector.multi_reduction <add>, %3, %cst_3 [2] : vector<1x4x16x16xf32> to vector<1x4x16xf32>
    %5 = vector.shape_cast %4 : vector<1x4x16xf32> to vector<1x4x1x16xf32>
    %cst_4 = arith.constant dense<0.000000e+00> : vector<1x4x1xf32>
    %6 = vector.multi_reduction <add>, %5, %cst_4 [3] : vector<1x4x1x16xf32> to vector<1x4x1xf32>
    %7 = vector.shape_cast %6 : vector<1x4x1xf32> to vector<1x4x1x1xf32>
    %cst_5 = arith.constant 5.120000e+02 : f32
    %8 = vector.broadcast %cst_5 : f32 to vector<1x4x1x1xf32>
    %9 = arith.divf %7, %8 : vector<1x4x1x1xf32>
    %10 = vector.broadcast %9 : vector<1x4x1x1xf32> to vector<2x4x16x16xf32>
    %11 = arith.subf %1, %10 : vector<2x4x16x16xf32>
    %12 = arith.mulf %11, %11 : vector<2x4x16x16xf32>
    %cst_6 = arith.constant dense<0.000000e+00> : vector<4x16x16xf32>
    %13 = vector.multi_reduction <add>, %12, %cst_6 [0] : vector<2x4x16x16xf32> to vector<4x16x16xf32>
    %14 = vector.shape_cast %13 : vector<4x16x16xf32> to vector<1x4x16x16xf32>
    %cst_7 = arith.constant dense<0.000000e+00> : vector<1x4x16xf32>
    %15 = vector.multi_reduction <add>, %14, %cst_7 [2] : vector<1x4x16x16xf32> to vector<1x4x16xf32>
    %16 = vector.shape_cast %15 : vector<1x4x16xf32> to vector<1x4x1x16xf32>
    %cst_8 = arith.constant dense<0.000000e+00> : vector<1x4x1xf32>
    %17 = vector.multi_reduction <add>, %16, %cst_8 [3] : vector<1x4x1x16xf32> to vector<1x4x1xf32>
    %18 = vector.shape_cast %17 : vector<1x4x1xf32> to vector<1x4x1x1xf32>
    %cst_9 = arith.constant 5.120000e+02 : f32
    %19 = vector.broadcast %cst_9 : f32 to vector<1x4x1x1xf32>
    %20 = arith.divf %18, %19 : vector<1x4x1x1xf32>
    %cst_10 = arith.constant 4.000000e+00 : f32
    %21 = vector.broadcast %cst_10 : f32 to vector<1x4x1x1xf32>
    %22 = arith.addf %20, %21 : vector<1x4x1x1xf32>
    %23 = math.rsqrt %22 : vector<1x4x1x1xf32>
    %24 = vector.broadcast %23 : vector<1x4x1x1xf32> to vector<2x4x16x16xf32>
    %25 = arith.mulf %11, %24 : vector<2x4x16x16xf32>
    %c0_11 = arith.constant 0 : index
    %c0_12 = arith.constant 0 : index
    %c0_13 = arith.constant 0 : index
    %c0_14 = arith.constant 0 : index
    %26 = vector.load %arg1[%c0_11, %c0_12, %c0_13, %c0_14] : memref<1x4x1x1xf32, #tpu.memory_space<vmem>>, vector<1x4x1x1xf32>
    %27 = vector.broadcast %26 : vector<1x4x1x1xf32> to vector<2x4x16x16xf32>
    %28 = arith.mulf %25, %27 : vector<2x4x16x16xf32>
    %c0_15 = arith.constant 0 : index
    %c0_16 = arith.constant 0 : index
    %c0_17 = arith.constant 0 : index
    %c0_18 = arith.constant 0 : index
    %29 = vector.load %arg2[%c0_15, %c0_16, %c0_17, %c0_18] : memref<1x4x1x1xf32, #tpu.memory_space<vmem>>, vector<1x4x1x1xf32>
    %30 = vector.broadcast %29 : vector<1x4x1x1xf32> to vector<2x4x16x16xf32>
    %31 = arith.addf %28, %30 : vector<2x4x16x16xf32>
    %cst_19 = arith.constant 0.000000e+00 : f32
    %32 = vector.broadcast %cst_19 : f32 to vector<2x4x16x16xf32>
    %33 = arith.maximumf %31, %32 : vector<2x4x16x16xf32>
    %c0_20 = arith.constant 0 : index
    %c0_21 = arith.constant 0 : index
    %c0_22 = arith.constant 0 : index
    %c0_23 = arith.constant 0 : index
    %34 = vector.load %arg3[%c0_20, %c0_21, %c0_22, %c0_23] : memref<2x4x16x16xf32, #tpu.memory_space<vmem>>, vector<2x4x16x16xf32>
    tpu.vector_store %arg3[%c0_20, %c0_21, %c0_22, %c0_23], %33 {strides = array<i32>} : memref<2x4x16x16xf32, #tpu.memory_space<vmem>>, vector<2x4x16x16xf32>,
    return
  }
}

module attributes {stable_mosaic.version = 11 : i64} {
  func.func @_bn_relu_kernel(%arg0: memref<2x4x18x18xf32, #tpu.memory_space<vmem>>, %arg1: memref<1x4x1x1xf32, #tpu.memory_space<vmem>>, %arg2: memref<1x4x1x1xf32, #tpu.memory_space<vmem>>, %arg3: memref<2x4x16x16xf32, #tpu.memory_space<vmem>>) attributes {dimension_semantics = [], scalar_prefetch = 0 : i64, scratch_operands = 0 : i64, tpu.core_type = #tpu.core_type<tc>} {
    %c0 = arith.constant 0 : index
    %c0_0 = arith.constant 0 : index
    %c0_1 = arith.constant 0 : index
    %c0_2 = arith.constant 0 : index
    %0 = vector.load %arg0[%c0, %c0_0, %c0_1, %c0_2] : memref<2x4x18x18xf32, #tpu.memory_space<vmem>>, vector<2x4x18x18xf32>
    %1 = vector.extract_strided_slice %0 {offsets = [0, 0, 0, 0], sizes = [2, 4, 16, 16], strides = [1, 1, 1, 1]} : vector<2x4x18x18xf32> to vector<2x4x16x16xf32>
    %cst = arith.constant dense<0.000000e+00> : vector<4x16x16xf32>
    %2 = vector.multi_reduction <add>, %1, %cst [0] : vector<2x4x16x16xf32> to vector<4x16x16xf32>
    %3 = vector.shape_cast %2 : vector<4x16x16xf32> to vector<1x4x16x16xf32>
    %cst_3 = arith.constant dense<0.000000e+00> : vector<1x4x16xf32>
    %4 = vector.multi_reduction <add>, %3, %cst_3 [2] : vector<1x4x16x16xf32> to vector<1x4x16xf32>
    %5 = vector.shape_cast %4 : vector<1x4x16xf32> to vector<1x4x1x16xf32>
    %cst_4 = arith.constant dense<0.000000e+00> : vector<1x4x1xf32>
    %6 = vector.multi_reduction <add>, %5, %cst_4 [3] : vector<1x4x1x16xf32> to vector<1x4x1xf32>
    %7 = vector.shape_cast %6 : vector<1x4x1xf32> to vector<1x4x1x1xf32>
    %cst_5 = arith.constant 5.120000e+02 : f32
    %8 = vector.broadcast %cst_5 : f32 to vector<1x4x1x1xf32>
    %9 = arith.divf %7, %8 : vector<1x4x1x1xf32>
    %10 = vector.broadcast %9 : vector<1x4x1x1xf32> to vector<2x4x16x16xf32>
    %11 = arith.subf %1, %10 : vector<2x4x16x16xf32>
    %12 = arith.mulf %11, %11 : vector<2x4x16x16xf32>
    %cst_6 = arith.constant dense<0.000000e+00> : vector<4x16x16xf32>
    %13 = vector.multi_reduction <add>, %12, %cst_6 [0] : vector<2x4x16x16xf32> to vector<4x16x16xf32>
    %14 = vector.shape_cast %13 : vector<4x16x16xf32> to vector<1x4x16x16xf32>
    %cst_7 = arith.constant dense<0.000000e+00> : vector<1x4x16xf32>
    %15 = vector.multi_reduction <add>, %14, %cst_7 [2] : vector<1x4x16x16xf32> to vector<1x4x16xf32>
    %16 = vector.shape_cast %15 : vector<1x4x16xf32> to vector<1x4x1x16xf32>
    %cst_8 = arith.constant dense<0.000000e+00> : vector<1x4x1xf32>
    %17 = vector.multi_reduction <add>, %16, %cst_8 [3] : vector<1x4x1x16xf32> to vector<1x4x1xf32>
    %18 = vector.shape_cast %17 : vector<1x4x1xf32> to vector<1x4x1x1xf32>
    %cst_9 = arith.constant 5.120000e+02 : f32
    %19 = vector.broadcast %cst_9 : f32 to vector<1x4x1x1xf32>
    %20 = arith.divf %18, %19 : vector<1x4x1x1xf32>
    %cst_10 = arith.constant 9.99999974E-6 : f32
    %21 = vector.broadcast %cst_10 : f32 to vector<1x4x1x1xf32>
    %22 = arith.addf %20, %21 : vector<1x4x1x1xf32>
    %23 = math.rsqrt %22 : vector<1x4x1x1xf32>
    %24 = vector.broadcast %23 : vector<1x4x1x1xf32> to vector<2x4x16x16xf32>
    %25 = arith.mulf %11, %24 : vector<2x4x16x16xf32>
    %c0_11 = arith.constant 0 : index
    %c0_12 = arith.constant 0 : index
    %c0_13 = arith.constant 0 : index
    %c0_14 = arith.constant 0 : index
    %26 = vector.load %arg1[%c0_11, %c0_12, %c0_13, %c0_14] : memref<1x4x1x1xf32, #tpu.memory_space<vmem>>, vector<1x4x1x1xf32>
    %27 = vector.broadcast %26 : vector<1x4x1x1xf32> to vector<2x4x16x16xf32>
    %28 = arith.mulf %25, %27 : vector<2x4x16x16xf32>
    %c0_15 = arith.constant 0 : index
    %c0_16 = arith.constant 0 : index
    %c0_17 = arith.constant 0 : index
    %c0_18 = arith.constant 0 : index
    %29 = vector.load %arg2[%c0_15, %c0_16, %c0_17, %c0_18] : memref<1x4x1x1xf32, #tpu.memory_space<vmem>>, vector<1x4x1x1xf32>
    %30 = vector.broadcast %29 : vector<1x4x1x1xf32> to vector<2x4x16x16xf32>
    %31 = arith.addf %28, %30 : vector<2x4x16x16xf32>
    %cst_19 = arith.constant 0.000000e+00 : f32
    %32 = vector.broadcast %cst_19 : f32 to vector<2x4x16x16xf32>
    %33 = arith.maximumf %31, %32 : vector<2x4x16x16xf32>
    %c0_20 = arith.constant 0 : index
    %c0_21 = arith.constant 0 : index
    %c0_22 = arith.constant 0 : index
    %c0_23 = arith.constant 0 : index
    %34 = vector.load %arg3[%c0_20, %c0_21, %c0_22, %c0_23] : memref<2x4x16x16xf32, #tpu.memory_space<vmem>>, vector<2x4x16x16xf32>
    tpu.vector_store %arg3[%c0_20, %c0_21, %c0_22, %c0_23], %33 {strides = array<i32>} : memref<2x4x16x16xf32, #tpu.memory_space<vmem>>, vector<2x4x16x16xf32>,
    return
  }
}

module attributes {stable_mosaic.version = 11 : i64} {
  func.func @_fft_contract_kernel(%arg0: i32, %arg1: memref<1x4x256xf32, #tpu.memory_space<vmem>>, %arg2: memref<1x4x256xf32, #tpu.memory_space<vmem>>, %arg3: memref<4x8x256xf32, #tpu.memory_space<vmem>>, %arg4: memref<4x8x256xf32, #tpu.memory_space<vmem>>, %arg5: memref<4x8x256xf32, #tpu.memory_space<vmem>>, %arg6: memref<1x8x256xf32, #tpu.memory_space<vmem>>, %arg7: memref<1x8x256xf32, #tpu.memory_space<vmem>>) attributes {dimension_semantics = [#tpu.dimension_semantics<parallel>], iteration_bounds = array<i64: 2>, scalar_prefetch = 0 : i64, scratch_operands = 0 : i64, tpu.core_type = #tpu.core_type<tc>, window_params = [{transform_indices = @transform_0, window_bounds = array<i64: 1, 4, 256>}, {transform_indices = @transform_1, window_bounds = array<i64: 1, 4, 256>}, {pipeline_mode = #tpu.pipeline_mode<synchronous>, transform_indices = @transform_2, window_bounds = array<i64: 4, 8, 256>}, {pipeline_mode = #tpu.pipeline_mode<synchronous>, transform_indices = @transform_3, window_bounds = array<i64: 4, 8, 256>}, {pipeline_mode = #tpu.pipeline_mode<synchronous>, transform_indices = @transform_4, window_bounds = array<i64: 4, 8, 256>}, {transform_indices = @transform_5, window_bounds = array<i64: 1, 8, 256>}, {transform_indices = @transform_6, window_bounds = array<i64: 1, 8, 256>}]} {
    %c0 = arith.constant 0 : index
    %c0_0 = arith.constant 0 : index
    %c0_1 = arith.constant 0 : index
    %0 = vector.load %arg1[%c0, %c0_0, %c0_1] : memref<1x4x256xf32, #tpu.memory_space<vmem>>, vector<1x4x256xf32>
    %1 = vector.shape_cast %0 : vector<1x4x256xf32> to vector<4x256xf32>
    %c0_2 = arith.constant 0 : index
    %c0_3 = arith.constant 0 : index
    %c0_4 = arith.constant 0 : index
    %2 = vector.load %arg2[%c0_2, %c0_3, %c0_4] : memref<1x4x256xf32, #tpu.memory_space<vmem>>, vector<1x4x256xf32>
    %3 = vector.shape_cast %2 : vector<1x4x256xf32> to vector<4x256xf32>
    %4 = math.absf %1 : vector<4x256xf32>
    %cst = arith.constant 5.000000e-01 : f32
    %5 = vector.broadcast %cst : f32 to vector<4x256xf32>
    %6 = arith.cmpf oge, %4, %5 : vector<4x256xf32>
    %cst_5 = arith.constant 0.000000e+00 : f32
    %7 = vector.broadcast %cst_5 : f32 to vector<4x256xf32>
    %8 = arith.select %6, %1, %7 : vector<4x256xi1>, vector<4x256xf32>
    %cst_6 = arith.constant 0.000000e+00 : f32
    %9 = vector.broadcast %cst_6 : f32 to vector<4x256xf32>
    %10 = arith.select %6, %3, %9 : vector<4x256xi1>, vector<4x256xf32>
    %11 = arith.addf %8, %10 : vector<4x256xf32>
    %c0_7 = arith.constant 0 : index
    %c0_8 = arith.constant 0 : index
    %c0_9 = arith.constant 0 : index
    %12 = vector.load %arg3[%c0_7, %c0_8, %c0_9] : memref<4x8x256xf32, #tpu.memory_space<vmem>>, vector<1x8x256xf32>
    %13 = vector.shape_cast %12 : vector<1x8x256xf32> to vector<8x256xf32>
    %c0_10 = arith.constant 0 : index
    %c0_11 = arith.constant 0 : index
    %c0_12 = arith.constant 0 : index
    %14 = vector.load %arg4[%c0_10, %c0_11, %c0_12] : memref<4x8x256xf32, #tpu.memory_space<vmem>>, vector<1x8x256xf32>
    %15 = vector.shape_cast %14 : vector<1x8x256xf32> to vector<8x256xf32>
    %c0_13 = arith.constant 0 : index
    %c0_14 = arith.constant 0 : index
    %c0_15 = arith.constant 0 : index
    %16 = vector.load %arg5[%c0_13, %c0_14, %c0_15] : memref<4x8x256xf32, #tpu.memory_space<vmem>>, vector<1x8x256xf32>
    %17 = vector.shape_cast %16 : vector<1x8x256xf32> to vector<8x256xf32>
    %18 = vector.extract_strided_slice %11 {offsets = [0, 0], sizes = [1, 256], strides = [1, 1]} : vector<4x256xf32> to vector<1x256xf32>
    %19 = vector.broadcast %18 : vector<1x256xf32> to vector<8x256xf32>
    %20 = arith.mulf %13, %19 : vector<8x256xf32>
    %21 = vector.extract_strided_slice %10 {offsets = [0, 0], sizes = [1, 256], strides = [1, 1]} : vector<4x256xf32> to vector<1x256xf32>
    %22 = vector.broadcast %21 : vector<1x256xf32> to vector<8x256xf32>
    %23 = arith.mulf %22, %15 : vector<8x256xf32>
    %24 = arith.subf %20, %23 : vector<8x256xf32>
    %25 = vector.extract_strided_slice %8 {offsets = [0, 0], sizes = [1, 256], strides = [1, 1]} : vector<4x256xf32> to vector<1x256xf32>
    %26 = vector.broadcast %25 : vector<1x256xf32> to vector<8x256xf32>
    %27 = arith.mulf %26, %17 : vector<8x256xf32>
    %28 = arith.addf %20, %27 : vector<8x256xf32>
    %c1 = arith.constant 1 : index
    %c0_16 = arith.constant 0 : index
    %c0_17 = arith.constant 0 : index
    %29 = vector.load %arg3[%c1, %c0_16, %c0_17] : memref<4x8x256xf32, #tpu.memory_space<vmem>>, vector<1x8x256xf32>
    %30 = vector.shape_cast %29 : vector<1x8x256xf32> to vector<8x256xf32>
    %c1_18 = arith.constant 1 : index
    %c0_19 = arith.constant 0 : index
    %c0_20 = arith.constant 0 : index
    %31 = vector.load %arg4[%c1_18, %c0_19, %c0_20] : memref<4x8x256xf32, #tpu.memory_space<vmem>>, vector<1x8x256xf32>
    %32 = vector.shape_cast %31 : vector<1x8x256xf32> to vector<8x256xf32>
    %c1_21 = arith.constant 1 : index
    %c0_22 = arith.constant 0 : index
    %c0_23 = arith.constant 0 : index
    %33 = vector.load %arg5[%c1_21, %c0_22, %c0_23] : memref<4x8x256xf32, #tpu.memory_space<vmem>>, vector<1x8x256xf32>
    %34 = vector.shape_cast %33 : vector<1x8x256xf32> to vector<8x256xf32>
    %35 = vector.extract_strided_slice %11 {offsets = [1, 0], sizes = [1, 256], strides = [1, 1]} : vector<4x256xf32> to vector<1x256xf32>
    %36 = vector.broadcast %35 : vector<1x256xf32> to vector<8x256xf32>
    %37 = arith.mulf %30, %36 : vector<8x256xf32>
    %38 = vector.extract_strided_slice %10 {offsets = [1, 0], sizes = [1, 256], strides = [1, 1]} : vector<4x256xf32> to vector<1x256xf32>
    %39 = vector.broadcast %38 : vector<1x256xf32> to vector<8x256xf32>
    %40 = arith.mulf %39, %32 : vector<8x256xf32>
    %41 = arith.subf %37, %40 : vector<8x256xf32>
    %42 = vector.extract_strided_slice %8 {offsets = [1, 0], sizes = [1, 256], strides = [1, 1]} : vector<4x256xf32> to vector<1x256xf32>
    %43 = vector.broadcast %42 : vector<1x256xf32> to vector<8x256xf32>
    %44 = arith.mulf %43, %34 : vector<8x256xf32>
    %45 = arith.addf %37, %44 : vector<8x256xf32>
    %46 = arith.addf %24, %41 : vector<8x256xf32>
    %47 = arith.addf %28, %45 : vector<8x256xf32>
    %c2 = arith.constant 2 : index
    %c0_24 = arith.constant 0 : index
    %c0_25 = arith.constant 0 : index
    %48 = vector.load %arg3[%c2, %c0_24, %c0_25] : memref<4x8x256xf32, #tpu.memory_space<vmem>>, vector<1x8x256xf32>
    %49 = vector.shape_cast %48 : vector<1x8x256xf32> to vector<8x256xf32>
    %c2_26 = arith.constant 2 : index
    %c0_27 = arith.constant 0 : index
    %c0_28 = arith.constant 0 : index
    %50 = vector.load %arg4[%c2_26, %c0_27, %c0_28] : memref<4x8x256xf32, #tpu.memory_space<vmem>>, vector<1x8x256xf32>
    %51 = vector.shape_cast %50 : vector<1x8x256xf32> to vector<8x256xf32>
    %c2_29 = arith.constant 2 : index
    %c0_30 = arith.constant 0 : index
    %c0_31 = arith.constant 0 : index
    %52 = vector.load %arg5[%c2_29, %c0_30, %c0_31] : memref<4x8x256xf32, #tpu.memory_space<vmem>>, vector<1x8x256xf32>
    %53 = vector.shape_cast %52 : vector<1x8x256xf32> to vector<8x256xf32>
    %54 = vector.extract_strided_slice %11 {offsets = [2, 0], sizes = [1, 256], strides = [1, 1]} : vector<4x256xf32> to vector<1x256xf32>
    %55 = vector.broadcast %54 : vector<1x256xf32> to vector<8x256xf32>
    %56 = arith.mulf %49, %55 : vector<8x256xf32>
    %57 = vector.extract_strided_slice %10 {offsets = [2, 0], sizes = [1, 256], strides = [1, 1]} : vector<4x256xf32> to vector<1x256xf32>
    %58 = vector.broadcast %57 : vector<1x256xf32> to vector<8x256xf32>
    %59 = arith.mulf %58, %51 : vector<8x256xf32>
    %60 = arith.subf %56, %59 : vector<8x256xf32>
    %61 = vector.extract_strided_slice %8 {offsets = [2, 0], sizes = [1, 256], strides = [1, 1]} : vector<4x256xf32> to vector<1x256xf32>
    %62 = vector.broadcast %61 : vector<1x256xf32> to vector<8x256xf32>
    %63 = arith.mulf %62, %53 : vector<8x256xf32>
    %64 = arith.addf %56, %63 : vector<8x256xf32>
    %65 = arith.addf %46, %60 : vector<8x256xf32>
    %66 = arith.addf %47, %64 : vector<8x256xf32>
    %c3 = arith.constant 3 : index
    %c0_32 = arith.constant 0 : index
    %c0_33 = arith.constant 0 : index
    %67 = vector.load %arg3[%c3, %c0_32, %c0_33] : memref<4x8x256xf32, #tpu.memory_space<vmem>>, vector<1x8x256xf32>
    %68 = vector.shape_cast %67 : vector<1x8x256xf32> to vector<8x256xf32>
    %c3_34 = arith.constant 3 : index
    %c0_35 = arith.constant 0 : index
    %c0_36 = arith.constant 0 : index
    %69 = vector.load %arg4[%c3_34, %c0_35, %c0_36] : memref<4x8x256xf32, #tpu.memory_space<vmem>>, vector<1x8x256xf32>
    %70 = vector.shape_cast %69 : vector<1x8x256xf32> to vector<8x256xf32>
    %c3_37 = arith.constant 3 : index
    %c0_38 = arith.constant 0 : index
    %c0_39 = arith.constant 0 : index
    %71 = vector.load %arg5[%c3_37, %c0_38, %c0_39] : memref<4x8x256xf32, #tpu.memory_space<vmem>>, vector<1x8x256xf32>
    %72 = vector.shape_cast %71 : vector<1x8x256xf32> to vector<8x256xf32>
    %73 = vector.extract_strided_slice %11 {offsets = [3, 0], sizes = [1, 256], strides = [1, 1]} : vector<4x256xf32> to vector<1x256xf32>
    %74 = vector.broadcast %73 : vector<1x256xf32> to vector<8x256xf32>
    %75 = arith.mulf %68, %74 : vector<8x256xf32>
    %76 = vector.extract_strided_slice %10 {offsets = [3, 0], sizes = [1, 256], strides = [1, 1]} : vector<4x256xf32> to vector<1x256xf32>
    %77 = vector.broadcast %76 : vector<1x256xf32> to vector<8x256xf32>
    %78 = arith.mulf %77, %70 : vector<8x256xf32>
    %79 = arith.subf %75, %78 : vector<8x256xf32>
    %80 = vector.extract_strided_slice %8 {offsets = [3, 0], sizes = [1, 256], strides = [1, 1]} : vector<4x256xf32> to vector<1x256xf32>
    %81 = vector.broadcast %80 : vector<1x256xf32> to vector<8x256xf32>
    %82 = arith.mulf %81, %72 : vector<8x256xf32>
    %83 = arith.addf %75, %82 : vector<8x256xf32>
    %84 = arith.addf %65, %79 : vector<8x256xf32>
    %85 = arith.addf %66, %83 : vector<8x256xf32>
    %c0_40 = arith.constant 0 : index
    %c0_41 = arith.constant 0 : index
    %c0_42 = arith.constant 0 : index
    %86 = vector.load %arg6[%c0_40, %c0_41, %c0_42] : memref<1x8x256xf32, #tpu.memory_space<vmem>>, vector<1x8x256xf32>
    %87 = vector.shape_cast %86 : vector<1x8x256xf32> to vector<8x256xf32>
    %88 = vector.shape_cast %84 : vector<8x256xf32> to vector<1x8x256xf32>
    tpu.vector_store %arg6[%c0_40, %c0_41, %c0_42], %88 {strides = array<i32>} : memref<1x8x256xf32, #tpu.memory_space<vmem>>, vector<1x8x256xf32>,
    %c0_43 = arith.constant 0 : index
    %c0_44 = arith.constant 0 : index
    %c0_45 = arith.constant 0 : index
    %89 = vector.load %arg7[%c0_43, %c0_44, %c0_45] : memref<1x8x256xf32, #tpu.memory_space<vmem>>, vector<1x8x256xf32>
    %90 = vector.shape_cast %89 : vector<1x8x256xf32> to vector<8x256xf32>
    %91 = vector.shape_cast %85 : vector<8x256xf32> to vector<1x8x256xf32>
    tpu.vector_store %arg7[%c0_43, %c0_44, %c0_45], %91 {strides = array<i32>} : memref<1x8x256xf32, #tpu.memory_space<vmem>>, vector<1x8x256xf32>,
    return
  }
  func.func @transform_0(%arg0: i32) -> (i32, i32, i32) {
    %c0_i32 = arith.constant 0 : i32
    %c0_i32_0 = arith.constant 0 : i32
    %c0_i32_1 = arith.constant 0 : i32
    return %arg0, %c0_i32, %c0_i32_0 : i32, i32, i32
  }
  func.func @transform_1(%arg0: i32) -> (i32, i32, i32) {
    %c0_i32 = arith.constant 0 : i32
    %c0_i32_0 = arith.constant 0 : i32
    %c0_i32_1 = arith.constant 0 : i32
    return %arg0, %c0_i32, %c0_i32_0 : i32, i32, i32
  }
  func.func @transform_2(%arg0: i32) -> (i32, i32, i32) {
    %c0_i32 = arith.constant 0 : i32
    %c0_i32_0 = arith.constant 0 : i32
    %c0_i32_1 = arith.constant 0 : i32
    %c0_i32_2 = arith.constant 0 : i32
    return %c0_i32, %c0_i32_0, %c0_i32_1 : i32, i32, i32
  }
  func.func @transform_3(%arg0: i32) -> (i32, i32, i32) {
    %c0_i32 = arith.constant 0 : i32
    %c0_i32_0 = arith.constant 0 : i32
    %c0_i32_1 = arith.constant 0 : i32
    %c0_i32_2 = arith.constant 0 : i32
    return %c0_i32, %c0_i32_0, %c0_i32_1 : i32, i32, i32
  }
  func.func @transform_4(%arg0: i32) -> (i32, i32, i32) {
    %c0_i32 = arith.constant 0 : i32
    %c0_i32_0 = arith.constant 0 : i32
    %c0_i32_1 = arith.constant 0 : i32
    %c0_i32_2 = arith.constant 0 : i32
    return %c0_i32, %c0_i32_0, %c0_i32_1 : i32, i32, i32
  }
  func.func @transform_5(%arg0: i32) -> (i32, i32, i32) {
    %c0_i32 = arith.constant 0 : i32
    %c0_i32_0 = arith.constant 0 : i32
    %c0_i32_1 = arith.constant 0 : i32
    return %arg0, %c0_i32, %c0_i32_0 : i32, i32, i32
  }
  func.func @transform_6(%arg0: i32) -> (i32, i32, i32) {
    %c0_i32 = arith.constant 0 : i32
    %c0_i32_0 = arith.constant 0 : i32
    %c0_i32_1 = arith.constant 0 : i32
    return %arg0, %c0_i32, %c0_i32_0 : i32, i32, i32
  }
}

module attributes {stable_mosaic.version = 11 : i64} {
  func.func @_bn_relu_kernel(%arg0: memref<2x8x18x18xf32, #tpu.memory_space<vmem>>, %arg1: memref<1x8x1x1xf32, #tpu.memory_space<vmem>>, %arg2: memref<1x8x1x1xf32, #tpu.memory_space<vmem>>, %arg3: memref<2x8x16x16xf32, #tpu.memory_space<vmem>>) attributes {dimension_semantics = [], scalar_prefetch = 0 : i64, scratch_operands = 0 : i64, tpu.core_type = #tpu.core_type<tc>} {
    %c0 = arith.constant 0 : index
    %c0_0 = arith.constant 0 : index
    %c0_1 = arith.constant 0 : index
    %c0_2 = arith.constant 0 : index
    %0 = vector.load %arg0[%c0, %c0_0, %c0_1, %c0_2] : memref<2x8x18x18xf32, #tpu.memory_space<vmem>>, vector<2x8x18x18xf32>
    %1 = vector.extract_strided_slice %0 {offsets = [0, 0, 0, 0], sizes = [2, 8, 16, 16], strides = [1, 1, 1, 1]} : vector<2x8x18x18xf32> to vector<2x8x16x16xf32>
    %cst = arith.constant dense<0.000000e+00> : vector<8x16x16xf32>
    %2 = vector.multi_reduction <add>, %1, %cst [0] : vector<2x8x16x16xf32> to vector<8x16x16xf32>
    %3 = vector.shape_cast %2 : vector<8x16x16xf32> to vector<1x8x16x16xf32>
    %cst_3 = arith.constant dense<0.000000e+00> : vector<1x8x16xf32>
    %4 = vector.multi_reduction <add>, %3, %cst_3 [2] : vector<1x8x16x16xf32> to vector<1x8x16xf32>
    %5 = vector.shape_cast %4 : vector<1x8x16xf32> to vector<1x8x1x16xf32>
    %cst_4 = arith.constant dense<0.000000e+00> : vector<1x8x1xf32>
    %6 = vector.multi_reduction <add>, %5, %cst_4 [3] : vector<1x8x1x16xf32> to vector<1x8x1xf32>
    %7 = vector.shape_cast %6 : vector<1x8x1xf32> to vector<1x8x1x1xf32>
    %cst_5 = arith.constant 5.120000e+02 : f32
    %8 = vector.broadcast %cst_5 : f32 to vector<1x8x1x1xf32>
    %9 = arith.divf %7, %8 : vector<1x8x1x1xf32>
    %10 = vector.broadcast %9 : vector<1x8x1x1xf32> to vector<2x8x16x16xf32>
    %11 = arith.subf %1, %10 : vector<2x8x16x16xf32>
    %12 = arith.mulf %11, %11 : vector<2x8x16x16xf32>
    %cst_6 = arith.constant dense<0.000000e+00> : vector<8x16x16xf32>
    %13 = vector.multi_reduction <add>, %12, %cst_6 [0] : vector<2x8x16x16xf32> to vector<8x16x16xf32>
    %14 = vector.shape_cast %13 : vector<8x16x16xf32> to vector<1x8x16x16xf32>
    %cst_7 = arith.constant dense<0.000000e+00> : vector<1x8x16xf32>
    %15 = vector.multi_reduction <add>, %14, %cst_7 [2] : vector<1x8x16x16xf32> to vector<1x8x16xf32>
    %16 = vector.shape_cast %15 : vector<1x8x16xf32> to vector<1x8x1x16xf32>
    %cst_8 = arith.constant dense<0.000000e+00> : vector<1x8x1xf32>
    %17 = vector.multi_reduction <add>, %16, %cst_8 [3] : vector<1x8x1x16xf32> to vector<1x8x1xf32>
    %18 = vector.shape_cast %17 : vector<1x8x1xf32> to vector<1x8x1x1xf32>
    %cst_9 = arith.constant 5.120000e+02 : f32
    %19 = vector.broadcast %cst_9 : f32 to vector<1x8x1x1xf32>
    %20 = arith.divf %18, %19 : vector<1x8x1x1xf32>
    %cst_10 = arith.constant 9.99999974E-6 : f32
    %21 = vector.broadcast %cst_10 : f32 to vector<1x8x1x1xf32>
    %22 = arith.addf %20, %21 : vector<1x8x1x1xf32>
    %23 = math.rsqrt %22 : vector<1x8x1x1xf32>
    %24 = vector.broadcast %23 : vector<1x8x1x1xf32> to vector<2x8x16x16xf32>
    %25 = arith.mulf %11, %24 : vector<2x8x16x16xf32>
    %c0_11 = arith.constant 0 : index
    %c0_12 = arith.constant 0 : index
    %c0_13 = arith.constant 0 : index
    %c0_14 = arith.constant 0 : index
    %26 = vector.load %arg1[%c0_11, %c0_12, %c0_13, %c0_14] : memref<1x8x1x1xf32, #tpu.memory_space<vmem>>, vector<1x8x1x1xf32>
    %27 = vector.broadcast %26 : vector<1x8x1x1xf32> to vector<2x8x16x16xf32>
    %28 = arith.mulf %25, %27 : vector<2x8x16x16xf32>
    %c0_15 = arith.constant 0 : index
    %c0_16 = arith.constant 0 : index
    %c0_17 = arith.constant 0 : index
    %c0_18 = arith.constant 0 : index
    %29 = vector.load %arg2[%c0_15, %c0_16, %c0_17, %c0_18] : memref<1x8x1x1xf32, #tpu.memory_space<vmem>>, vector<1x8x1x1xf32>
    %30 = vector.broadcast %29 : vector<1x8x1x1xf32> to vector<2x8x16x16xf32>
    %31 = arith.addf %28, %30 : vector<2x8x16x16xf32>
    %cst_19 = arith.constant 0.000000e+00 : f32
    %32 = vector.broadcast %cst_19 : f32 to vector<2x8x16x16xf32>
    %33 = arith.maximumf %31, %32 : vector<2x8x16x16xf32>
    %c0_20 = arith.constant 0 : index
    %c0_21 = arith.constant 0 : index
    %c0_22 = arith.constant 0 : index
    %c0_23 = arith.constant 0 : index
    %34 = vector.load %arg3[%c0_20, %c0_21, %c0_22, %c0_23] : memref<2x8x16x16xf32, #tpu.memory_space<vmem>>, vector<2x8x16x16xf32>
    tpu.vector_store %arg3[%c0_20, %c0_21, %c0_22, %c0_23], %33 {strides = array<i32>} : memref<2x8x16x16xf32, #tpu.memory_space<vmem>>, vector<2x8x16x16xf32>,
    return
  }
}

</mosaic_0001>

<bundles_post_ra>
// kernel: _lambda_.19
= control target key start
LH: loop header
LB: loop body
LE: loop exit
PB: predicated region body
PF: predicated region fallthrough
CT: control target
= control target key end

     0   :  { %s441_s10 = smov 127   ;;  %s442_s27 = smov 126   ;;  %vm272_vm0 = vcmask 1046528   ;;  %vm345_vm1 = vcmask 1045504   ;;  %vm418_vm2 = vcmask 130048   ;;  %s819_s0 = inlined_call_operand.vmem [shape: f32[2,4,18,18], index: 0, kind: input, shape index: {}]   ;;  %s820_s1 = inlined_call_operand.vmem [shape: f32[2,4,16,16], index: 1, kind: output, shape index: {}]  }
   0x1   :  { %v456_v0 = vld [vmem:[%s819_s0 + $0x10] sm:$0x3]  ;;  %v461_v1 = vld [vmem:[%s819_s0] sm:$0xff]  ;;  %v470_v2 = vld [vmem:[%s819_s0 + $0x18] sm:$0xff] }
   0x2   :  { %60 = vrot.lane.b32.xlu1 %v456_v0, %s441_s10  ;;  %56 = vrot.lane.b32.xlu0 %v461_v1, %s441_s10  ;;  %v475_v3 = vld [vmem:[%s819_s0 + $0x8] sm:$0xff]  ;;  %v489_v5 = vld [vmem:[%s819_s0 + $0x20] sm:$0xff] }
   0x3   :  { %v484_v4 = vld [vmem:[%s819_s0 + $0x28] sm:$0x3]  ;;  %v498_v6 = vld [vmem:[%s819_s0 + $0x38] sm:$0xff]  ;;  %v503_v7 = vld [vmem:[%s819_s0 + $0x30] sm:$0xff] }
   0x4   :  { %v512_v8 = vld [vmem:[%s819_s0 + $0x48] sm:$0xff]  ;;  %v517_v9 = vld [vmem:[%s819_s0 + $0x40] sm:$0x3]  ;;  %v526_v10 = vld [vmem:[%s819_s0 + $0x58] sm:$0x3] }
   0x5   :  { %v531_v11 = vld [vmem:[%s819_s0 + $0x50] sm:$0xff]  ;;  %v540_v12 = vld [vmem:[%s819_s0 + $0x68] sm:$0xff]  ;;  %v545_v13 = vld [vmem:[%s819_s0 + $0x60] sm:$0xff] }
   0x6   :  { %62 = vrot.lane.b32.xlu1 %v470_v2, %s441_s10  ;;  %58 = vrot.lane.b32.xlu0 %v475_v3, %s441_s10  ;;  %v554_v14 = vld [vmem:[%s819_s0 + $0x78] sm:$0xff]  ;;  %v559_v15 = vld [vmem:[%s819_s0 + $0x70] sm:$0x3] }
   0x7   :  { %v568_v16 = vld [vmem:[%s819_s0 + $0x88] sm:$0x3]  ;;  %v573_v17 = vld [vmem:[%s819_s0 + $0x80] sm:$0xff]  ;;  %v582_v18 = vld [vmem:[%s819_s0 + $0x98] sm:$0xff] }
   0x8   :  { %v587_v19 = vld [vmem:[%s819_s0 + $0x90] sm:$0xff]  ;;  %v596_v20 = vld [vmem:[%s819_s0 + $0xa8] sm:$0xff]  ;;  %v601_v21 = vld [vmem:[%s819_s0 + $0xa0] sm:$0x3] }
   0x9   :  { %v610_v22 = vld [vmem:[%s819_s0 + $0xb8] sm:$0x3]  ;;  %v615_v23 = vld [vmem:[%s819_s0 + $0xb0] sm:$0xff] }
   0xa   :  { %66 = vrot.lane.b32.xlu1 %v484_v4, %s441_s10  ;;  %64 = vrot.lane.b32.xlu0 %v489_v5, %s441_s10  ;;  %822 = vst [vmem:[#allocation2_spill] sm:$0xff] %v615_v23 }
   0xe   :  { %70 = vrot.lane.b32.xlu1 %v498_v6, %s441_s10  ;;  %68 = vrot.lane.b32.xlu0 %v503_v7, %s441_s10 }
  0x12   :  { %74 = vrot.lane.b32.xlu1 %v512_v8, %s441_s10  ;;  %72 = vrot.lane.b32.xlu0 %v517_v9, %s441_s10 }
  0x16   :  { %78 = vrot.lane.b32.xlu1 %v526_v10, %s441_s10  ;;  %76 = vrot.lane.b32.xlu0 %v531_v11, %s441_s10 }
  0x1a   :  { %82 = vrot.lane.b32.xlu1 %v540_v12, %s441_s10  ;;  %80 = vrot.lane.b32.xlu0 %v545_v13, %s441_s10 }
  0x1e   :  { %86 = vrot.lane.b32.xlu1 %v554_v14, %s441_s10  ;;  %84 = vrot.lane.b32.xlu0 %v559_v15, %s441_s10 }
  0x22   :  { %90 = vrot.lane.b32.xlu1 %v568_v16, %s441_s10  ;;  %88 = vrot.lane.b32.xlu0 %v573_v17, %s441_s10 }
  0x26   :  { %94 = vrot.lane.b32.xlu1 %v582_v18, %s441_s10  ;;  %92 = vrot.lane.b32.xlu0 %v587_v19, %s441_s10 }
  0x2a   :  { %98 = vrot.lane.b32.xlu1 %v596_v20, %s441_s10  ;;  %96 = vrot.lane.b32.xlu0 %v601_v21, %s441_s10 }
  0x2e   :  { %102 = vrot.lane.b32.xlu1 %v610_v22, %s441_s10  ;;  %100 = vrot.lane.b32.xlu0 %v615_v23, %s441_s10 }
  0x32   :  { %154 = vrot.lane.b32.xlu1 %v475_v3, %s442_s27  ;;  %152 = vrot.lane.b32.xlu0 %v461_v1, %s442_s27 }
  0x36   :  { %158 = vrot.lane.b32.xlu1 %v470_v2, %s442_s27  ;;  %156 = vrot.lane.b32.xlu0 %v456_v0, %s442_s27 }
  0x3a   :  { %162 = vrot.lane.b32.xlu1 %v484_v4, %s442_s27  ;;  %160 = vrot.lane.b32.xlu0 %v489_v5, %s442_s27 }
  0x3e   :  { %166 = vrot.lane.b32.xlu1 %v498_v6, %s442_s27  ;;  %164 = vrot.lane.b32.xlu0 %v503_v7, %s442_s27 }
  0x42   :  { %170 = vrot.lane.b32.xlu1 %v512_v8, %s442_s27  ;;  %168 = vrot.lane.b32.xlu0 %v517_v9, %s442_s27 }
  0x46   :  { %174 = vrot.lane.b32.xlu1 %v526_v10, %s442_s27  ;;  %172 = vrot.lane.b32.xlu0 %v531_v11, %s442_s27 }
  0x4a   :  { %178 = vrot.lane.b32.xlu1 %v540_v12, %s442_s27  ;;  %176 = vrot.lane.b32.xlu0 %v545_v13, %s442_s27 }
  0x4e   :  { %182 = vrot.lane.b32.xlu1 %v554_v14, %s442_s27  ;;  %180 = vrot.lane.b32.xlu0 %v559_v15, %s442_s27 }
  0x52   :  { %186 = vrot.lane.b32.xlu1 %v568_v16, %s442_s27  ;;  %184 = vrot.lane.b32.xlu0 %v573_v17, %s442_s27 }
  0x56   :  { %190 = vrot.lane.b32.xlu1 %v582_v18, %s442_s27  ;;  %188 = vrot.lane.b32.xlu0 %v587_v19, %s442_s27 }
  0x5a   :  { %194 = vrot.lane.b32.xlu1 %v596_v20, %s442_s27  ;;  %192 = vrot.lane.b32.xlu0 %v601_v21, %s442_s27 }
  0x5e   :  { %198 = vrot.lane.b32.xlu1 %v610_v22, %s442_s27  ;;  %196 = vrot.lane.b32.xlu0 %v615_v23, %s442_s27 }
  0x74   :  { %v61_v24 = vpop.permute.xlu1 %60  ;;  %v57_v25 = vpop.permute.xlu0 %56 }
  0x75   :  { %v128_v48 = vmax.f32 %v461_v1, %v57_v25  ;;  %v130_v54 = vmax.f32 %v456_v0, %v61_v24 }
  0x78   :  { %v63_v26 = vpop.permute.xlu1 %62  ;;  %v59_v27 = vpop.permute.xlu0 %58 }
  0x79   :  { %v129_v49 = vmax.f32 %v475_v3, %v59_v27  ;;  %v131_v59 = vmax.f32 %v470_v2, %v63_v26 }
  0x7c   :  { %v67_v28 = vpop.permute.xlu1 %66  ;;  %v65_v29 = vpop.permute.xlu0 %64 }
  0x7d   :  { %v133_v1 = vmax.f32 %v484_v4, %v67_v28  ;;  %v132_v0 = vmax.f32 %v489_v5, %v65_v29 }
  0x80   :  { %v645_v30 = vpop.permute.xlu1 %70  ;;  %v647_v31 = vpop.permute.xlu0 %68 }
  0x84   :  { %v649_v32 = vpop.permute.xlu1 %74  ;;  %v651_v33 = vpop.permute.xlu0 %72 }
  0x88   :  { %v653_v34 = vpop.permute.xlu1 %78  ;;  %v655_v35 = vpop.permute.xlu0 %76 }
  0x8c   :  { %v657_v36 = vpop.permute.xlu1 %82  ;;  %v659_v37 = vpop.permute.xlu0 %80 }
  0x90   :  { %v661_v38 = vpop.permute.xlu1 %86  ;;  %v663_v39 = vpop.permute.xlu0 %84 }
  0x94   :  { %v665_v40 = vpop.permute.xlu1 %90  ;;  %v667_v41 = vpop.permute.xlu0 %88 }
  0x98   :  { %v669_v42 = vpop.permute.xlu1 %94  ;;  %v671_v43 = vpop.permute.xlu0 %92 }
  0x9c   :  { %v673_v44 = vpop.permute.xlu1 %98  ;;  %v675_v45 = vpop.permute.xlu0 %96 }
  0xa0   :  { %v677_v46 = vpop.permute.xlu1 %102  ;;  %v679_v47 = vpop.permute.xlu0 %100 }
  0xa4   :  { %v155_v50 = vpop.permute.xlu1 %154  ;;  %v153_v51 = vpop.permute.xlu0 %152 }
  0xa5   :  { %v225_v52 = vmax.f32 %v129_v49, %v155_v50  ;;  %v224_v53 = vmax.f32 %v128_v48, %v153_v51 }
  0xa7   :  { %v274_v55 = vrot.slane %v225_v52, 1  ;;  %v347_v56 = vrot.slane %v225_v52, 2  ;;  %v273_v57 = vrot.slane %v224_v53, 1  ;;  %v346_v58 = vrot.slane %v224_v53, 2 }
  0xa8   :  { %v159_v60 = vpop.permute.xlu1 %158  ;;  %v157_v61 = vpop.permute.xlu0 %156 }
  0xa9   :  { %v275_v62 = vsel %vm272_vm0, %v273_v57, %v274_v55  ;;  %v226_v63 = vmax.f32 %v130_v54, %v157_v61  ;;  %v227_v25 = vmax.f32 %v131_v59, %v159_v60  ;;  %v348_v24 = vsel %vm345_vm1, %v346_v58, %v347_v56 }
  0xaa   :  { %v329_v3 = vmax.f32 %v224_v53, %v275_v62  ;;  %v135_v58 = vmax.f32 %v498_v6, %v645_v30 }
  0xab   :  { %v276_v27 = vrot.slane %v226_v63, 1  ;;  %v349_v48 = vrot.slane %v226_v63, 2  ;;  %v278_v4 = vrot.slane %v227_v25, 1  ;;  %v351_v62 = vrot.slane %v227_v25, 2 }
  0xac   :  { %v402_v49 = vmax.f32 %v329_v3, %v348_v24  ;;  %v163_v50 = vpop.permute.xlu1 %162  ;;  %v161_v2 = vpop.permute.xlu0 %160 }
  0xad   :  { %v277_v26 = vsel %vm272_vm0, %v274_v55, %v276_v27  ;;  %v229_v51 = vmax.f32 %v133_v1, %v163_v50  ;;  %v228_v23 = vmax.f32 %v132_v0, %v161_v2  ;;  %v350_v5 = vsel %vm345_vm1, %v347_v56, %v349_v48 }
  0xae   :  { %419 = vst.msk [vmem:[%s820_s1] sm:$0xff] %vm418_vm2, %v402_v49  ;;  %v330_v28 = vmax.f32 %v225_v52, %v277_v26  ;;  %v134_v55 = vmax.f32 %v503_v7, %v647_v31  ;;  %v136_v7 = vmax.f32 %v517_v9, %v651_v33  ;;  %v137_v0 = vmax.f32 %v512_v8, %v649_v32 }
  0xaf   :  { %v281_v29 = vrot.slane %v229_v51, 1  ;;  %v354_v53 = vrot.slane %v229_v51, 2  ;;  %v279_v54 = vrot.slane %v228_v23, 1  ;;  %v352_v57 = vrot.slane %v228_v23, 2 }
  0xb0   :  { %v403_v59 = vmax.f32 %v330_v28, %v350_v5  ;;  %v167_v60 = vpop.permute.xlu1 %166  ;;  %v165_v61 = vpop.permute.xlu0 %164  ;;  %v139_v9 = vmax.f32 %v526_v10, %v653_v34  ;;  %v138_v32 = vmax.f32 %v531_v11, %v655_v35 }
  0xb1   :  { %v280_v63 = vsel %vm272_vm0, %v278_v4, %v279_v54  ;;  %v282_v52 = vsel %vm272_vm0, %v279_v54, %v281_v29  ;;  %v231_v3 = vmax.f32 %v135_v58, %v167_v60  ;;  %v230_v6 = vmax.f32 %v134_v55, %v165_v61 }
  0xb2   :  { %420 = vst.msk [vmem:[%s820_s1 + $0x8] sm:$0xff] %vm418_vm2, %v403_v59  ;;  %v331_v56 = vmax.f32 %v227_v25, %v280_v63  ;;  %v332_v1 = vmax.f32 %v228_v23, %v282_v52  ;;  %v353_v30 = vsel %vm345_vm1, %v351_v62, %v352_v57  ;;  %v355_v31 = vsel %vm345_vm1, %v352_v57, %v354_v53 }
  0xb3   :  { %v284_v48 = vrot.slane %v231_v3, 1  ;;  %v357_v2 = vrot.slane %v231_v3, 2  ;;  %v283_v25 = vrot.slane %v230_v6, 1  ;;  %v356_v23 = vrot.slane %v230_v6, 2 }
  0xb4   :  { %v404_v24 = vmax.f32 %v331_v56, %v353_v30  ;;  %v405_v27 = vmax.f32 %v332_v1, %v355_v31  ;;  %v171_v49 = vpop.permute.xlu1 %170  ;;  %v169_v50 = vpop.permute.xlu0 %168  ;;  %v141_v58 = vmax.f32 %v540_v12, %v657_v36  ;;  %v140_v61 = vmax.f32 %v545_v13, %v659_v37 }
  0xb5   :  { %v232_v26 = vmax.f32 %v136_v7, %v169_v50  ;;  %v233_v8 = vmax.f32 %v137_v0, %v171_v49  ;;  %v285_v33 = vsel %vm272_vm0, %v283_v25, %v284_v48  ;;  %v358_v53 = vsel %vm345_vm1, %v356_v23, %v357_v2 }
  0xb6   :  { %421 = vst.msk [vmem:[%s820_s1 + $0x10] sm:$0xff] %vm418_vm2, %v404_v24  ;;  %422 = vst.msk [vmem:[%s820_s1 + $0x18] sm:$0xff] %vm418_vm2, %v405_v27  ;;  %v333_v51 = vmax.f32 %v230_v6, %v285_v33  ;;  %v142_v13 = vmax.f32 %v559_v15, %v663_v39  ;;  %v143_v27 = vmax.f32 %v554_v14, %v661_v38 }
  0xb7   :  { %v286_v4 = vrot.slane %v232_v26, 1  ;;  %v359_v28 = vrot.slane %v232_v26, 2  ;;  %v288_v59 = vrot.slane %v233_v8, 1  ;;  %v361_v62 = vrot.slane %v233_v8, 2 }
  0xb8   :  { %v175_v5 = vpop.permute.xlu1 %174  ;;  %v173_v29 = vpop.permute.xlu0 %172  ;;  %v406_v55 = vmax.f32 %v333_v51, %v358_v53  ;;  %v145_v14 = vmax.f32 %v568_v16, %v665_v40  ;;  %v144_v38 = vmax.f32 %v573_v17, %v667_v41  ;;  %v147_v53 = vmax.f32 %v582_v18, %v669_v42 }
  0xb9   :  { %v235_v54 = vmax.f32 %v139_v9, %v175_v5  ;;  %v234_v57 = vmax.f32 %v138_v32, %v173_v29  ;;  %v287_v10 = vsel %vm272_vm0, %v284_v48, %v286_v4  ;;  %v360_v63 = vsel %vm345_vm1, %v357_v2, %v359_v28 }
  0xba   :  { %v334_v34 = vmax.f32 %v231_v3, %v287_v10  ;;  %423 = vst.msk [vmem:[%s820_s1 + $0x20] sm:$0xff] %vm418_vm2, %v406_v55  ;;  %v146_v55 = vmax.f32 %v587_v19, %v671_v43  ;;  %v148_v19 = vmax.f32 %v601_v21, %v675_v45 }
  0xbb   :  { %v291_v11 = vrot.slane %v235_v54, 1  ;;  %v364_v35 = vrot.slane %v235_v54, 2  ;;  %v289_v60 = vrot.slane %v234_v57, 1  ;;  %v362_v12 = vrot.slane %v234_v57, 2 }
  0xbc   :  { %v179_v36 = vpop.permute.xlu1 %178  ;;  %v177_v52 = vpop.permute.xlu0 %176  ;;  %v407_v56 = vmax.f32 %v334_v34, %v360_v63 }
  0xbd   :  { %v290_v1 = vsel %vm272_vm0, %v288_v59, %v289_v60  ;;  %v292_v3 = vsel %vm272_vm0, %v289_v60, %v291_v11  ;;  %v237_v6 = vmax.f32 %v141_v58, %v179_v36  ;;  %v363_v30 = vsel %vm345_vm1, %v361_v62, %v362_v12 }
  0xbe   :  { %v335_v37 = vmax.f32 %v233_v8, %v290_v1  ;;  %v336_v7 = vmax.f32 %v234_v57, %v292_v3  ;;  %424 = vst.msk [vmem:[%s820_s1 + $0x28] sm:$0xff] %vm418_vm2, %v407_v56  ;;  %v365_v31 = vsel %vm345_vm1, %v362_v12, %v364_v35  ;;  %v236_v24 = vmax.f32 %v140_v61, %v177_v52 }
  0xbf   :  { %v294_v0 = vrot.slane %v237_v6, 1  ;;  %v367_v39 = vrot.slane %v237_v6, 2  ;;  %v149_v56 = vmax.f32 %v596_v20, %v673_v44  ;;  %v151_v20 = vmax.f32 %v610_v22, %v677_v46  ;;  %v823_v44 = vld [vmem:[#allocation2_spill] sm:$0xff] }
  0xc0   :  { %v408_v48 = vmax.f32 %v335_v37, %v363_v30  ;;  %v409_v49 = vmax.f32 %v336_v7, %v365_v31  ;;  %v183_v50 = vpop.permute.xlu1 %182  ;;  %v181_v15 = vpop.permute.xlu0 %180  ;;  %v293_v2 = vrot.slane %v236_v24, 1  ;;  %v366_v25 = vrot.slane %v236_v24, 2 }
  0xc1   :  { %v238_v23 = vmax.f32 %v142_v13, %v181_v15  ;;  %v239_v26 = vmax.f32 %v143_v27, %v183_v50  ;;  %v150_v31 = vmax.f32 %v823_v44, %v679_v47 }
  0xc2   :  { %425 = vst.msk [vmem:[%s820_s1 + $0x30] sm:$0xff] %vm418_vm2, %v408_v48  ;;  %426 = vst.msk [vmem:[%s820_s1 + $0x38] sm:$0xff] %vm418_vm2, %v409_v49  ;;  %v295_v8 = vsel %vm272_vm0, %v293_v2, %v294_v0  ;;  %v368_v28 = vsel %vm345_vm1, %v366_v25, %v367_v39 }
  0xc3   :  { %v337_v9 = vmax.f32 %v236_v24, %v295_v8  ;;  %v296_v32 = vrot.slane %v238_v23, 1  ;;  %v369_v33 = vrot.slane %v238_v23, 2  ;;  %v298_v57 = vrot.slane %v239_v26, 1 }
  0xc4   :  { %v187_v51 = vpop.permute.xlu1 %186  ;;  %v185_v4 = vpop.permute.xlu0 %184  ;;  %v371_v59 = vrot.slane %v239_v26, 2 }
  0xc5   :  { %v241_v5 = vmax.f32 %v145_v14, %v187_v51  ;;  %v240_v29 = vmax.f32 %v144_v38, %v185_v4  ;;  %v410_v54 = vmax.f32 %v337_v9, %v368_v28  ;;  %v297_v16 = vsel %vm272_vm0, %v294_v0, %v296_v32 }
  0xc6   :  { %v338_v40 = vmax.f32 %v237_v6, %v297_v16  ;;  %v370_v10 = vsel %vm345_vm1, %v367_v39, %v369_v33 }
  0xc7   :  { %v301_v17 = vrot.slane %v241_v5, 1  ;;  %v374_v41 = vrot.slane %v241_v5, 2  ;;  %v299_v58 = vrot.slane %v240_v29, 1  ;;  %427 = vst.msk [vmem:[%s820_s1 + $0x40] sm:$0xff] %vm418_vm2, %v410_v54  ;;  %v372_v18 = vrot.slane %v240_v29, 2 }
  0xc8   :  { %v191_v42 = vpop.permute.xlu1 %190  ;;  %v189_v34 = vpop.permute.xlu0 %188  ;;  %v411_v11 = vmax.f32 %v338_v40, %v370_v10 }
  0xc9   :  { %v300_v35 = vsel %vm272_vm0, %v298_v57, %v299_v58  ;;  %v302_v60 = vsel %vm272_vm0, %v299_v58, %v301_v17  ;;  %v243_v61 = vmax.f32 %v147_v53, %v191_v42  ;;  %v373_v63 = vsel %vm345_vm1, %v371_v59, %v372_v18 }
  0xca   :  { %v339_v43 = vmax.f32 %v239_v26, %v300_v35  ;;  %v340_v62 = vmax.f32 %v240_v29, %v302_v60  ;;  %428 = vst.msk [vmem:[%s820_s1 + $0x48] sm:$0xff] %vm418_vm2, %v411_v11  ;;  %v375_v12 = vsel %vm345_vm1, %v372_v18, %v374_v41  ;;  %v242_v52 = vmax.f32 %v146_v55, %v189_v34 }
  0xcb   :  { %v304_v36 = vrot.slane %v243_v61, 1  ;;  %v377_v45 = vrot.slane %v243_v61, 2 }
  0xcc   :  { %v412_v1 = vmax.f32 %v339_v43, %v373_v63  ;;  %v413_v3 = vmax.f32 %v340_v62, %v375_v12  ;;  %v195_v6 = vpop.permute.xlu1 %194  ;;  %v193_v21 = vpop.permute.xlu0 %192  ;;  %v303_v13 = vrot.slane %v242_v52, 1  ;;  %v376_v37 = vrot.slane %v242_v52, 2 }
  0xcd   :  { %v244_v7 = vmax.f32 %v148_v19, %v193_v21  ;;  %v245_v30 = vmax.f32 %v149_v56, %v195_v6 }
  0xce   :  { %429 = vst.msk [vmem:[%s820_s1 + $0x50] sm:$0xff] %vm418_vm2, %v412_v1  ;;  %430 = vst.msk [vmem:[%s820_s1 + $0x58] sm:$0xff] %vm418_vm2, %v413_v3  ;;  %v305_v0 = vsel %vm272_vm0, %v303_v13, %v304_v36  ;;  %v378_v15 = vsel %vm345_vm1, %v376_v37, %v377_v45 }
  0xcf   :  { %v341_v24 = vmax.f32 %v242_v52, %v305_v0  ;;  %v306_v27 = vrot.slane %v244_v7, 1  ;;  %v379_v48 = vrot.slane %v244_v7, 2  ;;  %v308_v23 = vrot.slane %v245_v30, 1 }
  0xd0   :  { %v199_v49 = vpop.permute.xlu1 %198  ;;  %v197_v50 = vpop.permute.xlu0 %196  ;;  %v381_v9 = vrot.slane %v245_v30, 2 }
  0xd1   :  { %v247_v39 = vmax.f32 %v151_v20, %v199_v49  ;;  %v246_v2 = vmax.f32 %v150_v31, %v197_v50  ;;  %v414_v25 = vmax.f32 %v341_v24, %v378_v15  ;;  %v307_v26 = vsel %vm272_vm0, %v304_v36, %v306_v27 }
  0xd2   :  { %v342_v14 = vmax.f32 %v243_v61, %v307_v26  ;;  %v380_v47 = vsel %vm345_vm1, %v377_v45, %v379_v48 }
  0xd3   :  { %v311_v22 = vrot.slane %v247_v39, 1  ;;  %v384_v46 = vrot.slane %v247_v39, 2  ;;  %v309_v38 = vrot.slane %v246_v2, 1  ;;  %431 = vst.msk [vmem:[%s820_s1 + $0x60] sm:$0xff] %vm418_vm2, %v414_v25  ;;  %v382_v8 = vrot.slane %v246_v2, 2 }
  0xd4   :  { %v415_v32 = vmax.f32 %v342_v14, %v380_v47 }
  0xd5   :  { %v310_v33 = vsel %vm272_vm0, %v308_v23, %v309_v38  ;;  %v312_v51 = vsel %vm272_vm0, %v309_v38, %v311_v22  ;;  %v383_v5 = vsel %vm345_vm1, %v381_v9, %v382_v8  ;;  %v385_v29 = vsel %vm345_vm1, %v382_v8, %v384_v46 }
  0xd6   :  { %v343_v4 = vmax.f32 %v245_v30, %v310_v33  ;;  %v344_v28 = vmax.f32 %v246_v2, %v312_v51  ;;  %432 = vst.msk [vmem:[%s820_s1 + $0x68] sm:$0xff] %vm418_vm2, %v415_v32 }
  0xd8   :  { %v416_v53 = vmax.f32 %v343_v4, %v383_v5  ;;  %v417_v54 = vmax.f32 %v344_v28, %v385_v29 }
  0xda   :  { %433 = vst.msk [vmem:[%s820_s1 + $0x70] sm:$0xff] %vm418_vm2, %v416_v53  ;;  %434 = vst.msk [vmem:[%s820_s1 + $0x78] sm:$0xff] %vm418_vm2, %v417_v54 }

// kernel: reverse.24
= control target key start
LH: loop header
LB: loop body
LE: loop exit
PB: predicated region body
PF: predicated region fallthrough
CT: control target
= control target key end

     0   :  { %v2_v0 = vlaneseq  ;;  %s440_s0 = inlined_call_operand.vmem [shape: f32[4,4,256], index: 0, kind: input, shape index: {}]   ;;  %s441_s1 = inlined_call_operand.vmem [shape: f32[4,4,256], index: 1, kind: output, shape index: {}]  }
   0x2   :  { %v393_v1 = vsub.s32 127, %v2_v0 }
   0x4   :  { %4 = vset.pattern.permute.xlu0 %v393_v1 }
   0x5   :  { %s396_s6 = smov 0   ;;  %s398_s7 = smov 0  }
   0x6   :  { %s400_s8 = smov 0  }
   0x7 LB: > { %s316_s9 = sadd.s32 4294967295, %s381_s8   ;;  %s22_s10 = sadd.s32 1, %s377_s7  ;;  %s381_s8 = sphi %s400_s8, %s10_s8   ;;  %s377_s7 = sphi %s398_s7, %s443_s7   ;;  %s373_s6 = sphi %s396_s6, %s442_s6  }
   0x8   : > { %p23_p0 = scmp.ge.s32.totalorder %s22_s10, 2  ;;  %p318_p1 = scmp.ge.s32.totalorder %s381_s8, 2 }
   0x9   : > { %s45_s11 = sand.u32 (!%p318_p1), 1, %s381_s8   ;;  %s48_s12 = ssub.s32 (!%p318_p1), 1, %s377_s7 }
   0xa   : > { %s445_s10 = smov (%p23_p0, %s22_s10), 0  ;;  %43 = sbr.rel (%p318_p1) target bundleno = 17 (0x11), region = 16 }
   0xb   : > { %s319_s13 = sshll.u32 (!%p318_p1), %s45_s11, 4  ;;  %s320_s14 = sshll.u32 (!%p318_p1), %s48_s12, 2 }
   0xc   : > { %s55_s17 = scalar_lea.vmem (!%p318_p1), %s440_s0, %s320_s14  ;;  %s47_s18 = scalar_lea.vmem (!%p318_p1), [#allocation1], %s319_s13 }
   0xd   : > { %v71_v2 = vld [vmem:[%s55_s17] sm:$0xf] (!%p318_p1)  ;;  %v73_v3 = vld [vmem:[%s55_s17 + $0x8] sm:$0xf] (!%p318_p1)  ;;  %v75_v4 = vld [vmem:[%s55_s17 + $0x10] sm:$0xf] (!%p318_p1) }
   0xe   : > { %72 = vst [vmem:[%s47_s18] sm:$0xf] (!%p318_p1), %v71_v2  ;;  %74 = vst [vmem:[%s47_s18 + $0x4] sm:$0xf] (!%p318_p1), %v73_v3  ;;  %v77_v5 = vld [vmem:[%s55_s17 + $0x18] sm:$0xf] (!%p318_p1) }
   0xf   : > { %76 = vst [vmem:[%s47_s18 + $0x8] sm:$0xf] (!%p318_p1), %v75_v4  ;;  %78 = vst [vmem:[%s47_s18 + $0xc] sm:$0xf] (!%p318_p1), %v77_v5 }
  0x11 PF: > { %p321_p2 = scmp.ge.s32.totalorder %s381_s8, 1  ;;  %p108_p3 = scmp.lt.s32.totalorder %s381_s8, 3 }
  0x13   : > { %p109_p4 = pnand %p321_p2, %p108_p3 }
  0x14   : > { %358 = vset.pattern.permute.xlu1 (!%p109_p4), %v393_v1  ;;  %s424_s19 = sand.u32 (!%p109_p4), 1, %s316_s9   ;;  %s331_s23 = sshll.u32 (!%p109_p4), %s373_s6, 2 }
  0x15   : > { %112 = sbr.rel (%p109_p4) target bundleno = 181 (0xb5), region = 57  ;;  %s322_s20 = sshll.u32 (!%p109_p4), %s424_s19, 4 }
  0x16   : > { %s121_s21 = scalar_lea.vmem (!%p109_p4), [#allocation1], %s322_s20  ;;  %s125_s22 = scalar_lea.vmem (!%p109_p4), [#allocation3], %s322_s20 }
  0x17   : > { %v142_v6 = vld [vmem:[%s121_s21] sm:$0xf] (!%p109_p4)  ;;  %v325_v7 = vld [vmem:[%s121_s21 + $0x8] sm:$0xf] (!%p109_p4)  ;;  %v326_v8 = vld [vmem:[%s121_s21 + $0x4] sm:$0xf] (!%p109_p4)  ;;  %s202_s26 = scalar_lea.vmem (!%p109_p4), %s441_s1, %s331_s23 }
  0x18   : > { %143 = vst [vmem:[#allocation0] sm:$0xf] (!%p109_p4), %v142_v6  ;;  %137 = vst [vmem:[#allocation0 + $0x10] sm:$0xf] (!%p109_p4), %v325_v7  ;;  %v324_v9 = vld [vmem:[%s121_s21 + $0xc] sm:$0xf] (!%p109_p4) }
  0x19   : > { %141 = vst [vmem:[#allocation0 + $0x8] sm:$0xf] (!%p109_p4), %v326_v8  ;;  %132 = vst [vmem:[#allocation0 + $0x18] sm:$0xf] (!%p109_p4), %v324_v9 }
  0x1f   : > { %v147_v10 = vld [vmem:[#allocation0] sm:$0xff]  ;;  %v159_v11 = vld [vmem:[#allocation0 + $0x10] sm:$0xff] }
  0x20   : > { %148 = vperm.xlu0 %4, %v147_v10   ;;  %160 = vperm.xlu1 %358, %v159_v11   ;;  %v153_v12 = vld [vmem:[#allocation0 + $0x8] sm:$0xff]  ;;  %v165_v13 = vld [vmem:[#allocation0 + $0x18] sm:$0xff] }
  0x24   : > { %154 = vperm.xlu0 %4, %v153_v12   ;;  %166 = vperm.xlu1 %358, %v165_v13  }
  0x9f   : > { %v149_v14 = vpop.permute.xlu0 %148  ;;  %v161_v15 = vpop.permute.xlu1 %160 }
  0xa0   : > { %150 = vst [vmem:[#allocation2] sm:$0xff] %v149_v14  ;;  %162 = vst [vmem:[#allocation2 + $0x10] sm:$0xff] %v161_v15 }
  0xa3   : > { %v155_v16 = vpop.permute.xlu0 %154  ;;  %v167_v17 = vpop.permute.xlu1 %166 }
  0xa4   : > { %156 = vst [vmem:[#allocation2 + $0x8] sm:$0xff] %v155_v16  ;;  %168 = vst [vmem:[#allocation2 + $0x18] sm:$0xff] %v167_v17 }
  0xa7   : > { %v172_v18 = vld [vmem:[#allocation2] sm:$0xf]  ;;  %v181_v19 = vld [vmem:[#allocation2 + $0x10] sm:$0xf] }
  0xa8   : > { %174 = vst [vmem:[%s125_s22] sm:$0xf] %v172_v18  ;;  %328 = vst [vmem:[%s125_s22 + $0x8] sm:$0xf] %v181_v19 }
  0xab   : > { %v176_v20 = vld [vmem:[#allocation2 + $0x8] sm:$0xf]  ;;  %v187_v21 = vld [vmem:[#allocation2 + $0x18] sm:$0xf] }
  0xac   : > { %327 = vst [vmem:[%s125_s22 + $0x4] sm:$0xf] %v176_v20  ;;  %329 = vst [vmem:[%s125_s22 + $0xc] sm:$0xf] %v187_v21 }
  0xaf   : > { %v218_v22 = vld [vmem:[%s125_s22] sm:$0xf]  ;;  %v222_v23 = vld [vmem:[%s125_s22 + $0x8] sm:$0xf] }
  0xb0   : > { %219 = vst [vmem:[%s202_s26] sm:$0xf] %v218_v22  ;;  %223 = vst [vmem:[%s202_s26 + $0x10] sm:$0xf] %v222_v23 }
  0xb3   : > { %v220_v24 = vld [vmem:[%s125_s22 + $0x4] sm:$0xf]  ;;  %v224_v25 = vld [vmem:[%s125_s22 + $0xc] sm:$0xf] }
  0xb4   : > { %221 = vst [vmem:[%s202_s26 + $0x8] sm:$0xf] %v220_v24  ;;  %225 = vst [vmem:[%s202_s26 + $0x18] sm:$0xf] %v224_v25 }
  0xb5 PF: > { %s10_s8 = sadd.s32 1, %s381_s8   ;;  %s442_s6 = smov %s377_s7 }
  0xb6   : > { %p7_p5 = scmp.ge.s32.totalorder %s10_s8, 4   ;;  %s443_s7 = smov %s445_s10 }
  0xb8   :  { %9 = sbr.rel (!%p7_p5) target bundleno = 7 (0x7), region = 142 }

// kernel: _lambda_.20
= control target key start
LH: loop header
LB: loop body
LE: loop exit
PB: predicated region body
PF: predicated region fallthrough
CT: control target
= control target key end

     0   :  { %s827_s21 = smov 0   ;;  %s987_s0 = inlined_call_operand.vmem [shape: f32[2,4,256], index: 0, kind: input, shape index: {}]   ;;  %s988_s1 = inlined_call_operand.vmem [shape: f32[2,4,256], index: 1, kind: input, shape index: {}]   ;;  %s989_s2 = inlined_call_operand.vmem [shape: f32[4,4,256], index: 2, kind: input, shape index: {}]   ;;  %s990_s3 = inlined_call_operand.vmem [shape: f32[4,4,256], index: 3, kind: input, shape index: {}]   ;;  %s991_s4 = inlined_call_operand.vmem [shape: f32[4,4,256], index: 4, kind: input, shape index: {}]   ;;  %s992_s5 = inlined_call_operand.vmem [shape: f32[2,4,256], index: 5, kind: output, shape index: {0}]   ;;  %s993_s6 = inlined_call_operand.vmem [shape: f32[2,4,256], index: 6, kind: output, shape index: {1}]  }
   0x1 LB: > { %s740_s22 = sadd.s32 4294967295, %s790_s21   ;;  %p744_p0 = scmp.ge.s32.totalorder %s790_s21, 1  ;;  %s790_s21 = sphi %s827_s21, %s17_s21  }
   0x2   : > { %p225_p1 = scmp.lt.s32.totalorder %s790_s21, 3 }
   0x4   : > { %p226_p2 = pnand %p744_p0, %p225_p1 }
   0x5   : > { %p265_p3 = scmp.lt.s32.totalorder (!%p226_p2), %s740_s22, 1  ;;  %v296_v0 = vlaneseq (!%p226_p2)  ;;  %v293_v1 = vld [vmem:[%s990_s3] sm:$0xff] (!%p226_p2)  ;;  %v846_v4 = vld [vmem:[%s990_s3 + $0x8] sm:$0xff] (!%p226_p2)  ;;  %v864_v6 = vld [vmem:[%s990_s3 + $0x10] sm:$0xff] (!%p226_p2) }
   0x6   : > { %229 = sbr.rel (%p226_p2) target bundleno = 52 (0x34), region = 40  ;;  %v294_v2 = vld [vmem:[%s991_s4] sm:$0xff] (!%p226_p2)  ;;  %v859_v5 = vld [vmem:[%s991_s4 + $0x8] sm:$0xff] (!%p226_p2)  ;;  %v339_v8 = vcombine.high (!%p226_p2), %v293_v1, %v293_v1  ;;  %v869_v10 = vld [vmem:[%s991_s4 + $0x10] sm:$0xff] (!%p226_p2)  ;;  %v425_v15 = vcombine.high (!%p226_p2), %v846_v4, %v846_v4  ;;  %v512_v19 = vcombine.high (!%p226_p2), %v864_v6, %v864_v6 }
   0x7   : > { %v297_v3 = vshrl.u32 (!%p226_p2), %v296_v0, 7  ;;  %v368_v9 = vcombine.high (!%p226_p2), %v294_v2, %v294_v2  ;;  %v453_v18 = vcombine.high (!%p226_p2), %v859_v5, %v859_v5  ;;  %v540_v22 = vcombine.high (!%p226_p2), %v869_v10, %v869_v10  ;;  %v292_v47 = vld [vmem:[%s989_s2] sm:$0xff] (!%p226_p2)  ;;  %v912_v56 = vld [vmem:[%s990_s3 + $0x18] sm:$0xff] (!%p226_p2)  ;;  %v753_v58 = vld [vmem:[%s989_s2 + $0x8] sm:$0xff] (!%p226_p2) }
   0x9   : > { %v298_v13 = vsub.s32 (!%p226_p2), 0, %v297_v3  ;;  %v302_v14 = vsub.s32 (!%p226_p2), 4, %v297_v3  ;;  %v385_v16 = vsub.s32 (!%p226_p2), 1, %v297_v3  ;;  %v389_v17 = vsub.s32 (!%p226_p2), 5, %v297_v3 }
   0xa   : > { %v877_v20 = vsub.s32 (!%p226_p2), 2, %v297_v3  ;;  %v879_v21 = vsub.s32 (!%p226_p2), 6, %v297_v3  ;;  %v887_v25 = vsub.s32 (!%p226_p2), 3, %v297_v3  ;;  %v889_v26 = vsub.s32 (!%p226_p2), 7, %v297_v3 }
   0xd   : > { %s995_s22 = smov (!%p265_p3, %s740_s22), 1 }
   0xe   : > { %s841_s27 = sshll.u32 %s995_s22, 3 }
   0xf   : > { %s269_s8 = scalar_lea.vmem %s987_s0, %s841_s27  ;;  %s274_s11 = scalar_lea.vmem %s988_s1, %s841_s27 }
  0x10   : > { %v285_v7 = vld [vmem:[%s269_s8] sm:$0xff]  ;;  %s279_s10 = scalar_lea.vmem %s992_s5, %s841_s27  ;;  %s284_s13 = scalar_lea.vmem %s993_s6, %s841_s27 }
  0x11   : > { %v286_v11 = vld [vmem:[%s274_s11] sm:$0xff]  ;;  %v287_v12 = vand.u32 2147483647, %v285_v7 }
  0x13   : > { %vm288_vm0 = vcmp.ge.f32.partialorder %v287_v12, 0.5 }
  0x14   : > { %v883_v23 = vsel %vm288_vm0, %v285_v7, 0.0  ;;  %v885_v24 = vsel %vm288_vm0, %v286_v11, 0.0 }
  0x15   : > { %v893_v27 = vadd.f32 %v885_v24, %v883_v23  ;;  %v323_v28 = vrot.slane %v885_v24, %v298_v13  ;;  %v327_v29 = vrot.slane %v885_v24, %v302_v14  ;;  %v352_v30 = vrot.slane %v883_v23, %v298_v13 }
  0x16   : > { %v356_v31 = vrot.slane %v883_v23, %v302_v14  ;;  %v409_v32 = vrot.slane %v885_v24, %v385_v16  ;;  %v413_v33 = vrot.slane %v885_v24, %v389_v17  ;;  %v437_v34 = vrot.slane %v883_v23, %v385_v16 }
  0x17   : > { %v299_v35 = vrot.slane %v893_v27, %v298_v13  ;;  %v303_v36 = vrot.slane %v893_v27, %v302_v14  ;;  %v333_v37 = vrot.slane %v323_v28, %v298_v13  ;;  %v337_v38 = vrot.slane %v327_v29, %v298_v13 }
  0x18   : > { %v362_v39 = vrot.slane %v352_v30, %v298_v13  ;;  %v366_v40 = vrot.slane %v356_v31, %v298_v13  ;;  %v386_v41 = vrot.slane %v893_v27, %v385_v16  ;;  %v390_v42 = vrot.slane %v893_v27, %v389_v17 }
  0x19   : > { %v309_v43 = vrot.slane %v299_v35, %v298_v13  ;;  %v313_v44 = vrot.slane %v303_v36, %v298_v13  ;;  %v341_v45 = vmul.f32 %v333_v37, %v293_v1  ;;  %v342_v46 = vmul.f32 %v339_v8, %v337_v38  ;;  %v761_v37 = vld [vmem:[%s991_s4 + $0x18] sm:$0xff] }
  0x1a   : > { %v370_v48 = vmul.f32 %v362_v39, %v294_v2  ;;  %v371_v49 = vmul.f32 %v368_v9, %v366_v40  ;;  %v396_v50 = vrot.slane %v386_v41, %v385_v16  ;;  %v400_v51 = vrot.slane %v390_v42, %v385_v16 }
  0x1b   : > { %v316_v52 = vcombine.low %v309_v43, %v313_v44  ;;  %v345_v53 = vcombine.low %v341_v45, %v342_v46  ;;  %v419_v54 = vrot.slane %v409_v32, %v385_v16  ;;  %v423_v55 = vrot.slane %v413_v33, %v385_v16 }
  0x1c   : > { %v374_v57 = vcombine.low %v370_v48, %v371_v49  ;;  %v403_v59 = vcombine.low %v396_v50, %v400_v51  ;;  %v441_v60 = vrot.slane %v883_v23, %v389_v17  ;;  %v447_v61 = vrot.slane %v437_v34, %v385_v16  ;;  %v756_v17 = vld [vmem:[%s989_s2 + $0x10] sm:$0xff] }
  0x1d   : > { %v318_v62 = vmul.f32 %v316_v52, %v292_v47  ;;  %v427_v63 = vmul.f32 %v846_v4, %v419_v54  ;;  %v428_v0 = vmul.f32 %v425_v15, %v423_v55  ;;  %v473_v1 = vrot.slane %v893_v27, %v877_v20 }
  0x1e   : > { %v451_v2 = vrot.slane %v441_v60, %v385_v16  ;;  %v455_v3 = vmul.f32 %v859_v5, %v447_v61  ;;  %v477_v7 = vrot.slane %v893_v27, %v879_v21  ;;  %v599_v8 = vcombine.high %v912_v56, %v912_v56 }
  0x1f   : > { %v347_v9 = vsub.f32 %v318_v62, %v345_v53  ;;  %v405_v11 = vmul.f32 %v753_v58, %v403_v59  ;;  %v431_v12 = vcombine.low %v427_v63, %v428_v0  ;;  %v483_v13 = vrot.slane %v473_v1, %v877_v20 }
  0x20   : > { %v456_v14 = vmul.f32 %v453_v18, %v451_v2  ;;  %v487_v4 = vrot.slane %v477_v7, %v877_v20  ;;  %v496_v15 = vrot.slane %v885_v24, %v877_v20  ;;  %v500_v5 = vrot.slane %v885_v24, %v879_v21 }
  0x21   : > { %v376_v16 = vadd.f32 %v374_v57, %v318_v62  ;;  %v524_v28 = vrot.slane %v883_v23, %v877_v20  ;;  %v528_v29 = vrot.slane %v883_v23, %v879_v21  ;;  %v560_v18 = vrot.slane %v893_v27, %v887_v25 }
  0x22   : > { %v459_v30 = vcombine.low %v455_v3, %v456_v14  ;;  %v490_v31 = vcombine.low %v483_v13, %v487_v4  ;;  %v506_v32 = vrot.slane %v496_v15, %v877_v20  ;;  %v510_v33 = vrot.slane %v500_v5, %v877_v20 }
  0x23   : > { %v433_v34 = vsub.f32 %v405_v11, %v431_v12  ;;  %v534_v35 = vrot.slane %v524_v28, %v877_v20  ;;  %v538_v36 = vrot.slane %v528_v29, %v877_v20  ;;  %v564_v21 = vrot.slane %v893_v27, %v889_v26 }
  0x24   : > { %v461_v38 = vadd.f32 %v459_v30, %v405_v11  ;;  %v492_v39 = vmul.f32 %v756_v17, %v490_v31  ;;  %v514_v40 = vmul.f32 %v864_v6, %v506_v32  ;;  %v515_v41 = vmul.f32 %v512_v19, %v510_v33  ;;  %v759_v19 = vld [vmem:[%s989_s2 + $0x18] sm:$0xff] }
  0x25   : > { %v542_v42 = vmul.f32 %v869_v10, %v534_v35  ;;  %v543_v20 = vmul.f32 %v540_v22, %v538_v36  ;;  %v570_v43 = vrot.slane %v560_v18, %v887_v25  ;;  %v574_v44 = vrot.slane %v564_v21, %v887_v25 }
  0x26   : > { %v518_v45 = vcombine.low %v514_v40, %v515_v41  ;;  %v583_v27 = vrot.slane %v885_v24, %v887_v25  ;;  %v587_v46 = vrot.slane %v885_v24, %v889_v26  ;;  %v627_v47 = vcombine.high %v761_v37, %v761_v37 }
  0x27   : > { %v546_v6 = vcombine.low %v542_v42, %v543_v20  ;;  %v577_v48 = vcombine.low %v570_v43, %v574_v44  ;;  %v611_v10 = vrot.slane %v883_v23, %v887_v25  ;;  %v615_v22 = vrot.slane %v883_v23, %v889_v26 }
  0x28   : > { %v462_v49 = vadd.f32 %v433_v34, %v347_v9  ;;  %v520_v50 = vsub.f32 %v492_v39, %v518_v45  ;;  %v593_v51 = vrot.slane %v583_v27, %v887_v25  ;;  %v597_v24 = vrot.slane %v587_v46, %v887_v25 }
  0x29   : > { %v463_v52 = vadd.f32 %v461_v38, %v376_v16  ;;  %v548_v53 = vadd.f32 %v546_v6, %v492_v39  ;;  %v621_v54 = vrot.slane %v611_v10, %v887_v25  ;;  %v625_v55 = vrot.slane %v615_v22, %v887_v25 }
  0x2a   : > { %v579_v57 = vmul.f32 %v759_v19, %v577_v48  ;;  %v601_v58 = vmul.f32 %v912_v56, %v593_v51  ;;  %v602_v59 = vmul.f32 %v599_v8, %v597_v24  ;;  %v549_v26 = vadd.f32 %v520_v50, %v462_v49 }
  0x2b   : > { %v629_v60 = vmul.f32 %v761_v37, %v621_v54  ;;  %v630_v23 = vmul.f32 %v627_v47, %v625_v55  ;;  %v550_v62 = vadd.f32 %v548_v53, %v463_v52 }
  0x2c   : > { %v605_v61 = vcombine.low %v601_v58, %v602_v59 }
  0x2d   : > { %v633_v63 = vcombine.low %v629_v60, %v630_v23 }
  0x2e   : > { %v607_v0 = vsub.f32 %v579_v57, %v605_v61 }
  0x2f   : > { %v635_v1 = vadd.f32 %v633_v63, %v579_v57 }
  0x30   : > { %v636_v25 = vadd.f32 %v607_v0, %v549_v26 }
  0x31   : > { %v637_v2 = vadd.f32 %v635_v1, %v550_v62 }
  0x32   : > { %638 = vst [vmem:[%s279_s10] sm:$0xff] %v636_v25 }
  0x33   : > { %639 = vst [vmem:[%s284_s13] sm:$0xff] %v637_v2 }
  0x34 PF: > { %s17_s21 = sadd.s32 1, %s790_s21  }
  0x35   : > { %p14_p4 = scmp.ge.s32.totalorder %s17_s21, 4  }
  0x37   :  { %16 = sbr.rel (!%p14_p4) target bundleno = 1 (0x1), region = 94 }

// kernel: reverse.7
= control target key start
LH: loop header
LB: loop body
LE: loop exit
PB: predicated region body
PF: predicated region fallthrough
CT: control target
= control target key end

     0   :  { %v2_v0 = vlaneseq  ;;  %s147_s0 = inlined_call_operand.vmem [shape: f32[2,4,127], index: 0, kind: input, shape index: {}]   ;;  %s148_s1 = inlined_call_operand.vmem [shape: f32[2,4,127], index: 1, kind: output, shape index: {}]  }
   0x2   :  { %v3_v1 = vsub.s32 126, %v2_v0 }
   0x4   :  { %4 = vset.pattern.permute.xlu0 %v3_v1 }
   0x5   :  { %v20_v2 = vld [vmem:[%s147_s0] sm:$0xff]  }
   0x6   :  { %21 = vst [vmem:[#allocation1] sm:$0xff] %v20_v2  }
   0xd   :  { %v54_v3 = vld [vmem:[#allocation1] sm:$0xf]  ;;  %v51_v4 = vld [vmem:[#allocation1 + $0x4] sm:$0xf] }
   0xe   :  { %55 = vst [vmem:[#allocation0] sm:$0xf] %v54_v3  ;;  %53 = vst [vmem:[#allocation0 + $0x8] sm:$0xf] %v51_v4 }
  0x15   :  { %v56_v5 = vld [vmem:[#allocation0] sm:$0xff]  ;;  %v62_v6 = vld [vmem:[#allocation0 + $0x8] sm:$0xff] }
  0x16   :  { %57 = vperm.xlu0 %4, %v56_v5  }
  0x1a   :  { %63 = vperm.xlu0 %4, %v62_v6  }
  0x95   :  { %v58_v7 = vpop.permute.xlu0 %57 }
  0x96   :  { %59 = vst [vmem:[#allocation2] sm:$0xff] %v58_v7 }
  0x99   :  { %v64_v8 = vpop.permute.xlu0 %63 }
  0x9a   :  { %65 = vst [vmem:[#allocation2 + $0x8] sm:$0xff] %v64_v8 }
  0x9d   :  { %v69_v9 = vld [vmem:[#allocation2] sm:$0xf] }
  0x9e   :  { %71 = vst [vmem:[#allocation3] sm:$0xf] %v69_v9 }
  0xa1   :  { %v73_v10 = vld [vmem:[#allocation2 + $0x8] sm:$0xf] }
  0xa2   :  { %76 = vst [vmem:[#allocation3 + $0x4] sm:$0xf] %v73_v10 }
  0xa5   :  { %v92_v11 = vld [vmem:[#allocation3] sm:$0xf] }
  0xa6   :  { %93 = vst [vmem:[%s148_s1] sm:$0xf] %v92_v11 }
  0xa9   :  { %v94_v12 = vld [vmem:[#allocation3 + $0x4] sm:$0xf] }
  0xaa   :  { %95 = vst [vmem:[%s148_s1 + $0x4] sm:$0xf] %v94_v12 }

// kernel: _lambda_.21
= control target key start
LH: loop header
LB: loop body
LE: loop exit
PB: predicated region body
PF: predicated region fallthrough
CT: control target
= control target key end

     0   :  { %vm22_vm0 = vcmask 1043456   ;;  %v126_v13 = vmov 0   ;;  %v127_v16 = vmov 839922192   ;;  %v40_v18 = vlaneseq  ;;  %s178_s0 = inlined_call_operand.vmem [shape: f32[2,4,256], index: 0, kind: input, shape index: {}]   ;;  %s179_s1 = inlined_call_operand.vmem [shape: f32[1,4,1], index: 1, kind: input, shape index: {}]   ;;  %s180_s2 = inlined_call_operand.vmem [shape: f32[1,4,1], index: 2, kind: input, shape index: {}]   ;;  %s181_s3 = inlined_call_operand.vmem [shape: f32[2,4,256], index: 3, kind: output, shape index: {}]  }
   0x1   :  { %v14_v0 = vld [vmem:[%s178_s0] sm:$0xff]  ;;  %v15_v1 = vld [vmem:[%s178_s0 + $0x8] sm:$0xff]  ;;  %120 = vset.pattern.permute.xlu1 %v126_v13  ;;  %121 = vset.pattern.permute.xlu0 %v126_v13  ;;  %v38_v17 = vunpack.c.l.s4 %v127_v16 }
   0x2   :  { %v18_v2 = vcombine.high %v14_v0, %v14_v0  ;;  %v19_v3 = vcombine.high %v15_v1, %v15_v1  ;;  %v23_v4 = vsel %vm22_vm0, %v14_v0, 0.0  ;;  %v24_v5 = vsel %vm22_vm0, %v15_v1, 0.0  ;;  %v80_v14 = vld [vmem:[%s179_s1] sm:$0xf] }
   0x3   :  { %v25_v6 = vadd.f32 %v24_v5, %v23_v4  ;;  %83 = vperm.xlu1 %120, %v80_v14   ;;  %v95_v15 = vld [vmem:[%s180_s2] sm:$0xf]  ;;  %v39_v19 = vunpack.c.0.s8 %v38_v17  ;;  %v41_v20 = vshrl.u32 %v40_v18, 7 }
   0x4   :  { %v26_v7 = vsel %vm22_vm0, %v18_v2, 0.0  ;;  %v27_v8 = vsel %vm22_vm0, %v19_v3, 0.0 }
   0x5   :  { %v28_v9 = vadd.f32 %v27_v8, %v26_v7  ;;  %v29_v10 = vsel %vm22_vm0, %v25_v6, 0.0  ;;  %v42_v21 = vsub.s32 %v39_v19, %v41_v20 }
   0x7   :  { %v30_v11 = vsel %vm22_vm0, %v28_v9, 0.0  ;;  %98 = vperm.xlu1 %120, %v95_v15  }
   0x8   :  { %v31_v12 = vadd.f32 %v30_v11, %v29_v10 }
   0xa   :  { %32 = vadd.xlane.f32.xlu0 %v31_v12 }
  0x82   :  { %v84_v43 = vpop.permute.xlu1 %83 }
  0x83   :  { %v91_v49 = vrot.slane %v84_v43, %v42_v21 }
  0x86   :  { %v99_v46 = vpop.permute.xlu1 %98 }
  0x87   :  { %v106_v52 = vrot.slane %v99_v46, %v42_v21 }
  0x97   :  { %v33_v22 = vpop.xlane.xlu0 %32 }
  0x98   :  { %v35_v23 = vmul.f32 0.001953125, %v33_v22 }
  0x9a   :  { %v43_v24 = vrot.slane %v35_v23, %v42_v21 }
  0x9c   :  { %v45_v25 = vsub.f32 %v14_v0, %v43_v24  ;;  %v46_v26 = vsub.f32 %v15_v1, %v43_v24 }
  0x9e   :  { %v47_v27 = vmul.f32 %v45_v25, %v45_v25  ;;  %v48_v28 = vmul.f32 %v46_v26, %v46_v26 }
  0xa0   :  { %v51_v29 = vcombine.high %v47_v27, %v47_v27  ;;  %v52_v30 = vcombine.high %v48_v28, %v48_v28  ;;  %v55_v31 = vsel %vm22_vm0, %v47_v27, 0.0  ;;  %v56_v32 = vsel %vm22_vm0, %v48_v28, 0.0 }
  0xa1   :  { %v57_v33 = vadd.f32 %v56_v32, %v55_v31 }
  0xa2   :  { %v58_v34 = vsel %vm22_vm0, %v51_v29, 0.0  ;;  %v59_v35 = vsel %vm22_vm0, %v52_v30, 0.0 }
  0xa3   :  { %v60_v36 = vadd.f32 %v59_v35, %v58_v34  ;;  %v61_v37 = vsel %vm22_vm0, %v57_v33, 0.0 }
  0xa5   :  { %v62_v38 = vsel %vm22_vm0, %v60_v36, 0.0 }
  0xa6   :  { %v63_v39 = vadd.f32 %v62_v38, %v61_v37 }
  0xa8   :  { %64 = vadd.xlane.f32.xlu0 %v63_v39 }
 0x135   :  { %v65_v40 = vpop.xlane.xlu0 %64 }
 0x136   :  { %v66_v41 = vmul.f32 0.001953125, %v65_v40 }
 0x138   :  { %v67_v42 = vadd.f32 1e-05, %v66_v41 }
 0x13a   :  { %124 = vrsqrt.f32 %v67_v42 }
 0x144   :  { %v125_v44 = vpop.eup %124 }
 0x145   :  { %v76_v45 = vrot.slane %v125_v44, %v42_v21 }
 0x147   :  { %v78_v47 = vmul.f32 %v76_v45, %v45_v25  ;;  %v79_v48 = vmul.f32 %v76_v45, %v46_v26 }
 0x149   :  { %v93_v50 = vmul.f32 %v91_v49, %v78_v47  ;;  %v94_v51 = vmul.f32 %v91_v49, %v79_v48 }
 0x14b   :  { %v108_v53 = vadd.f32 %v106_v52, %v93_v50  ;;  %v109_v54 = vadd.f32 %v106_v52, %v94_v51 }
 0x14d   :  { %v110_v55 = vmax.f32 %v108_v53, 0.0  ;;  %v111_v56 = vmax.f32 %v109_v54, 0.0 }
 0x14f   :  { %112 = vst [vmem:[%s181_s3] sm:$0xff] %v110_v55  ;;  %113 = vst [vmem:[%s181_s3 + $0x8] sm:$0xff] %v111_v56 }

// kernel: reverse.25
= control target key start
LH: loop header
LB: loop body
LE: loop exit
PB: predicated region body
PF: predicated region fallthrough
CT: control target
= control target key end

     0   :  { %v2_v0 = vlaneseq  ;;  %s454_s0 = inlined_call_operand.vmem [shape: f32[12,4,256], index: 0, kind: input, shape index: {}]   ;;  %s455_s1 = inlined_call_operand.vmem [shape: f32[12,4,256], index: 1, kind: output, shape index: {}]  }
   0x2   :  { %v408_v1 = vsub.s32 127, %v2_v0 }
   0x4   :  { %4 = vset.pattern.permute.xlu0 %v408_v1 }
   0x5   :  { %s411_s6 = smov 0   ;;  %s413_s7 = smov 0  }
   0x6   :  { %s415_s8 = smov 0  }
   0x7 LB: > { %s323_s9 = sadd.s32 4294967295, %s396_s8   ;;  %s22_s10 = sadd.s32 1, %s392_s7  ;;  %s396_s8 = sphi %s415_s8, %s10_s8   ;;  %s392_s7 = sphi %s413_s7, %s457_s7   ;;  %s388_s6 = sphi %s411_s6, %s456_s6  }
   0x8   : > { %p23_p0 = scmp.ge.s32.totalorder %s22_s10, 2  ;;  %p325_p1 = scmp.ge.s32.totalorder %s396_s8, 2 }
   0x9   : > { %s45_s11 = sand.u32 (!%p325_p1), 1, %s396_s8   ;;  %s48_s12 = ssub.s32 (!%p325_p1), 1, %s392_s7 }
   0xa   : > { %s459_s10 = smov (%p23_p0, %s22_s10), 0  ;;  %43 = sbr.rel (%p325_p1) target bundleno = 18 (0x12), region = 16 }
   0xb   : > { %s326_s13 = sshll.u32 (!%p325_p1), %s45_s11, 6  ;;  %s327_s14 = sshll.u32 (!%p325_p1), %s48_s12, 3 }
   0xc   : > { %s56_s17 = scalar_lea.vmem (!%p325_p1), %s454_s0, %s327_s14  ;;  %s47_s18 = scalar_lea.vmem (!%p325_p1), [#allocation0], %s326_s13 }
   0xd   : > { %v98_v2 = vld [vmem:[%s56_s17] sm:$0xff] (!%p325_p1)  ;;  %v100_v3 = vld [vmem:[%s56_s17 + $0x10] sm:$0xff] (!%p325_p1) }
   0xe   : > { %v102_v4 = vld [vmem:[%s56_s17 + $0x20] sm:$0xff] (!%p325_p1)  ;;  %99 = vst [vmem:[%s47_s18] sm:$0xff] (!%p325_p1), %v98_v2  ;;  %101 = vst [vmem:[%s47_s18 + $0x8] sm:$0xff] (!%p325_p1), %v100_v3  ;;  %v104_v5 = vld [vmem:[%s56_s17 + $0x30] sm:$0xff] (!%p325_p1) }
   0xf   : > { %103 = vst [vmem:[%s47_s18 + $0x10] sm:$0xff] (!%p325_p1), %v102_v4  ;;  %v106_v6 = vld [vmem:[%s56_s17 + $0x40] sm:$0xff] (!%p325_p1)  ;;  %v108_v7 = vld [vmem:[%s56_s17 + $0x50] sm:$0xff] (!%p325_p1)  ;;  %105 = vst [vmem:[%s47_s18 + $0x18] sm:$0xff] (!%p325_p1), %v104_v5 }
  0x10   : > { %107 = vst [vmem:[%s47_s18 + $0x20] sm:$0xff] (!%p325_p1), %v106_v6  ;;  %109 = vst [vmem:[%s47_s18 + $0x28] sm:$0xff] (!%p325_p1), %v108_v7  ;;  %v110_v8 = vld [vmem:[%s56_s17 + $0x60] sm:$0xff] (!%p325_p1)  ;;  %v112_v9 = vld [vmem:[%s56_s17 + $0x70] sm:$0xff] (!%p325_p1) }
  0x11   : > { %111 = vst [vmem:[%s47_s18 + $0x30] sm:$0xff] %v110_v8  ;;  %113 = vst [vmem:[%s47_s18 + $0x38] sm:$0xff] %v112_v9 }
  0x12 PF: > { %p328_p2 = scmp.ge.s32.totalorder %s396_s8, 1  ;;  %p118_p3 = scmp.lt.s32.totalorder %s396_s8, 3 }
  0x14   : > { %p119_p4 = pnand %p328_p2, %p118_p3 }
  0x15   : > { %373 = vset.pattern.permute.xlu1 (!%p119_p4), %v408_v1  ;;  %s125_s19 = sand.u32 (!%p119_p4), 1, %s323_s9   ;;  %s346_s22 = sshll.u32 (!%p119_p4), %s388_s6, 3 }
  0x16   : > { %122 = sbr.rel (%p119_p4) target bundleno = 166 (0xa6), region = 54  ;;  %s329_s20 = sshll.u32 (!%p119_p4), %s125_s19, 6 }
  0x17   : > { %s127_s21 = scalar_lea.vmem (!%p119_p4), [#allocation0], %s329_s20  ;;  %s198_s25 = scalar_lea.vmem (!%p119_p4), %s455_s1, %s346_s22 }
  0x18   : > { %v333_v10 = vld [vmem:[%s127_s21 + $0x10] sm:$0xff] (!%p119_p4)  ;;  %v141_v11 = vld [vmem:[%s127_s21] sm:$0xff] (!%p119_p4)  ;;  %v335_v12 = vld [vmem:[%s127_s21 + $0x18] sm:$0xff] (!%p119_p4) }
  0x19   : > { %154 = vperm.xlu1 (!%p119_p4), %373, %v333_v10   ;;  %142 = vperm.xlu0 (!%p119_p4), %4, %v141_v11   ;;  %v331_v13 = vld [vmem:[%s127_s21 + $0x8] sm:$0xff] (!%p119_p4)  ;;  %v337_v15 = vld [vmem:[%s127_s21 + $0x20] sm:$0xff] (!%p119_p4)  ;;  %v343_v16 = vld [vmem:[%s127_s21 + $0x38] sm:$0xff] (!%p119_p4) }
  0x1a   : > { %v339_v14 = vld [vmem:[%s127_s21 + $0x28] sm:$0xff] (!%p119_p4)  ;;  %v341_v17 = vld [vmem:[%s127_s21 + $0x30] sm:$0xff] (!%p119_p4) }
  0x1d   : > { %160 = vperm.xlu1 %373, %v335_v12   ;;  %148 = vperm.xlu0 %4, %v331_v13  }
  0x21   : > { %172 = vperm.xlu1 %373, %v339_v14   ;;  %166 = vperm.xlu0 %4, %v337_v15  }
  0x25   : > { %184 = vperm.xlu1 %373, %v343_v16   ;;  %178 = vperm.xlu0 %4, %v341_v17  }
  0x98   : > { %v155_v18 = vpop.permute.xlu1 %154  ;;  %v143_v19 = vpop.permute.xlu0 %142 }
  0x99   : > { %245 = vst [vmem:[%s198_s25 + $0x20] sm:$0xff] %v155_v18  ;;  %241 = vst [vmem:[%s198_s25] sm:$0xff] %v143_v19 }
  0x9c   : > { %v161_v20 = vpop.permute.xlu1 %160  ;;  %v149_v21 = vpop.permute.xlu0 %148 }
  0x9d   : > { %247 = vst [vmem:[%s198_s25 + $0x30] sm:$0xff] %v161_v20  ;;  %243 = vst [vmem:[%s198_s25 + $0x10] sm:$0xff] %v149_v21 }
  0xa0   : > { %v173_v22 = vpop.permute.xlu1 %172  ;;  %v167_v23 = vpop.permute.xlu0 %166 }
  0xa1   : > { %251 = vst [vmem:[%s198_s25 + $0x50] sm:$0xff] %v173_v22  ;;  %249 = vst [vmem:[%s198_s25 + $0x40] sm:$0xff] %v167_v23 }
  0xa4   : > { %v185_v24 = vpop.permute.xlu1 %184  ;;  %v179_v25 = vpop.permute.xlu0 %178 }
  0xa5   : > { %255 = vst [vmem:[%s198_s25 + $0x70] sm:$0xff] %v185_v24  ;;  %253 = vst [vmem:[%s198_s25 + $0x60] sm:$0xff] %v179_v25 }
  0xa6 PF: > { %s10_s8 = sadd.s32 1, %s396_s8   ;;  %s456_s6 = smov %s392_s7 }
  0xa7   : > { %p7_p5 = scmp.ge.s32.totalorder %s10_s8, 4   ;;  %s457_s7 = smov %s459_s10 }
  0xa9   :  { %9 = sbr.rel (!%p7_p5) target bundleno = 7 (0x7), region = 132 }

// kernel: _lambda_.11
= control target key start
LH: loop header
LB: loop body
LE: loop exit
PB: predicated region body
PF: predicated region fallthrough
CT: control target
= control target key end

     0   :  { %s886_s21 = smov 0   ;;  %s1259_s0 = inlined_call_operand.vmem [shape: f32[2,4,256], index: 0, kind: input, shape index: {}]   ;;  %s1260_s1 = inlined_call_operand.vmem [shape: f32[2,4,256], index: 1, kind: input, shape index: {}]   ;;  %s1261_s2 = inlined_call_operand.vmem [shape: f32[4,12,256], index: 2, kind: input, shape index: {}]   ;;  %s1262_s3 = inlined_call_operand.vmem [shape: f32[4,12,256], index: 3, kind: input, shape index: {}]   ;;  %s1263_s4 = inlined_call_operand.vmem [shape: f32[4,12,256], index: 4, kind: input, shape index: {}]   ;;  %s1264_s5 = inlined_call_operand.vmem [shape: f32[2,12,256], index: 5, kind: output, shape index: {0}]   ;;  %s1265_s6 = inlined_call_operand.vmem [shape: f32[2,12,256], index: 6, kind: output, shape index: {1}]  }
   0x1 LB: > { %s780_s22 = sadd.s32 4294967295, %s849_s21   ;;  %p784_p0 = scmp.ge.s32.totalorder %s849_s21, 1  ;;  %s849_s21 = sphi %s886_s21, %s17_s21  }
   0x2   : > { %p225_p1 = scmp.lt.s32.totalorder %s849_s21, 3 }
   0x4   : > { %p226_p2 = pnand %p784_p0, %p225_p1 }
   0x5   : > { %p265_p3 = scmp.lt.s32.totalorder (!%p226_p2), %s780_s22, 1  ;;  %v305_v0 = vlaneseq (!%p226_p2)  ;;  %v296_v19 = vld [vmem:[%s1262_s3] sm:$0xff] (!%p226_p2)  ;;  %v297_v47 = vld [vmem:[%s1262_s3 + $0x8] sm:$0xff] (!%p226_p2)  ;;  %v294_v63 = vld [vmem:[%s1261_s2 + $0x10] sm:$0xf] (!%p226_p2) }
   0x6   : > { %229 = sbr.rel (%p226_p2) target bundleno = 65 (0x41), region = 40  ;;  %v797_v20 = vld [vmem:[%s1262_s3 + $0x20] sm:$0xff] (!%p226_p2)  ;;  %v798_v52 = vld [vmem:[%s1262_s3 + $0x28] sm:$0xff] (!%p226_p2) }
   0x7   : > { %v306_v1 = vshrl.u32 (!%p226_p2), %v305_v0, 7  ;;  %v809_v29 = vld [vmem:[%s1262_s3 + $0x40] sm:$0xff] (!%p226_p2)  ;;  %v293_v55 = vld [vmem:[%s1261_s2 + $0x8] sm:$0xff] (!%p226_p2) }
   0x8   : > { %v821_v30 = vld [vmem:[%s1262_s3 + $0x60] sm:$0xff] (!%p226_p2)  ;;  %v794_v62 = vld [vmem:[%s1261_s2 + $0x28] sm:$0xff] (!%p226_p2) }
   0x9   : > { %v903_v5 = vsub.s32 (!%p226_p2), 0, %v306_v1  ;;  %v905_v6 = vsub.s32 (!%p226_p2), 1, %v306_v1  ;;  %v907_v7 = vsub.s32 (!%p226_p2), 2, %v306_v1  ;;  %v909_v8 = vsub.s32 (!%p226_p2), 3, %v306_v1  ;;  %v292_v31 = vld [vmem:[%s1261_s2] sm:$0xff] (!%p226_p2) }
   0xa   : > { %v911_v9 = vsub.s32 (!%p226_p2), 4, %v306_v1  ;;  %v913_v10 = vsub.s32 (!%p226_p2), 5, %v306_v1  ;;  %v915_v11 = vsub.s32 (!%p226_p2), 6, %v306_v1  ;;  %v921_v14 = vsub.s32 (!%p226_p2), 7, %v306_v1  ;;  %v793_v32 = vld [vmem:[%s1261_s2 + $0x20] sm:$0xff] (!%p226_p2) }
   0xb   : > { %v805_v41 = vld [vmem:[%s1261_s2 + $0x40] sm:$0xff] (!%p226_p2) }
   0xc   : > { %v817_v42 = vld [vmem:[%s1261_s2 + $0x60] sm:$0xff] (!%p226_p2) }
   0xd   : > { %s1267_s22 = smov (!%p265_p3, %s780_s22), 1 }
   0xe   : > { %s831_s23 = sshll.u32 %s1267_s22, 3  ;;  %s833_s12 = sshll.u32 %s1267_s22, 5 }
   0xf   : > { %s269_s26 = scalar_lea.vmem %s1259_s0, %s831_s23  ;;  %s274_s29 = scalar_lea.vmem %s1260_s1, %s831_s23 }
  0x10   : > { %v285_v2 = vld [vmem:[%s269_s26] sm:$0xff]  ;;  %s284_s24 = scalar_lea.vmem %s1265_s6, %s833_s12 }
  0x11   : > { %v286_v3 = vld [vmem:[%s274_s29] sm:$0xff]  ;;  %v287_v4 = vand.u32 2147483647, %v285_v2  ;;  %s1082_s29 = scalar_lea.vmem %s1264_s5, %s833_s12 }
  0x13   : > { %vm288_vm0 = vcmp.ge.f32.partialorder %v287_v4, 0.5  ;;  %v810_v4 = vld [vmem:[%s1262_s3 + $0x48] sm:$0xff] }
  0x14   : > { %v917_v12 = vsel %vm288_vm0, %v285_v2, 0.0  ;;  %v919_v13 = vsel %vm288_vm0, %v286_v3, 0.0 }
  0x15   : > { %v925_v15 = vadd.f32 %v919_v13, %v917_v12  ;;  %v331_v16 = vrot.slane %v919_v13, %v903_v5  ;;  %v421_v17 = vrot.slane %v919_v13, %v905_v6  ;;  %v518_v18 = vrot.slane %v919_v13, %v907_v7 }
  0x16   : > { %v615_v21 = vrot.slane %v919_v13, %v909_v8  ;;  %v335_v22 = vrot.slane %v919_v13, %v911_v9  ;;  %v425_v23 = vrot.slane %v919_v13, %v913_v10  ;;  %v522_v24 = vrot.slane %v919_v13, %v915_v11 }
  0x17   : > { %v308_v25 = vrot.slane %v925_v15, %v903_v5  ;;  %v950_v26 = vrot.slane %v331_v16, %v903_v5  ;;  %v399_v27 = vrot.slane %v925_v15, %v905_v6  ;;  %v955_v28 = vrot.slane %v421_v17, %v905_v6 }
  0x18   : > { %v496_v33 = vrot.slane %v925_v15, %v907_v7  ;;  %v972_v34 = vrot.slane %v518_v18, %v907_v7  ;;  %v593_v35 = vrot.slane %v925_v15, %v909_v8  ;;  %v977_v36 = vrot.slane %v615_v21, %v909_v8 }
  0x19   : > { %v318_v37 = vrot.slane %v308_v25, %v903_v5  ;;  %v346_v38 = vmul.f32 %v950_v26, %v296_v19  ;;  %v409_v39 = vrot.slane %v399_v27, %v905_v6  ;;  %v436_v40 = vmul.f32 %v797_v20, %v955_v28  ;;  %v298_v20 = vld [vmem:[%s1262_s3 + $0x10] sm:$0xf] }
  0x1a   : > { %v990_v43 = vrot.slane %v496_v33, %v907_v7  ;;  %v533_v44 = vmul.f32 %v809_v29, %v972_v34  ;;  %v994_v45 = vrot.slane %v593_v35, %v909_v8  ;;  %v630_v46 = vmul.f32 %v821_v30, %v977_v36  ;;  %v799_v29 = vld [vmem:[%s1262_s3 + $0x30] sm:$0xf] }
  0x1b   : > { %v1000_v48 = vmul.f32 %v318_v37, %v292_v31  ;;  %v1002_v49 = vmul.f32 %v793_v32, %v409_v39  ;;  %v312_v50 = vrot.slane %v925_v15, %v911_v9  ;;  %v1007_v51 = vrot.slane %v335_v22, %v903_v5  ;;  %v806_v22 = vld [vmem:[%s1261_s2 + $0x48] sm:$0xff] }
  0x1c   : > { %v1013_v53 = vmul.f32 %v805_v41, %v990_v43  ;;  %v1016_v54 = vmul.f32 %v817_v42, %v994_v45  ;;  %v403_v56 = vrot.slane %v925_v15, %v913_v10  ;;  %v1024_v57 = vrot.slane %v425_v23, %v905_v6  ;;  %v807_v41 = vld [vmem:[%s1261_s2 + $0x50] sm:$0xf] }
  0x1d   : > { %v350_v58 = vsub.f32 %v1000_v48, %v346_v38  ;;  %v440_v59 = vsub.f32 %v1002_v49, %v436_v40  ;;  %v322_v60 = vrot.slane %v312_v50, %v903_v5  ;;  %v347_v61 = vmul.f32 %v1007_v51, %v297_v47  ;;  %v811_v42 = vld [vmem:[%s1262_s3 + $0x50] sm:$0xf] }
  0x1e   : > { %v537_v0 = vsub.f32 %v1013_v53, %v533_v44  ;;  %v634_v1 = vsub.f32 %v1016_v54, %v630_v46  ;;  %v413_v2 = vrot.slane %v403_v56, %v905_v6  ;;  %v437_v3 = vmul.f32 %v798_v52, %v1024_v57  ;;  %v819_v52 = vld [vmem:[%s1261_s2 + $0x70] sm:$0xf] }
  0x1f   : > { %v470_v16 = vadd.f32 %v440_v59, %v350_v58  ;;  %v1044_v17 = vmul.f32 %v322_v60, %v293_v55  ;;  %v500_v18 = vrot.slane %v925_v15, %v915_v11  ;;  %v532_v19 = vrot.slane %v522_v24, %v907_v7  ;;  %v795_v24 = vld [vmem:[%s1261_s2 + $0x30] sm:$0xf]  ;;  %v295_v55 = vld [vmem:[%s1261_s2 + $0x18] sm:$0xf] }
  0x20   : > { %v1052_v21 = vmul.f32 %v794_v62, %v413_v2  ;;  %v597_v23 = vrot.slane %v925_v15, %v921_v14  ;;  %v619_v25 = vrot.slane %v919_v13, %v921_v14  ;;  %v1061_v27 = vmul.f32 %v318_v37, %v294_v63  ;;  %v818_v13 = vld [vmem:[%s1261_s2 + $0x68] sm:$0xff] }
  0x21   : > { %v567_v30 = vadd.f32 %v537_v0, %v470_v16  ;;  %v351_v31 = vsub.f32 %v1044_v17, %v347_v61  ;;  %v510_v32 = vrot.slane %v500_v18, %v907_v7  ;;  %v534_v33 = vmul.f32 %v810_v4, %v532_v19  ;;  %v822_v15 = vld [vmem:[%s1262_s3 + $0x68] sm:$0xff]  ;;  %v808_v4 = vld [vmem:[%s1261_s2 + $0x58] sm:$0xf] }
  0x22   : > { %v441_v35 = vsub.f32 %v1052_v21, %v437_v3  ;;  %v607_v37 = vrot.slane %v597_v23, %v909_v8  ;;  %v629_v38 = vrot.slane %v619_v25, %v909_v8  ;;  %v348_v40 = vmul.f32 %v950_v26, %v298_v20  ;;  %v823_v26 = vld [vmem:[%s1262_s3 + $0x70] sm:$0xf]  ;;  %v800_v3 = vld [vmem:[%s1262_s3 + $0x38] sm:$0xf] }
  0x23   : > { %v664_v44 = vadd.f32 %v634_v1, %v567_v30  ;;  %v1094_v46 = vmul.f32 %v806_v22, %v510_v32  ;;  %v1096_v47 = vmul.f32 %v795_v24, %v409_v39  ;;  %v438_v50 = vmul.f32 %v799_v29, %v955_v28  ;;  %v299_v28 = vld [vmem:[%s1262_s3 + $0x18] sm:$0xf] }
  0x24   : > { %v471_v56 = vadd.f32 %v441_v35, %v351_v31  ;;  %v1108_v58 = vmul.f32 %v818_v13, %v607_v37  ;;  %v631_v59 = vmul.f32 %v822_v15, %v629_v38  ;;  %v352_v39 = vsub.f32 %v1061_v27, %v348_v40  ;;  %v796_v1 = vld [vmem:[%s1261_s2 + $0x38] sm:$0xf] }
  0x25   : > { %672 = vst [vmem:[%s1082_s29] sm:$0xff] %v664_v44  ;;  %v538_v61 = vsub.f32 %v1094_v46, %v534_v33  ;;  %v442_v62 = vsub.f32 %v1096_v47, %v438_v50  ;;  %v1118_v63 = vmul.f32 %v807_v41, %v990_v43  ;;  %v535_v0 = vmul.f32 %v811_v42, %v972_v34  ;;  %v812_v20 = vld [vmem:[%s1262_s3 + $0x58] sm:$0xf] }
  0x26   : > { %v635_v16 = vsub.f32 %v1108_v58, %v631_v59  ;;  %v1132_v18 = vmul.f32 %v819_v52, %v994_v45  ;;  %v632_v43 = vmul.f32 %v823_v26, %v977_v36  ;;  %v1135_v34 = vmul.f32 %v322_v60, %v295_v55  ;;  %v820_v45 = vld [vmem:[%s1261_s2 + $0x78] sm:$0xf]  ;;  %v801_v52 = vld [vmem:[%s1263_s4 + $0x20] sm:$0xff] }
  0x27   : > { %v568_v22 = vadd.f32 %v538_v61, %v471_v56  ;;  %v472_v23 = vadd.f32 %v442_v62, %v352_v39  ;;  %v539_v25 = vsub.f32 %v1118_v63, %v535_v0  ;;  %v349_v24 = vmul.f32 %v1007_v51, %v299_v28  ;;  %v824_v36 = vld [vmem:[%s1262_s3 + $0x78] sm:$0xf]  ;;  %v813_v26 = vld [vmem:[%s1263_s4 + $0x40] sm:$0xff] }
  0x28   : > { %v636_v60 = vsub.f32 %v1132_v18, %v632_v43  ;;  %v1149_v29 = vmul.f32 %v796_v1, %v413_v2  ;;  %v439_v30 = vmul.f32 %v800_v3, %v1024_v57  ;;  %v1152_v31 = vmul.f32 %v808_v4, %v510_v32  ;;  %v300_v32 = vld [vmem:[%s1263_s4] sm:$0xff]  ;;  %v301_v3 = vld [vmem:[%s1263_s4 + $0x8] sm:$0xff] }
  0x29   : > { %v665_v33 = vadd.f32 %v635_v16, %v568_v22  ;;  %v569_v13 = vadd.f32 %v539_v25, %v472_v23  ;;  %v353_v51 = vsub.f32 %v1135_v34, %v349_v24  ;;  %v536_v15 = vmul.f32 %v812_v20, %v532_v19  ;;  %v825_v39 = vld [vmem:[%s1263_s4 + $0x60] sm:$0xff]  ;;  %v802_v4 = vld [vmem:[%s1263_s4 + $0x28] sm:$0xff]  ;;  %v302_v23 = vld [vmem:[%s1263_s4 + $0x10] sm:$0xf] }
  0x2a   : > { %v443_v35 = vsub.f32 %v1149_v29, %v439_v30  ;;  %v1156_v40 = vmul.f32 %v820_v45, %v607_v37  ;;  %v633_v41 = vmul.f32 %v824_v36, %v629_v38  ;;  %v358_v42 = vrot.slane %v917_v12, %v903_v5  ;;  %v814_v22 = vld [vmem:[%s1263_s4 + $0x48] sm:$0xff] }
  0x2b   : > { %673 = vst [vmem:[%s1082_s29 + $0x8] sm:$0xff] %v665_v33  ;;  %v666_v2 = vadd.f32 %v636_v60, %v569_v13  ;;  %v540_v57 = vsub.f32 %v1152_v31, %v536_v15  ;;  %v447_v19 = vrot.slane %v917_v12, %v905_v6  ;;  %v544_v44 = vrot.slane %v917_v12, %v907_v7  ;;  %v815_v33 = vld [vmem:[%s1263_s4 + $0x50] sm:$0xf] }
  0x2c   : > { %v473_v37 = vadd.f32 %v443_v35, %v353_v51  ;;  %v637_v38 = vsub.f32 %v1156_v40, %v633_v41  ;;  %v368_v50 = vrot.slane %v358_v42, %v903_v5  ;;  %v641_v55 = vrot.slane %v917_v12, %v909_v8  ;;  %v826_v41 = vld [vmem:[%s1263_s4 + $0x68] sm:$0xff] }
  0x2d   : > { %674 = vst [vmem:[%s1082_s29 + $0x10] sm:$0xf] %v666_v2  ;;  %v457_v56 = vrot.slane %v447_v19, %v905_v6  ;;  %v554_v59 = vrot.slane %v544_v44, %v907_v7  ;;  %v362_v28 = vrot.slane %v917_v12, %v911_v9  ;;  %v451_v61 = vrot.slane %v917_v12, %v913_v10 }
  0x2e   : > { %v570_v62 = vadd.f32 %v540_v57, %v473_v37  ;;  %v373_v0 = vmul.f32 %v368_v50, %v300_v32  ;;  %v651_v1 = vrot.slane %v641_v55, %v909_v8  ;;  %v548_v16 = vrot.slane %v917_v12, %v915_v11  ;;  %v816_v37 = vld [vmem:[%s1263_s4 + $0x58] sm:$0xf] }
  0x2f   : > { %v462_v43 = vmul.f32 %v801_v52, %v457_v56  ;;  %v559_v9 = vmul.f32 %v813_v26, %v554_v59  ;;  %v372_v10 = vrot.slane %v362_v28, %v903_v5  ;;  %v461_v20 = vrot.slane %v451_v61, %v905_v6  ;;  %v803_v5 = vld [vmem:[%s1263_s4 + $0x30] sm:$0xf] }
  0x30   : > { %v667_v25 = vadd.f32 %v637_v38, %v570_v62  ;;  %v377_v24 = vadd.f32 %v373_v0, %v1000_v48  ;;  %v656_v45 = vmul.f32 %v825_v39, %v651_v1  ;;  %v558_v11 = vrot.slane %v548_v16, %v907_v7 }
  0x31   : > { %v466_v6 = vadd.f32 %v462_v43, %v1002_v49  ;;  %v563_v36 = vadd.f32 %v559_v9, %v1013_v53  ;;  %v374_v60 = vmul.f32 %v372_v10, %v301_v3  ;;  %v463_v30 = vmul.f32 %v802_v4, %v461_v20  ;;  %v827_v49 = vld [vmem:[%s1263_s4 + $0x70] sm:$0xf] }
  0x32   : > { %675 = vst [vmem:[%s1082_s29 + $0x18] sm:$0xf] %v667_v25  ;;  %v660_v48 = vadd.f32 %v656_v45, %v1016_v54  ;;  %v560_v13 = vmul.f32 %v814_v22, %v558_v11  ;;  %v645_v7 = vrot.slane %v917_v12, %v921_v14  ;;  %v375_v51 = vmul.f32 %v368_v50, %v302_v23  ;;  %v303_v12 = vld [vmem:[%s1263_s4 + $0x18] sm:$0xf] }
  0x33   : > { %v474_v15 = vadd.f32 %v466_v6, %v377_v24  ;;  %v378_v53 = vadd.f32 %v374_v60, %v1044_v17  ;;  %v467_v35 = vadd.f32 %v463_v30, %v1052_v21  ;;  %v464_v54 = vmul.f32 %v803_v5, %v457_v56  ;;  %v804_v14 = vld [vmem:[%s1263_s4 + $0x38] sm:$0xf] }
  0x34   : > { %v564_v42 = vadd.f32 %v560_v13, %v1094_v46  ;;  %v655_v2 = vrot.slane %v645_v7, %v909_v8  ;;  %v379_v17 = vadd.f32 %v375_v51, %v1061_v27  ;;  %v561_v21 = vmul.f32 %v815_v33, %v554_v59  ;;  %v828_v50 = vld [vmem:[%s1263_s4 + $0x78] sm:$0xf] }
  0x35   : > { %v571_v57 = vadd.f32 %v563_v36, %v474_v15  ;;  %v475_v32 = vadd.f32 %v467_v35, %v378_v53  ;;  %v468_v19 = vadd.f32 %v464_v54, %v1096_v47  ;;  %v658_v44 = vmul.f32 %v827_v49, %v651_v1 }
  0x36   : > { %v657_v46 = vmul.f32 %v826_v41, %v655_v2  ;;  %v565_v8 = vadd.f32 %v561_v21, %v1118_v63  ;;  %v376_v38 = vmul.f32 %v372_v10, %v303_v12  ;;  %v465_v27 = vmul.f32 %v804_v14, %v461_v20 }
  0x37   : > { %v668_v47 = vadd.f32 %v660_v48, %v571_v57  ;;  %v572_v52 = vadd.f32 %v564_v42, %v475_v32  ;;  %v476_v26 = vadd.f32 %v468_v19, %v379_v17  ;;  %v662_v55 = vadd.f32 %v658_v44, %v1132_v18 }
  0x38   : > { %v661_v56 = vadd.f32 %v657_v46, %v1108_v58  ;;  %v380_v59 = vadd.f32 %v376_v38, %v1135_v34  ;;  %v469_v39 = vadd.f32 %v465_v27, %v1149_v29  ;;  %v562_v28 = vmul.f32 %v816_v37, %v558_v11 }
  0x39   : > { %676 = vst [vmem:[%s284_s24] sm:$0xff] %v668_v47  ;;  %v573_v63 = vadd.f32 %v565_v8, %v476_v26  ;;  %v659_v61 = vmul.f32 %v828_v50, %v655_v2 }
  0x3a   : > { %v669_v62 = vadd.f32 %v661_v56, %v572_v52  ;;  %v477_v0 = vadd.f32 %v469_v39, %v380_v59  ;;  %v566_v1 = vadd.f32 %v562_v28, %v1152_v31 }
  0x3b   : > { %v670_v3 = vadd.f32 %v662_v55, %v573_v63  ;;  %v663_v4 = vadd.f32 %v659_v61, %v1156_v40 }
  0x3c   : > { %677 = vst [vmem:[%s284_s24 + $0x8] sm:$0xff] %v669_v62  ;;  %v574_v16 = vadd.f32 %v566_v1, %v477_v0 }
  0x3d   : > { %678 = vst [vmem:[%s284_s24 + $0x10] sm:$0xf] %v670_v3 }
  0x3e   : > { %v671_v18 = vadd.f32 %v663_v4, %v574_v16 }
  0x40   : > { %679 = vst [vmem:[%s284_s24 + $0x18] sm:$0xf] %v671_v18 }
  0x41 PF: > { %s17_s21 = sadd.s32 1, %s849_s21  }
  0x42   : > { %p14_p4 = scmp.ge.s32.totalorder %s17_s21, 4  }
  0x44   :  { %16 = sbr.rel (!%p14_p4) target bundleno = 1 (0x1), region = 94 }

// kernel: reverse.1
= control target key start
LH: loop header
LB: loop body
LE: loop exit
PB: predicated region body
PF: predicated region fallthrough
CT: control target
= control target key end

     0   :  { %v2_v0 = vlaneseq  ;;  %s160_s0 = inlined_call_operand.vmem [shape: f32[2,12,127], index: 0, kind: input, shape index: {}]   ;;  %s161_s1 = inlined_call_operand.vmem [shape: f32[2,12,127], index: 1, kind: output, shape index: {}]  }
   0x1   :  { %v42_v2 = vld [vmem:[%s160_s0 + $0x10] sm:$0xff]  ;;  %v38_v3 = vld [vmem:[%s160_s0] sm:$0xff]  ;;  %v44_v4 = vld [vmem:[%s160_s0 + $0x18] sm:$0xff] }
   0x2   :  { %v3_v1 = vsub.s32 126, %v2_v0  ;;  %v40_v5 = vld [vmem:[%s160_s0 + $0x8] sm:$0xff] }
   0x4   :  { %4 = vset.pattern.permute.xlu0 %v3_v1  ;;  %125 = vset.pattern.permute.xlu1 %v3_v1 }
   0x5   :  { %62 = vperm.xlu1 %125, %v42_v2   ;;  %50 = vperm.xlu0 %4, %v38_v3  }
   0x9   :  { %68 = vperm.xlu1 %125, %v44_v4   ;;  %56 = vperm.xlu0 %4, %v40_v5  }
  0x84   :  { %v63_v6 = vpop.permute.xlu1 %62  ;;  %v51_v7 = vpop.permute.xlu0 %50 }
  0x85   :  { %109 = vst [vmem:[%s161_s1 + $0x10] sm:$0xff] %v63_v6  ;;  %105 = vst [vmem:[%s161_s1] sm:$0xff] %v51_v7 }
  0x88   :  { %v69_v8 = vpop.permute.xlu1 %68  ;;  %v57_v9 = vpop.permute.xlu0 %56 }
  0x89   :  { %111 = vst [vmem:[%s161_s1 + $0x18] sm:$0xff] %v69_v8  ;;  %107 = vst [vmem:[%s161_s1 + $0x8] sm:$0xff] %v57_v9 }

// kernel: _lambda_.12
= control target key start
LH: loop header
LB: loop body
LE: loop exit
PB: predicated region body
PF: predicated region fallthrough
CT: control target
= control target key end

     0   :  { %vm24_vm0 = vcmask 1043456   ;;  %v155_v3 = vmov 0   ;;  %s248_s0 = inlined_call_operand.vmem [shape: f32[2,12,256], index: 0, kind: input, shape index: {}]   ;;  %s249_s1 = inlined_call_operand.vmem [shape: f32[1,12,1], index: 1, kind: input, shape index: {}]   ;;  %s250_s2 = inlined_call_operand.vmem [shape: f32[1,12,1], index: 2, kind: input, shape index: {}]   ;;  %s251_s3 = inlined_call_operand.vmem [shape: f32[2,12,256], index: 3, kind: output, shape index: {}]  }
   0x1   :  { %v16_v0 = vld [vmem:[%s248_s0 + $0x10] sm:$0xf]  ;;  %v17_v1 = vld [vmem:[%s248_s0 + $0x18] sm:$0xf]  ;;  %150 = vset.pattern.permute.xlu1 %v155_v3  ;;  %149 = vset.pattern.permute.xlu0 %v155_v3  ;;  %v14_v8 = vld [vmem:[%s248_s0] sm:$0xff] }
   0x2   :  { %v20_v2 = vld [vmem:[%s248_s0 + $0x30] sm:$0xf]  ;;  %v21_v4 = vld [vmem:[%s248_s0 + $0x38] sm:$0xf]  ;;  %v25_v5 = vsel %vm24_vm0, %v16_v0, 0.0  ;;  %v28_v7 = vsel %vm24_vm0, %v17_v1, 0.0 }
   0x3   :  { %v26_v6 = vsel %vm24_vm0, %v20_v2, 0.0  ;;  %v29_v10 = vsel %vm24_vm0, %v21_v4, 0.0  ;;  %v15_v11 = vld [vmem:[%s248_s0 + $0x8] sm:$0xff]  ;;  %v18_v12 = vld [vmem:[%s248_s0 + $0x20] sm:$0xff] }
   0x4   :  { %v27_v9 = vadd.f32 %v26_v6, %v25_v5  ;;  %v19_v13 = vld [vmem:[%s248_s0 + $0x28] sm:$0xff]  ;;  %v30_v14 = vadd.f32 %v29_v10, %v28_v7  ;;  %v22_v17 = vadd.f32 %v18_v12, %v14_v8  ;;  %v108_v20 = vld [vmem:[%s250_s2] sm:$0xff] }
   0x5   :  { %v89_v15 = vld [vmem:[%s249_s1 + $0x8] sm:$0xf]  ;;  %v23_v18 = vadd.f32 %v19_v13, %v15_v11  ;;  %v88_v23 = vld [vmem:[%s249_s1] sm:$0xff] }
   0x6   :  { %v34_v16 = vsel %vm24_vm0, %v27_v9, 0.0  ;;  %97 = vperm.xlu1 %150, %v89_v15   ;;  %v35_v19 = vsel %vm24_vm0, %v30_v14, 0.0  ;;  %v109_v56 = vld [vmem:[%s250_s2 + $0x8] sm:$0xf] }
   0x7   :  { %v36_v21 = vadd.f32 %v35_v19, %v34_v16  ;;  %v31_v22 = vadd.f32 %v23_v18, %v22_v17 }
   0x9   :  { %37 = vadd.xlane.f32.xlu0 %v36_v21 }
   0xa   :  { %112 = vperm.xlu1 %150, %v108_v20  }
   0xd   :  { %32 = vadd.xlane.f32.xlu0 %v31_v22 }
  0x23   :  { %92 = vperm.xlu0 %149, %v88_v23  }
  0x85   :  { %v98_v57 = vpop.permute.xlu1 %97 }
  0x89   :  { %v113_v58 = vpop.permute.xlu1 %112 }
  0x96   :  { %v38_v24 = vpop.xlane.xlu0 %37 }
  0x97   :  { %v41_v25 = vmul.f32 0.001953125, %v38_v24 }
  0x99   :  { %v44_v26 = vsub.f32 %v16_v0, %v41_v25  ;;  %v45_v27 = vsub.f32 %v17_v1, %v41_v25  ;;  %v48_v28 = vsub.f32 %v20_v2, %v41_v25  ;;  %v49_v29 = vsub.f32 %v21_v4, %v41_v25 }
  0x9a   :  { %v33_v30 = vpop.xlane.xlu0 %32 }
  0x9b   :  { %v40_v31 = vmul.f32 0.001953125, %v33_v30  ;;  %v52_v32 = vmul.f32 %v44_v26, %v44_v26  ;;  %v53_v33 = vmul.f32 %v45_v27, %v45_v27  ;;  %v56_v34 = vmul.f32 %v48_v28, %v48_v28 }
  0x9c   :  { %v57_v35 = vmul.f32 %v49_v29, %v49_v29 }
  0x9d   :  { %v42_v36 = vsub.f32 %v14_v8, %v40_v31  ;;  %v43_v37 = vsub.f32 %v15_v11, %v40_v31  ;;  %v46_v38 = vsub.f32 %v18_v12, %v40_v31  ;;  %v47_v39 = vsub.f32 %v19_v13, %v40_v31 }
  0x9e   :  { %v60_v40 = vsel %vm24_vm0, %v52_v32, 0.0  ;;  %v61_v41 = vsel %vm24_vm0, %v56_v34, 0.0  ;;  %v63_v42 = vsel %vm24_vm0, %v53_v33, 0.0  ;;  %v64_v43 = vsel %vm24_vm0, %v57_v35, 0.0 }
  0x9f   :  { %v50_v44 = vmul.f32 %v42_v36, %v42_v36  ;;  %v51_v45 = vmul.f32 %v43_v37, %v43_v37  ;;  %v54_v46 = vmul.f32 %v46_v38, %v46_v38  ;;  %v55_v47 = vmul.f32 %v47_v39, %v47_v39 }
  0xa0   :  { %v62_v48 = vadd.f32 %v61_v41, %v60_v40  ;;  %v65_v49 = vadd.f32 %v64_v43, %v63_v42 }
  0xa1   :  { %v58_v50 = vadd.f32 %v54_v46, %v50_v44  ;;  %v59_v51 = vadd.f32 %v55_v47, %v51_v45 }
  0xa2   :  { %v69_v53 = vsel %vm24_vm0, %v62_v48, 0.0  ;;  %v70_v54 = vsel %vm24_vm0, %v65_v49, 0.0  ;;  %v93_v2 = vpop.permute.xlu0 %92 }
  0xa3   :  { %v66_v52 = vadd.f32 %v59_v51, %v58_v50  ;;  %v71_v55 = vadd.f32 %v70_v54, %v69_v53 }
  0xa5   :  { %67 = vadd.xlane.f32.xlu1 %v66_v52 }
  0xa9   :  { %72 = vadd.xlane.f32.xlu1 %v71_v55 }
  0xba   :  { %117 = vperm.xlu1 %150, %v109_v56  }
 0x132   :  { %v68_v59 = vpop.xlane.xlu1 %67 }
 0x133   :  { %v74_v60 = vmul.f32 0.001953125, %v68_v59 }
 0x135   :  { %v76_v61 = vadd.f32 1e-05, %v74_v60 }
 0x136   :  { %v73_v62 = vpop.xlane.xlu1 %72 }
 0x137   :  { %151 = vrsqrt.f32 %v76_v61  ;;  %v75_v63 = vmul.f32 0.001953125, %v73_v62 }
 0x139   :  { %v77_v0 = vadd.f32 1e-05, %v75_v63 }
 0x13a   :  { %v118_v24 = vpop.permute.xlu1 %117 }
 0x13b   :  { %153 = vrsqrt.f32 %v77_v0 }
 0x141   :  { %v152_v1 = vpop.eup %151 }
 0x142   :  { %v80_v3 = vmul.f32 %v152_v1, %v42_v36  ;;  %v81_v4 = vmul.f32 %v152_v1, %v43_v37  ;;  %v84_v5 = vmul.f32 %v152_v1, %v46_v38  ;;  %v85_v6 = vmul.f32 %v152_v1, %v47_v39 }
 0x144   :  { %v100_v7 = vmul.f32 %v93_v2, %v80_v3  ;;  %v101_v8 = vmul.f32 %v93_v2, %v81_v4  ;;  %v104_v9 = vmul.f32 %v93_v2, %v84_v5  ;;  %v105_v10 = vmul.f32 %v93_v2, %v85_v6 }
 0x145   :  { %v154_v11 = vpop.eup %153 }
 0x146   :  { %v82_v12 = vmul.f32 %v154_v11, %v44_v26  ;;  %v83_v13 = vmul.f32 %v154_v11, %v45_v27  ;;  %v86_v14 = vmul.f32 %v154_v11, %v48_v28  ;;  %v87_v15 = vmul.f32 %v154_v11, %v49_v29 }
 0x147   :  { %v120_v16 = vadd.f32 %v113_v58, %v100_v7  ;;  %v121_v17 = vadd.f32 %v113_v58, %v101_v8  ;;  %v124_v18 = vadd.f32 %v113_v58, %v104_v9  ;;  %v125_v19 = vadd.f32 %v113_v58, %v105_v10 }
 0x148   :  { %v102_v20 = vmul.f32 %v98_v57, %v82_v12  ;;  %v103_v21 = vmul.f32 %v98_v57, %v83_v13  ;;  %v106_v22 = vmul.f32 %v98_v57, %v86_v14  ;;  %v107_v23 = vmul.f32 %v98_v57, %v87_v15 }
 0x149   :  { %v128_v25 = vmax.f32 %v120_v16, 0.0  ;;  %v129_v30 = vmax.f32 %v121_v17, 0.0  ;;  %v132_v31 = vmax.f32 %v124_v18, 0.0  ;;  %v133_v32 = vmax.f32 %v125_v19, 0.0 }
 0x14a   :  { %v122_v33 = vadd.f32 %v118_v24, %v102_v20  ;;  %v123_v34 = vadd.f32 %v118_v24, %v103_v21  ;;  %v126_v35 = vadd.f32 %v118_v24, %v106_v22  ;;  %v127_v26 = vadd.f32 %v118_v24, %v107_v23 }
 0x14b   :  { %136 = vst [vmem:[%s251_s3] sm:$0xff] %v128_v25  ;;  %137 = vst [vmem:[%s251_s3 + $0x8] sm:$0xff] %v129_v30 }
 0x14c   :  { %140 = vst [vmem:[%s251_s3 + $0x20] sm:$0xff] %v132_v31  ;;  %141 = vst [vmem:[%s251_s3 + $0x28] sm:$0xff] %v133_v32  ;;  %v130_v27 = vmax.f32 %v122_v33, 0.0  ;;  %v131_v28 = vmax.f32 %v123_v34, 0.0  ;;  %v134_v29 = vmax.f32 %v126_v35, 0.0  ;;  %v135_v36 = vmax.f32 %v127_v26, 0.0 }
 0x14e   :  { %138 = vst [vmem:[%s251_s3 + $0x10] sm:$0xf] %v130_v27  ;;  %139 = vst [vmem:[%s251_s3 + $0x18] sm:$0xf] %v131_v28 }
 0x14f   :  { %142 = vst [vmem:[%s251_s3 + $0x30] sm:$0xf] %v134_v29  ;;  %143 = vst [vmem:[%s251_s3 + $0x38] sm:$0xf] %v135_v36 }

// kernel: reverse.29
= control target key start
LH: loop header
LB: loop body
LE: loop exit
PB: predicated region body
PF: predicated region fallthrough
CT: control target
= control target key end

     0   :  { %v2_v0 = vlaneseq  ;;  %s440_s0 = inlined_call_operand.vmem [shape: f32[4,4,384], index: 0, kind: input, shape index: {}]   ;;  %s441_s1 = inlined_call_operand.vmem [shape: f32[4,4,384], index: 1, kind: output, shape index: {}]  }
   0x2   :  { %v393_v1 = vsub.s32 127, %v2_v0 }
   0x4   :  { %4 = vset.pattern.permute.xlu0 %v393_v1 }
   0x5   :  { %s396_s6 = smov 0   ;;  %s398_s7 = smov 0  }
   0x6   :  { %s400_s8 = smov 0  }
   0x7 LB: > { %s316_s9 = sadd.s32 4294967295, %s381_s8   ;;  %s22_s10 = sadd.s32 1, %s377_s7  ;;  %s381_s8 = sphi %s400_s8, %s10_s8   ;;  %s377_s7 = sphi %s398_s7, %s443_s7   ;;  %s373_s6 = sphi %s396_s6, %s442_s6  }
   0x8   : > { %p23_p0 = scmp.ge.s32.totalorder %s22_s10, 3  ;;  %p318_p1 = scmp.ge.s32.totalorder %s381_s8, 3 }
   0x9   : > { %s45_s11 = sand.u32 (!%p318_p1), 1, %s381_s8   ;;  %s48_s12 = ssub.s32 (!%p318_p1), 2, %s377_s7 }
   0xa   : > { %s445_s10 = smov (%p23_p0, %s22_s10), 0  ;;  %43 = sbr.rel (%p318_p1) target bundleno = 17 (0x11), region = 16 }
   0xb   : > { %s319_s13 = sshll.u32 (!%p318_p1), %s45_s11, 4  ;;  %s320_s14 = sshll.u32 (!%p318_p1), %s48_s12, 2 }
   0xc   : > { %s55_s17 = scalar_lea.vmem (!%p318_p1), %s440_s0, %s320_s14  ;;  %s47_s18 = scalar_lea.vmem (!%p318_p1), [#allocation1], %s319_s13 }
   0xd   : > { %v71_v2 = vld [vmem:[%s55_s17] sm:$0xf] (!%p318_p1)  ;;  %v73_v3 = vld [vmem:[%s55_s17 + $0xc] sm:$0xf] (!%p318_p1)  ;;  %v75_v4 = vld [vmem:[%s55_s17 + $0x18] sm:$0xf] (!%p318_p1) }
   0xe   : > { %72 = vst [vmem:[%s47_s18] sm:$0xf] (!%p318_p1), %v71_v2  ;;  %74 = vst [vmem:[%s47_s18 + $0x4] sm:$0xf] (!%p318_p1), %v73_v3  ;;  %v77_v5 = vld [vmem:[%s55_s17 + $0x24] sm:$0xf] (!%p318_p1) }
   0xf   : > { %76 = vst [vmem:[%s47_s18 + $0x8] sm:$0xf] (!%p318_p1), %v75_v4  ;;  %78 = vst [vmem:[%s47_s18 + $0xc] sm:$0xf] (!%p318_p1), %v77_v5 }
  0x11 PF: > { %p321_p2 = scmp.ge.s32.totalorder %s381_s8, 1  ;;  %p108_p3 = scmp.lt.s32.totalorder %s381_s8, 4 }
  0x13   : > { %p109_p4 = pnand %p321_p2, %p108_p3 }
  0x14   : > { %358 = vset.pattern.permute.xlu1 (!%p109_p4), %v393_v1  ;;  %s424_s19 = sand.u32 (!%p109_p4), 1, %s316_s9   ;;  %s331_s23 = sshll.u32 (!%p109_p4), %s373_s6, 2 }
  0x15   : > { %112 = sbr.rel (%p109_p4) target bundleno = 181 (0xb5), region = 57  ;;  %s322_s20 = sshll.u32 (!%p109_p4), %s424_s19, 4 }
  0x16   : > { %s121_s21 = scalar_lea.vmem (!%p109_p4), [#allocation1], %s322_s20  ;;  %s125_s22 = scalar_lea.vmem (!%p109_p4), [#allocation3], %s322_s20 }
  0x17   : > { %v142_v6 = vld [vmem:[%s121_s21] sm:$0xf] (!%p109_p4)  ;;  %v325_v7 = vld [vmem:[%s121_s21 + $0x8] sm:$0xf] (!%p109_p4)  ;;  %v326_v8 = vld [vmem:[%s121_s21 + $0x4] sm:$0xf] (!%p109_p4)  ;;  %s202_s26 = scalar_lea.vmem (!%p109_p4), %s441_s1, %s331_s23 }
  0x18   : > { %143 = vst [vmem:[#allocation0] sm:$0xf] (!%p109_p4), %v142_v6  ;;  %137 = vst [vmem:[#allocation0 + $0x10] sm:$0xf] (!%p109_p4), %v325_v7  ;;  %v324_v9 = vld [vmem:[%s121_s21 + $0xc] sm:$0xf] (!%p109_p4) }
  0x19   : > { %141 = vst [vmem:[#allocation0 + $0x8] sm:$0xf] (!%p109_p4), %v326_v8  ;;  %132 = vst [vmem:[#allocation0 + $0x18] sm:$0xf] (!%p109_p4), %v324_v9 }
  0x1f   : > { %v147_v10 = vld [vmem:[#allocation0] sm:$0xff]  ;;  %v159_v11 = vld [vmem:[#allocation0 + $0x10] sm:$0xff] }
  0x20   : > { %148 = vperm.xlu0 %4, %v147_v10   ;;  %160 = vperm.xlu1 %358, %v159_v11   ;;  %v153_v12 = vld [vmem:[#allocation0 + $0x8] sm:$0xff]  ;;  %v165_v13 = vld [vmem:[#allocation0 + $0x18] sm:$0xff] }
  0x24   : > { %154 = vperm.xlu0 %4, %v153_v12   ;;  %166 = vperm.xlu1 %358, %v165_v13  }
  0x9f   : > { %v149_v14 = vpop.permute.xlu0 %148  ;;  %v161_v15 = vpop.permute.xlu1 %160 }
  0xa0   : > { %150 = vst [vmem:[#allocation2] sm:$0xff] %v149_v14  ;;  %162 = vst [vmem:[#allocation2 + $0x10] sm:$0xff] %v161_v15 }
  0xa3   : > { %v155_v16 = vpop.permute.xlu0 %154  ;;  %v167_v17 = vpop.permute.xlu1 %166 }
  0xa4   : > { %156 = vst [vmem:[#allocation2 + $0x8] sm:$0xff] %v155_v16  ;;  %168 = vst [vmem:[#allocation2 + $0x18] sm:$0xff] %v167_v17 }
  0xa7   : > { %v172_v18 = vld [vmem:[#allocation2] sm:$0xf]  ;;  %v181_v19 = vld [vmem:[#allocation2 + $0x10] sm:$0xf] }
  0xa8   : > { %174 = vst [vmem:[%s125_s22] sm:$0xf] %v172_v18  ;;  %328 = vst [vmem:[%s125_s22 + $0x8] sm:$0xf] %v181_v19 }
  0xab   : > { %v176_v20 = vld [vmem:[#allocation2 + $0x8] sm:$0xf]  ;;  %v187_v21 = vld [vmem:[#allocation2 + $0x18] sm:$0xf] }
  0xac   : > { %327 = vst [vmem:[%s125_s22 + $0x4] sm:$0xf] %v176_v20  ;;  %329 = vst [vmem:[%s125_s22 + $0xc] sm:$0xf] %v187_v21 }
  0xaf   : > { %v218_v22 = vld [vmem:[%s125_s22] sm:$0xf]  ;;  %v222_v23 = vld [vmem:[%s125_s22 + $0x8] sm:$0xf] }
  0xb0   : > { %219 = vst [vmem:[%s202_s26] sm:$0xf] %v218_v22  ;;  %223 = vst [vmem:[%s202_s26 + $0x18] sm:$0xf] %v222_v23 }
  0xb3   : > { %v220_v24 = vld [vmem:[%s125_s22 + $0x4] sm:$0xf]  ;;  %v224_v25 = vld [vmem:[%s125_s22 + $0xc] sm:$0xf] }
  0xb4   : > { %221 = vst [vmem:[%s202_s26 + $0xc] sm:$0xf] %v220_v24  ;;  %225 = vst [vmem:[%s202_s26 + $0x24] sm:$0xf] %v224_v25 }
  0xb5 PF: > { %s10_s8 = sadd.s32 1, %s381_s8   ;;  %s442_s6 = smov %s377_s7 }
  0xb6   : > { %p7_p5 = scmp.ge.s32.totalorder %s10_s8, 5   ;;  %s443_s7 = smov %s445_s10 }
  0xb8   :  { %9 = sbr.rel (!%p7_p5) target bundleno = 7 (0x7), region = 142 }

// kernel: reverse.27
= control target key start
LH: loop header
LB: loop body
LE: loop exit
PB: predicated region body
PF: predicated region fallthrough
CT: control target
= control target key end

     0   :  { %v2_v0 = vlaneseq  ;;  %s374_s0 = inlined_call_operand.vmem [shape: f32[2,4,256], index: 0, kind: input, shape index: {}]   ;;  %s375_s1 = inlined_call_operand.vmem [shape: f32[2,4,256], index: 1, kind: output, shape index: {}]  }
   0x2   :  { %v3_v1 = vsub.s32 127, %v2_v0 }
   0x4   :  { %4 = vset.pattern.permute.xlu0 %v3_v1 }
   0x5   :  { %s334_s6 = smov 0   ;;  %s336_s7 = smov 0  }
   0x6   :  { %s338_s8 = smov 0  }
   0x7 LB: > { %s262_s9 = sadd.s32 4294967295, %s322_s8   ;;  %s22_s10 = sadd.s32 1, %s318_s7  ;;  %s322_s8 = sphi %s338_s8, %s10_s8   ;;  %s318_s7 = sphi %s336_s7, %s377_s7   ;;  %s314_s6 = sphi %s334_s6, %s376_s6  }
   0x8   : > { %p23_p0 = scmp.ge.s32.totalorder %s22_s10, 2  ;;  %p264_p1 = scmp.ge.s32.totalorder %s322_s8, 2 }
   0x9   : > { %s45_s11 = sand.u32 (!%p264_p1), 1, %s322_s8   ;;  %s48_s12 = ssub.s32 (!%p264_p1), 1, %s318_s7 }
   0xa   : > { %s379_s10 = smov (%p23_p0, %s22_s10), 0  ;;  %43 = sbr.rel (%p264_p1) target bundleno = 17 (0x11), region = 16 }
   0xb   : > { %s265_s13 = sshll.u32 (!%p264_p1), %s45_s11, 3  ;;  %s266_s14 = sshll.u32 (!%p264_p1), %s48_s12, 2 }
   0xc   : > { %s55_s17 = scalar_lea.vmem (!%p264_p1), %s374_s0, %s266_s14  ;;  %s47_s18 = scalar_lea.vmem (!%p264_p1), [#allocation1], %s265_s13 }
   0xd   : > { %v71_v2 = vld [vmem:[%s55_s17] sm:$0xf] (!%p264_p1)  ;;  %v73_v3 = vld [vmem:[%s55_s17 + $0x8] sm:$0xf] (!%p264_p1) }
   0xe   : > { %72 = vst [vmem:[%s47_s18] sm:$0xf] (!%p264_p1), %v71_v2  ;;  %74 = vst [vmem:[%s47_s18 + $0x4] sm:$0xf] (!%p264_p1), %v73_v3 }
  0x11 PF: > { %p267_p2 = scmp.ge.s32.totalorder %s322_s8, 1  ;;  %p100_p3 = scmp.lt.s32.totalorder %s322_s8, 3 }
  0x13   : > { %p101_p4 = pnand %p267_p2, %p100_p3 }
  0x14   : > { %s111_s19 = sand.u32 (!%p101_p4), 1, %s262_s9   ;;  %s273_s23 = sshll.u32 (!%p101_p4), %s314_s6, 2 }
  0x15   : > { %104 = sbr.rel (%p101_p4) target bundleno = 181 (0xb5), region = 57  ;;  %s268_s20 = sshll.u32 (!%p101_p4), %s111_s19, 3 }
  0x16   : > { %s113_s21 = scalar_lea.vmem (!%p101_p4), [#allocation1], %s268_s20  ;;  %s117_s22 = scalar_lea.vmem (!%p101_p4), [#allocation3], %s268_s20 }
  0x17   : > { %v124_v4 = vld [vmem:[%s113_s21] sm:$0xf] (!%p101_p4)  ;;  %v270_v5 = vld [vmem:[%s113_s21 + $0x4] sm:$0xf] (!%p101_p4)  ;;  %s160_s26 = scalar_lea.vmem (!%p101_p4), %s375_s1, %s273_s23 }
  0x18   : > { %125 = vst [vmem:[#allocation0] sm:$0xf] (!%p101_p4), %v124_v4  ;;  %123 = vst [vmem:[#allocation0 + $0x8] sm:$0xf] (!%p101_p4), %v270_v5 }
  0x1f   : > { %v129_v6 = vld [vmem:[#allocation0] sm:$0xff]  ;;  %v135_v7 = vld [vmem:[#allocation0 + $0x8] sm:$0xff] }
  0x20   : > { %130 = vperm.xlu0 %4, %v129_v6  }
  0x24   : > { %136 = vperm.xlu0 %4, %v135_v7  }
  0x9f   : > { %v131_v8 = vpop.permute.xlu0 %130 }
  0xa0   : > { %132 = vst [vmem:[#allocation2] sm:$0xff] %v131_v8 }
  0xa3   : > { %v137_v9 = vpop.permute.xlu0 %136 }
  0xa4   : > { %138 = vst [vmem:[#allocation2 + $0x8] sm:$0xff] %v137_v9 }
  0xa7   : > { %v142_v10 = vld [vmem:[#allocation2] sm:$0xf] }
  0xa8   : > { %144 = vst [vmem:[%s117_s22] sm:$0xf] %v142_v10 }
  0xab   : > { %v146_v11 = vld [vmem:[#allocation2 + $0x8] sm:$0xf] }
  0xac   : > { %271 = vst [vmem:[%s117_s22 + $0x4] sm:$0xf] %v146_v11 }
  0xaf   : > { %v176_v12 = vld [vmem:[%s117_s22] sm:$0xf] }
  0xb0   : > { %177 = vst [vmem:[%s160_s26] sm:$0xf] %v176_v12 }
  0xb3   : > { %v178_v13 = vld [vmem:[%s117_s22 + $0x4] sm:$0xf] }
  0xb4   : > { %179 = vst [vmem:[%s160_s26 + $0x8] sm:$0xf] %v178_v13 }
  0xb5 PF: > { %s10_s8 = sadd.s32 1, %s322_s8   ;;  %s376_s6 = smov %s318_s7 }
  0xb6   : > { %p7_p5 = scmp.ge.s32.totalorder %s10_s8, 4   ;;  %s377_s7 = smov %s379_s10 }
  0xb8   :  { %9 = sbr.rel (!%p7_p5) target bundleno = 7 (0x7), region = 130 }

// kernel: _lambda_.16
= control target key start
LH: loop header
LB: loop body
LE: loop exit
PB: predicated region body
PF: predicated region fallthrough
CT: control target
= control target key end

     0   :  { %vm30_vm0 = vcmask 130048   ;;  %s770_s0 = inlined_call_operand.vmem [shape: f32[2,4,18,18], index: 0, kind: input, shape index: {}]   ;;  %s771_s1 = inlined_call_operand.vmem [shape: f32[1,4,1,1], index: 1, kind: input, shape index: {}]   ;;  %s772_s2 = inlined_call_operand.vmem [shape: f32[1,4,1,1], index: 2, kind: input, shape index: {}]   ;;  %s773_s3 = inlined_call_operand.vmem [shape: f32[2,4,16,16], index: 3, kind: output, shape index: {}]  }
   0x1   :  { %v431_v0 = vld [vmem:[%s770_s0] sm:$0xff]  ;;  %v436_v1 = vld [vmem:[%s770_s0 + $0x8] sm:$0xff]  ;;  %v457_v7 = vld [vmem:[%s770_s0 + $0x30] sm:$0xff] }
   0x2   :  { %v441_v2 = vld [vmem:[%s770_s0 + $0x60] sm:$0xff]  ;;  %v446_v3 = vld [vmem:[%s770_s0 + $0x68] sm:$0xff]  ;;  %v31_v4 = vsel %vm30_vm0, %v431_v0, 0.0  ;;  %v34_v6 = vsel %vm30_vm0, %v436_v1, 0.0  ;;  %v462_v8 = vld [vmem:[%s770_s0 + $0x38] sm:$0xff]  ;;  %v43_v13 = vsel %vm30_vm0, %v457_v7, 0.0 }
   0x3   :  { %v32_v5 = vsel %vm30_vm0, %v441_v2, 0.0  ;;  %v35_v10 = vsel %vm30_vm0, %v446_v3, 0.0  ;;  %v469_v11 = vld [vmem:[%s770_s0 + $0x90] sm:$0xff]  ;;  %v474_v12 = vld [vmem:[%s770_s0 + $0x98] sm:$0xff]  ;;  %v46_v14 = vsel %vm30_vm0, %v462_v8, 0.0  ;;  %v492_v19 = vld [vmem:[%s770_s0 + $0x20] sm:$0xff] }
   0x4   :  { %v33_v9 = vadd.f32 %v32_v5, %v31_v4  ;;  %v483_v15 = vld [vmem:[%s770_s0 + $0x18] sm:$0xff]  ;;  %v36_v16 = vadd.f32 %v35_v10, %v34_v6  ;;  %v44_v17 = vsel %vm30_vm0, %v469_v11, 0.0  ;;  %v47_v18 = vsel %vm30_vm0, %v474_v12, 0.0  ;;  %v502_v21 = vld [vmem:[%s770_s0 + $0x80] sm:$0xff]  ;;  %v512_v27 = vld [vmem:[%s770_s0 + $0x48] sm:$0xff] }
   0x5   :  { %v497_v20 = vld [vmem:[%s770_s0 + $0x78] sm:$0xff]  ;;  %v37_v22 = vsel %vm30_vm0, %v483_v15, 0.0  ;;  %v45_v24 = vadd.f32 %v44_v17, %v43_v13  ;;  %v48_v25 = vadd.f32 %v47_v18, %v46_v14  ;;  %v517_v28 = vld [vmem:[%s770_s0 + $0xa8] sm:$0xff]  ;;  %v40_v31 = vsel %vm30_vm0, %v492_v19, 0.0  ;;  %v527_v33 = vld [vmem:[%s770_s0 + $0x50] sm:$0xff] }
   0x6   :  { %v55_v23 = vsel %vm30_vm0, %v33_v9, 0.0  ;;  %v38_v26 = vsel %vm30_vm0, %v497_v20, 0.0  ;;  %v56_v29 = vsel %vm30_vm0, %v36_v16, 0.0  ;;  %v41_v32 = vsel %vm30_vm0, %v502_v21, 0.0  ;;  %v534_v38 = vld [vmem:[%s770_s0 + $0xb0] sm:$0xff] }
   0x7   :  { %v39_v30 = vadd.f32 %v38_v26, %v37_v22  ;;  %v57_v34 = vadd.f32 %v56_v29, %v55_v23  ;;  %v73_v35 = vsel %vm30_vm0, %v45_v24, 0.0  ;;  %v74_v36 = vsel %vm30_vm0, %v48_v25, 0.0 }
   0x8   :  { %v42_v37 = vadd.f32 %v41_v32, %v40_v31  ;;  %v75_v39 = vadd.f32 %v74_v36, %v73_v35  ;;  %v49_v41 = vsel %vm30_vm0, %v512_v27, 0.0  ;;  %v50_v42 = vsel %vm30_vm0, %v517_v28, 0.0 }
   0x9   :  { %v64_v40 = vsel %vm30_vm0, %v39_v30, 0.0  ;;  %v58_v43 = vrot.slane %v57_v34, 4  ;;  %v51_v45 = vadd.f32 %v50_v42, %v49_v41  ;;  %v52_v46 = vsel %vm30_vm0, %v527_v33, 0.0 }
   0xa   :  { %v65_v44 = vsel %vm30_vm0, %v42_v37, 0.0  ;;  %v76_v47 = vrot.slane %v75_v39, 4  ;;  %v53_v49 = vsel %vm30_vm0, %v534_v38, 0.0  ;;  %v407_v30 = vmov 0  }
   0xb   :  { %v66_v48 = vadd.f32 %v65_v44, %v64_v40  ;;  %v59_v50 = vadd.f32 %v58_v43, %v57_v34  ;;  %v54_v51 = vadd.f32 %v53_v49, %v52_v46  ;;  %v82_v52 = vsel %vm30_vm0, %v51_v45, 0.0  ;;  %398 = vset.pattern.permute.xlu1 %v407_v30  ;;  %397 = vset.pattern.permute.xlu0 %v407_v30 }
   0xc   :  { %v77_v53 = vadd.f32 %v76_v47, %v75_v39 }
   0xd   :  { %v67_v54 = vrot.slane %v66_v48, 4  ;;  %v60_v55 = vrot.slane %v59_v50, 2  ;;  %v83_v56 = vsel %vm30_vm0, %v54_v51, 0.0 }
   0xe   :  { %v78_v57 = vrot.slane %v77_v53, 2  ;;  %v84_v59 = vadd.f32 %v83_v56, %v82_v52 }
   0xf   :  { %v68_v58 = vadd.f32 %v67_v54, %v66_v48  ;;  %v61_v60 = vadd.f32 %v60_v55, %v59_v50 }
  0x10   :  { %v79_v61 = vadd.f32 %v78_v57, %v77_v53  ;;  %v85_v63 = vrot.slane %v84_v59, 4 }
  0x11   :  { %v69_v62 = vrot.slane %v68_v58, 2  ;;  %v62_v4 = vrot.slane %v61_v60, 1 }
  0x12   :  { %v80_v5 = vrot.slane %v79_v61, 1  ;;  %v86_v9 = vadd.f32 %v85_v63, %v84_v59 }
  0x13   :  { %v70_v6 = vadd.f32 %v69_v62, %v68_v58  ;;  %v63_v10 = vadd.f32 %v62_v4, %v61_v60 }
  0x14   :  { %v81_v13 = vadd.f32 %v80_v5, %v79_v61  ;;  %v87_v16 = vrot.slane %v86_v9, 2 }
  0x15   :  { %v71_v14 = vrot.slane %v70_v6, 1  ;;  %v91_v17 = vsel %vm30_vm0, %v63_v10, 0.0 }
  0x16   :  { %92 = vadd.xlane.f32.xlu0 %v91_v17  ;;  %v97_v18 = vsel %vm30_vm0, %v81_v13, 0.0  ;;  %v88_v23 = vadd.f32 %v87_v16, %v86_v9 }
  0x17   :  { %v72_v22 = vadd.f32 %v71_v14, %v70_v6  ;;  %98 = vadd.xlane.f32.xlu1 %v97_v18 }
  0x18   :  { %v89_v25 = vrot.slane %v88_v23, 1 }
  0x19   :  { %v94_v24 = vsel %vm30_vm0, %v72_v22, 0.0 }
  0x1a   :  { %95 = vadd.xlane.f32.xlu0 %v94_v24  ;;  %v90_v26 = vadd.f32 %v89_v25, %v88_v23 }
  0x1c   :  { %v100_v29 = vsel %vm30_vm0, %v90_v26, 0.0 }
  0x1d   :  { %101 = vadd.xlane.f32.xlu1 %v100_v29 }
  0xa3   :  { %v93_v31 = vpop.xlane.xlu0 %92 }
  0xa4   :  { %v104_v32 = vmul.f32 0.001953125, %v93_v31  ;;  %v99_v34 = vpop.xlane.xlu1 %98 }
  0xa5   :  { %v106_v35 = vmul.f32 0.001953125, %v99_v34 }
  0xa6   :  { %v553_v36 = vsub.f32 %v431_v0, %v104_v32  ;;  %v556_v37 = vsub.f32 %v436_v1, %v104_v32  ;;  %v559_v39 = vsub.f32 %v441_v2, %v104_v32  ;;  %v562_v40 = vsub.f32 %v446_v3, %v104_v32 }
  0xa7   :  { %v565_v41 = vsub.f32 %v457_v7, %v106_v35  ;;  %v568_v42 = vsub.f32 %v462_v8, %v106_v35  ;;  %v571_v43 = vsub.f32 %v469_v11, %v106_v35  ;;  %v574_v0 = vsub.f32 %v474_v12, %v106_v35  ;;  %v96_v1 = vpop.xlane.xlu0 %95 }
  0xa8   :  { %v124_v2 = vmul.f32 %v553_v36, %v553_v36  ;;  %v125_v3 = vmul.f32 %v556_v37, %v556_v37  ;;  %v132_v7 = vmul.f32 %v559_v39, %v559_v39  ;;  %v133_v8 = vmul.f32 %v562_v40, %v562_v40 }
  0xa9   :  { %v128_v11 = vmul.f32 %v565_v41, %v565_v41  ;;  %v129_v12 = vmul.f32 %v568_v42, %v568_v42  ;;  %v136_v44 = vmul.f32 %v571_v43, %v571_v43  ;;  %v137_v45 = vmul.f32 %v574_v0, %v574_v0 }
  0xaa   :  { %v105_v46 = vmul.f32 0.001953125, %v96_v1  ;;  %v140_v47 = vsel %vm30_vm0, %v124_v2, 0.0  ;;  %v141_v48 = vsel %vm30_vm0, %v132_v7, 0.0  ;;  %v143_v49 = vsel %vm30_vm0, %v125_v3, 0.0 }
  0xab   :  { %v142_v50 = vadd.f32 %v141_v48, %v140_v47  ;;  %v144_v51 = vsel %vm30_vm0, %v133_v8, 0.0  ;;  %v152_v52 = vsel %vm30_vm0, %v128_v11, 0.0  ;;  %v153_v53 = vsel %vm30_vm0, %v136_v44, 0.0 }
  0xac   :  { %v599_v54 = vsub.f32 %v483_v15, %v105_v46  ;;  %v602_v55 = vsub.f32 %v492_v19, %v105_v46  ;;  %v605_v56 = vsub.f32 %v497_v20, %v105_v46  ;;  %v608_v57 = vsub.f32 %v502_v21, %v105_v46 }
  0xad   :  { %v145_v58 = vadd.f32 %v144_v51, %v143_v49  ;;  %v164_v59 = vsel %vm30_vm0, %v142_v50, 0.0  ;;  %v154_v60 = vadd.f32 %v153_v53, %v152_v52  ;;  %v155_v61 = vsel %vm30_vm0, %v129_v12, 0.0  ;;  %v389_v51 = vld [vmem:[%s771_s1 + $0x1] ss:$0 sm:$0xff]  ;;  %v390_v52 = vld [vmem:[%s771_s1 + $0x2] ss:$0 sm:$0xff] }
  0xae   :  { %v126_v62 = vmul.f32 %v599_v54, %v599_v54  ;;  %v127_v15 = vmul.f32 %v602_v55, %v602_v55  ;;  %v134_v19 = vmul.f32 %v605_v56, %v605_v56  ;;  %v135_v20 = vmul.f32 %v608_v57, %v608_v57  ;;  %v388_v53 = vld [vmem:[%s771_s1] ss:$0 sm:$0xff] }
  0xaf   :  { %v165_v21 = vsel %vm30_vm0, %v145_v58, 0.0  ;;  %v156_v63 = vsel %vm30_vm0, %v137_v45, 0.0  ;;  %v182_v4 = vsel %vm30_vm0, %v154_v60, 0.0  ;;  %v102_v58 = vpop.xlane.xlu1 %101 }
  0xb0   :  { %v166_v5 = vadd.f32 %v165_v21, %v164_v59  ;;  %v157_v6 = vadd.f32 %v156_v63, %v155_v61  ;;  %v146_v9 = vsel %vm30_vm0, %v126_v62, 0.0  ;;  %v147_v10 = vsel %vm30_vm0, %v134_v19, 0.0  ;;  %v391_v59 = vld [vmem:[%s771_s1 + $0x3] ss:$0 sm:$0xff]  ;;  %v392_v61 = vld [vmem:[%s772_s2] ss:$0 sm:$0xff] }
  0xb1   :  { %v148_v13 = vadd.f32 %v147_v10, %v146_v9  ;;  %v149_v14 = vsel %vm30_vm0, %v127_v15, 0.0  ;;  %v150_v16 = vsel %vm30_vm0, %v135_v20, 0.0  ;;  %v107_v60 = vmul.f32 0.001953125, %v102_v58  ;;  %v393_v21 = vld [vmem:[%s772_s2 + $0x1] ss:$0 sm:$0xff] }
  0xb2   :  { %v167_v17 = vrot.slane %v166_v5, 4  ;;  %v183_v18 = vsel %vm30_vm0, %v157_v6, 0.0  ;;  %v151_v22 = vadd.f32 %v150_v16, %v149_v14 }
  0xb3   :  { %v184_v23 = vadd.f32 %v183_v18, %v182_v4  ;;  %v173_v24 = vsel %vm30_vm0, %v148_v13, 0.0  ;;  %v649_v62 = vsub.f32 %v512_v27, %v107_v60  ;;  %v652_v15 = vsub.f32 %v527_v33, %v107_v60 }
  0xb4   :  { %v168_v25 = vadd.f32 %v167_v17, %v166_v5  ;;  %v174_v26 = vsel %vm30_vm0, %v151_v22, 0.0  ;;  %v655_v19 = vsub.f32 %v517_v28, %v107_v60  ;;  %v658_v20 = vsub.f32 %v534_v38, %v107_v60  ;;  %v394_v38 = vld [vmem:[%s772_s2 + $0x2] ss:$0 sm:$0xff] }
  0xb5   :  { %v185_v29 = vrot.slane %v184_v23, 4  ;;  %v175_v30 = vadd.f32 %v174_v26, %v173_v24  ;;  %v130_v63 = vmul.f32 %v649_v62, %v649_v62  ;;  %v131_v27 = vmul.f32 %v652_v15, %v652_v15 }
  0xb6   :  { %v169_v31 = vrot.slane %v168_v25, 2  ;;  %v138_v33 = vmul.f32 %v655_v19, %v655_v19  ;;  %v139_v28 = vmul.f32 %v658_v20, %v658_v20 }
  0xb7   :  { %v186_v32 = vadd.f32 %v185_v29, %v184_v23  ;;  %v176_v34 = vrot.slane %v175_v30, 4  ;;  %v158_v4 = vsel %vm30_vm0, %v130_v63, 0.0  ;;  %v161_v6 = vsel %vm30_vm0, %v131_v27, 0.0 }
  0xb8   :  { %v170_v35 = vadd.f32 %v169_v31, %v168_v25  ;;  %v159_v5 = vsel %vm30_vm0, %v138_v33, 0.0  ;;  %v162_v9 = vsel %vm30_vm0, %v139_v28, 0.0 }
  0xb9   :  { %v187_v1 = vrot.slane %v186_v32, 2  ;;  %v177_v2 = vadd.f32 %v176_v34, %v175_v30  ;;  %v160_v10 = vadd.f32 %v159_v5, %v158_v4  ;;  %v163_v13 = vadd.f32 %v162_v9, %v161_v6  ;;  %v395_v30 = vld [vmem:[%s772_s2 + $0x3] ss:$0 sm:$0xff] }
  0xba   :  { %v171_v3 = vrot.slane %v170_v35, 1 }
  0xbb   :  { %v188_v7 = vadd.f32 %v187_v1, %v186_v32  ;;  %v178_v8 = vrot.slane %v177_v2, 2  ;;  %v191_v14 = vsel %vm30_vm0, %v160_v10, 0.0  ;;  %v192_v16 = vsel %vm30_vm0, %v163_v13, 0.0 }
  0xbc   :  { %v172_v11 = vadd.f32 %v171_v3, %v170_v35  ;;  %v193_v17 = vadd.f32 %v192_v16, %v191_v14 }
  0xbd   :  { %v189_v12 = vrot.slane %v188_v7, 1  ;;  %v179_v44 = vadd.f32 %v178_v8, %v177_v2 }
  0xbe   :  { %v200_v45 = vsel %vm30_vm0, %v172_v11, 0.0  ;;  %v194_v18 = vrot.slane %v193_v17, 4 }
  0xbf   :  { %201 = vadd.xlane.f32.xlu0 %v200_v45  ;;  %v190_v46 = vadd.f32 %v189_v12, %v188_v7  ;;  %v180_v47 = vrot.slane %v179_v44, 1 }
  0xc0   :  { %v195_v22 = vadd.f32 %v194_v18, %v193_v17 }
  0xc1   :  { %v206_v48 = vsel %vm30_vm0, %v190_v46, 0.0  ;;  %v181_v49 = vadd.f32 %v180_v47, %v179_v44 }
  0xc2   :  { %v196_v23 = vrot.slane %v195_v22, 2 }
  0xc3   :  { %207 = vadd.xlane.f32.xlu0 %v206_v48  ;;  %v203_v50 = vsel %vm30_vm0, %v181_v49, 0.0 }
  0xc4   :  { %204 = vadd.xlane.f32.xlu1 %v203_v50  ;;  %v197_v24 = vadd.f32 %v196_v23, %v195_v22 }
  0xc6   :  { %v198_v25 = vrot.slane %v197_v24, 1 }
  0xc8   :  { %v199_v26 = vadd.f32 %v198_v25, %v197_v24 }
  0xca   :  { %v209_v29 = vsel %vm30_vm0, %v199_v26, 0.0 }
  0xd5   :  { %269 = vperm.xlu1 %398, %v389_v51  }
  0xd9   :  { %273 = vperm.xlu1 %398, %v390_v52   ;;  %265 = vperm.xlu0 %397, %v388_v53  }
  0xdd   :  { %277 = vperm.xlu1 %398, %v391_v59  }
  0xe1   :  { %321 = vperm.xlu1 %398, %v392_v61  }
  0xe5   :  { %325 = vperm.xlu1 %398, %v393_v21  }
  0xe9   :  { %329 = vperm.xlu1 %398, %v394_v38  }
 0x10d   :  { %210 = vadd.xlane.f32.xlu1 %v209_v29 }
 0x11e   :  { %333 = vperm.xlu1 %398, %v395_v30  }
 0x14c   :  { %v202_v31 = vpop.xlane.xlu0 %201 }
 0x14d   :  { %v212_v32 = vmul.f32 0.001953125, %v202_v31 }
 0x14f   :  { %v216_v34 = vadd.f32 4.0, %v212_v32 }
 0x150   :  { %v208_v35 = vpop.xlane.xlu0 %207 }
 0x151   :  { %399 = vrsqrt.f32 %v216_v34  ;;  %v205_v1 = vpop.xlane.xlu1 %204  ;;  %v214_v2 = vmul.f32 0.001953125, %v208_v35 }
 0x152   :  { %v213_v3 = vmul.f32 0.001953125, %v205_v1 }
 0x153   :  { %v218_v7 = vadd.f32 4.0, %v214_v2 }
 0x154   :  { %v217_v8 = vadd.f32 4.0, %v213_v3 }
 0x155   :  { %401 = vrsqrt.f32 %v218_v7  ;;  %v270_v11 = vpop.permute.xlu1 %269 }
 0x156   :  { %403 = vrsqrt.f32 %v217_v8 }
 0x158   :  { %v266_v50 = vpop.permute.xlu0 %265 }
 0x159   :  { %v274_v12 = vpop.permute.xlu1 %273 }
 0x15b   :  { %v400_v44 = vpop.eup %399 }
 0x15c   :  { %v224_v45 = vmul.f32 %v400_v44, %v553_v36  ;;  %v225_v46 = vmul.f32 %v400_v44, %v556_v37  ;;  %v232_v47 = vmul.f32 %v400_v44, %v559_v39  ;;  %v233_v48 = vmul.f32 %v400_v44, %v562_v40 }
 0x15d   :  { %v688_v49 = vpop.permute.xlu1 %277 }
 0x15e   :  { %v280_v53 = vmul.f32 %v266_v50, %v224_v45  ;;  %v281_v58 = vmul.f32 %v266_v50, %v225_v46  ;;  %v288_v59 = vmul.f32 %v266_v50, %v232_v47  ;;  %v289_v60 = vmul.f32 %v266_v50, %v233_v48 }
 0x15f   :  { %v402_v51 = vpop.eup %401 }
 0x160   :  { %v404_v52 = vpop.eup %403  ;;  %v228_v40 = vmul.f32 %v402_v51, %v565_v41  ;;  %v229_v63 = vmul.f32 %v402_v51, %v568_v42  ;;  %v236_v27 = vmul.f32 %v402_v51, %v571_v43  ;;  %v237_v33 = vmul.f32 %v402_v51, %v574_v0 }
 0x161   :  { %v226_v61 = vmul.f32 %v404_v52, %v599_v54  ;;  %v227_v21 = vmul.f32 %v404_v52, %v602_v55  ;;  %v234_v36 = vmul.f32 %v404_v52, %v605_v56  ;;  %v235_v37 = vmul.f32 %v404_v52, %v608_v57  ;;  %v322_v39 = vpop.permute.xlu1 %321 }
 0x162   :  { %v336_v54 = vadd.f32 %v322_v39, %v280_v53  ;;  %v337_v6 = vadd.f32 %v322_v39, %v281_v58  ;;  %v344_v55 = vadd.f32 %v322_v39, %v288_v59  ;;  %v345_v9 = vadd.f32 %v322_v39, %v289_v60 }
 0x163   :  { %v282_v28 = vmul.f32 %v270_v11, %v226_v61  ;;  %v283_v38 = vmul.f32 %v270_v11, %v227_v21  ;;  %v290_v4 = vmul.f32 %v270_v11, %v234_v36  ;;  %v291_v5 = vmul.f32 %v270_v11, %v235_v37 }
 0x164   :  { %v352_v10 = vmax.f32 %v336_v54, 0.0  ;;  %v353_v57 = vmax.f32 %v337_v6, 0.0  ;;  %v360_v13 = vmax.f32 %v344_v55, 0.0  ;;  %v361_v14 = vmax.f32 %v345_v9, 0.0 }
 0x165   :  { %v326_v56 = vpop.permute.xlu1 %325  ;;  %v284_v43 = vmul.f32 %v274_v12, %v228_v40  ;;  %v285_v18 = vmul.f32 %v274_v12, %v229_v63  ;;  %v292_v0 = vmul.f32 %v274_v12, %v236_v27  ;;  %v293_v22 = vmul.f32 %v274_v12, %v237_v33 }
 0x166   :  { %v338_v41 = vadd.f32 %v326_v56, %v282_v28  ;;  %v339_v16 = vadd.f32 %v326_v56, %v283_v38  ;;  %v346_v42 = vadd.f32 %v326_v56, %v290_v4  ;;  %v347_v17 = vadd.f32 %v326_v56, %v291_v5  ;;  %368 = vst.msk [vmem:[%s773_s3] sm:$0xff] %vm30_vm0, %v352_v10 }
 0x167   :  { %369 = vst.msk [vmem:[%s773_s3 + $0x8] sm:$0xff] %vm30_vm0, %v353_v57  ;;  %376 = vst.msk [vmem:[%s773_s3 + $0x40] sm:$0xff] %vm30_vm0, %v360_v13 }
 0x168   :  { %377 = vst.msk [vmem:[%s773_s3 + $0x48] sm:$0xff] %vm30_vm0, %v361_v14  ;;  %v354_v23 = vmax.f32 %v338_v41, 0.0  ;;  %v355_v24 = vmax.f32 %v339_v16, 0.0  ;;  %v362_v25 = vmax.f32 %v346_v42, 0.0  ;;  %v363_v26 = vmax.f32 %v347_v17, 0.0 }
 0x169   :  { %v330_v29 = vpop.permute.xlu1 %329 }
 0x16a   :  { %v340_v30 = vadd.f32 %v330_v29, %v284_v43  ;;  %v341_v31 = vadd.f32 %v330_v29, %v285_v18  ;;  %v348_v32 = vadd.f32 %v330_v29, %v292_v0  ;;  %v349_v34 = vadd.f32 %v330_v29, %v293_v22  ;;  %370 = vst.msk [vmem:[%s773_s3 + $0x10] sm:$0xff] %vm30_vm0, %v354_v23 }
 0x16b   :  { %371 = vst.msk [vmem:[%s773_s3 + $0x18] sm:$0xff] %vm30_vm0, %v355_v24  ;;  %378 = vst.msk [vmem:[%s773_s3 + $0x50] sm:$0xff] %vm30_vm0, %v362_v25 }
 0x16c   :  { %379 = vst.msk [vmem:[%s773_s3 + $0x58] sm:$0xff] %vm30_vm0, %v363_v26  ;;  %v356_v35 = vmax.f32 %v340_v30, 0.0  ;;  %v357_v1 = vmax.f32 %v341_v31, 0.0  ;;  %v364_v2 = vmax.f32 %v348_v32, 0.0  ;;  %v365_v3 = vmax.f32 %v349_v34, 0.0 }
 0x16e   :  { %372 = vst.msk [vmem:[%s773_s3 + $0x20] sm:$0xff] %vm30_vm0, %v356_v35  ;;  %373 = vst.msk [vmem:[%s773_s3 + $0x28] sm:$0xff] %vm30_vm0, %v357_v1 }
 0x16f   :  { %380 = vst.msk [vmem:[%s773_s3 + $0x60] sm:$0xff] %vm30_vm0, %v364_v2  ;;  %381 = vst.msk [vmem:[%s773_s3 + $0x68] sm:$0xff] %vm30_vm0, %v365_v3 }
 0x19a   :  { %v211_v7 = vpop.xlane.xlu1 %210 }
 0x19b   :  { %v215_v8 = vmul.f32 0.001953125, %v211_v7 }
 0x19d   :  { %v219_v11 = vadd.f32 4.0, %v215_v8 }
 0x19e   :  { %v334_v53 = vpop.permute.xlu1 %333 }
 0x19f   :  { %405 = vrsqrt.f32 %v219_v11 }
 0x1a9   :  { %v406_v12 = vpop.eup %405 }
 0x1aa   :  { %v230_v44 = vmul.f32 %v406_v12, %v649_v62  ;;  %v231_v45 = vmul.f32 %v406_v12, %v652_v15  ;;  %v238_v46 = vmul.f32 %v406_v12, %v655_v19  ;;  %v239_v47 = vmul.f32 %v406_v12, %v658_v20 }
 0x1ac   :  { %v286_v48 = vmul.f32 %v688_v49, %v230_v44  ;;  %v287_v50 = vmul.f32 %v688_v49, %v231_v45  ;;  %v294_v51 = vmul.f32 %v688_v49, %v238_v46  ;;  %v295_v52 = vmul.f32 %v688_v49, %v239_v47 }
 0x1ae   :  { %v342_v58 = vadd.f32 %v334_v53, %v286_v48  ;;  %v343_v59 = vadd.f32 %v334_v53, %v287_v50  ;;  %v350_v60 = vadd.f32 %v334_v53, %v294_v51  ;;  %v351_v61 = vadd.f32 %v334_v53, %v295_v52 }
 0x1b0   :  { %v358_v62 = vmax.f32 %v342_v58, 0.0  ;;  %v359_v21 = vmax.f32 %v343_v59, 0.0  ;;  %v366_v15 = vmax.f32 %v350_v60, 0.0  ;;  %v367_v36 = vmax.f32 %v351_v61, 0.0 }
 0x1b2   :  { %374 = vst.msk [vmem:[%s773_s3 + $0x30] sm:$0xff] %vm30_vm0, %v358_v62  ;;  %375 = vst.msk [vmem:[%s773_s3 + $0x38] sm:$0xff] %vm30_vm0, %v359_v21 }
 0x1b3   :  { %382 = vst.msk [vmem:[%s773_s3 + $0x70] sm:$0xff] %vm30_vm0, %v366_v15  ;;  %383 = vst.msk [vmem:[%s773_s3 + $0x78] sm:$0xff] %vm30_vm0, %v367_v36 }

// kernel: _lambda_.18
= control target key start
LH: loop header
LB: loop body
LE: loop exit
PB: predicated region body
PF: predicated region fallthrough
CT: control target
= control target key end

     0   :  { %vm30_vm0 = vcmask 130048   ;;  %s770_s0 = inlined_call_operand.vmem [shape: f32[2,4,18,18], index: 0, kind: input, shape index: {}]   ;;  %s771_s1 = inlined_call_operand.vmem [shape: f32[1,4,1,1], index: 1, kind: input, shape index: {}]   ;;  %s772_s2 = inlined_call_operand.vmem [shape: f32[1,4,1,1], index: 2, kind: input, shape index: {}]   ;;  %s773_s3 = inlined_call_operand.vmem [shape: f32[2,4,16,16], index: 3, kind: output, shape index: {}]  }
   0x1   :  { %v431_v0 = vld [vmem:[%s770_s0] sm:$0xff]  ;;  %v436_v1 = vld [vmem:[%s770_s0 + $0x8] sm:$0xff]  ;;  %v457_v7 = vld [vmem:[%s770_s0 + $0x30] sm:$0xff] }
   0x2   :  { %v441_v2 = vld [vmem:[%s770_s0 + $0x60] sm:$0xff]  ;;  %v446_v3 = vld [vmem:[%s770_s0 + $0x68] sm:$0xff]  ;;  %v31_v4 = vsel %vm30_vm0, %v431_v0, 0.0  ;;  %v34_v6 = vsel %vm30_vm0, %v436_v1, 0.0  ;;  %v462_v8 = vld [vmem:[%s770_s0 + $0x38] sm:$0xff]  ;;  %v43_v13 = vsel %vm30_vm0, %v457_v7, 0.0 }
   0x3   :  { %v32_v5 = vsel %vm30_vm0, %v441_v2, 0.0  ;;  %v35_v10 = vsel %vm30_vm0, %v446_v3, 0.0  ;;  %v469_v11 = vld [vmem:[%s770_s0 + $0x90] sm:$0xff]  ;;  %v474_v12 = vld [vmem:[%s770_s0 + $0x98] sm:$0xff]  ;;  %v46_v14 = vsel %vm30_vm0, %v462_v8, 0.0  ;;  %v492_v19 = vld [vmem:[%s770_s0 + $0x20] sm:$0xff] }
   0x4   :  { %v33_v9 = vadd.f32 %v32_v5, %v31_v4  ;;  %v483_v15 = vld [vmem:[%s770_s0 + $0x18] sm:$0xff]  ;;  %v36_v16 = vadd.f32 %v35_v10, %v34_v6  ;;  %v44_v17 = vsel %vm30_vm0, %v469_v11, 0.0  ;;  %v47_v18 = vsel %vm30_vm0, %v474_v12, 0.0  ;;  %v502_v21 = vld [vmem:[%s770_s0 + $0x80] sm:$0xff]  ;;  %v512_v27 = vld [vmem:[%s770_s0 + $0x48] sm:$0xff] }
   0x5   :  { %v497_v20 = vld [vmem:[%s770_s0 + $0x78] sm:$0xff]  ;;  %v37_v22 = vsel %vm30_vm0, %v483_v15, 0.0  ;;  %v45_v24 = vadd.f32 %v44_v17, %v43_v13  ;;  %v48_v25 = vadd.f32 %v47_v18, %v46_v14  ;;  %v517_v28 = vld [vmem:[%s770_s0 + $0xa8] sm:$0xff]  ;;  %v40_v31 = vsel %vm30_vm0, %v492_v19, 0.0  ;;  %v527_v33 = vld [vmem:[%s770_s0 + $0x50] sm:$0xff] }
   0x6   :  { %v55_v23 = vsel %vm30_vm0, %v33_v9, 0.0  ;;  %v38_v26 = vsel %vm30_vm0, %v497_v20, 0.0  ;;  %v56_v29 = vsel %vm30_vm0, %v36_v16, 0.0  ;;  %v41_v32 = vsel %vm30_vm0, %v502_v21, 0.0  ;;  %v534_v38 = vld [vmem:[%s770_s0 + $0xb0] sm:$0xff] }
   0x7   :  { %v39_v30 = vadd.f32 %v38_v26, %v37_v22  ;;  %v57_v34 = vadd.f32 %v56_v29, %v55_v23  ;;  %v73_v35 = vsel %vm30_vm0, %v45_v24, 0.0  ;;  %v74_v36 = vsel %vm30_vm0, %v48_v25, 0.0 }
   0x8   :  { %v42_v37 = vadd.f32 %v41_v32, %v40_v31  ;;  %v75_v39 = vadd.f32 %v74_v36, %v73_v35  ;;  %v49_v41 = vsel %vm30_vm0, %v512_v27, 0.0  ;;  %v50_v42 = vsel %vm30_vm0, %v517_v28, 0.0 }
   0x9   :  { %v64_v40 = vsel %vm30_vm0, %v39_v30, 0.0  ;;  %v58_v43 = vrot.slane %v57_v34, 4  ;;  %v51_v45 = vadd.f32 %v50_v42, %v49_v41  ;;  %v52_v46 = vsel %vm30_vm0, %v527_v33, 0.0 }
   0xa   :  { %v65_v44 = vsel %vm30_vm0, %v42_v37, 0.0  ;;  %v76_v47 = vrot.slane %v75_v39, 4  ;;  %v53_v49 = vsel %vm30_vm0, %v534_v38, 0.0  ;;  %v407_v30 = vmov 0  }
   0xb   :  { %v66_v48 = vadd.f32 %v65_v44, %v64_v40  ;;  %v59_v50 = vadd.f32 %v58_v43, %v57_v34  ;;  %v54_v51 = vadd.f32 %v53_v49, %v52_v46  ;;  %v82_v52 = vsel %vm30_vm0, %v51_v45, 0.0  ;;  %398 = vset.pattern.permute.xlu1 %v407_v30  ;;  %397 = vset.pattern.permute.xlu0 %v407_v30 }
   0xc   :  { %v77_v53 = vadd.f32 %v76_v47, %v75_v39 }
   0xd   :  { %v67_v54 = vrot.slane %v66_v48, 4  ;;  %v60_v55 = vrot.slane %v59_v50, 2  ;;  %v83_v56 = vsel %vm30_vm0, %v54_v51, 0.0 }
   0xe   :  { %v78_v57 = vrot.slane %v77_v53, 2  ;;  %v84_v59 = vadd.f32 %v83_v56, %v82_v52 }
   0xf   :  { %v68_v58 = vadd.f32 %v67_v54, %v66_v48  ;;  %v61_v60 = vadd.f32 %v60_v55, %v59_v50 }
  0x10   :  { %v79_v61 = vadd.f32 %v78_v57, %v77_v53  ;;  %v85_v63 = vrot.slane %v84_v59, 4 }
  0x11   :  { %v69_v62 = vrot.slane %v68_v58, 2  ;;  %v62_v4 = vrot.slane %v61_v60, 1 }
  0x12   :  { %v80_v5 = vrot.slane %v79_v61, 1  ;;  %v86_v9 = vadd.f32 %v85_v63, %v84_v59 }
  0x13   :  { %v70_v6 = vadd.f32 %v69_v62, %v68_v58  ;;  %v63_v10 = vadd.f32 %v62_v4, %v61_v60 }
  0x14   :  { %v81_v13 = vadd.f32 %v80_v5, %v79_v61  ;;  %v87_v16 = vrot.slane %v86_v9, 2 }
  0x15   :  { %v71_v14 = vrot.slane %v70_v6, 1  ;;  %v91_v17 = vsel %vm30_vm0, %v63_v10, 0.0 }
  0x16   :  { %92 = vadd.xlane.f32.xlu0 %v91_v17  ;;  %v97_v18 = vsel %vm30_vm0, %v81_v13, 0.0  ;;  %v88_v23 = vadd.f32 %v87_v16, %v86_v9 }
  0x17   :  { %v72_v22 = vadd.f32 %v71_v14, %v70_v6  ;;  %98 = vadd.xlane.f32.xlu1 %v97_v18 }
  0x18   :  { %v89_v25 = vrot.slane %v88_v23, 1 }
  0x19   :  { %v94_v24 = vsel %vm30_vm0, %v72_v22, 0.0 }
  0x1a   :  { %95 = vadd.xlane.f32.xlu0 %v94_v24  ;;  %v90_v26 = vadd.f32 %v89_v25, %v88_v23 }
  0x1c   :  { %v100_v29 = vsel %vm30_vm0, %v90_v26, 0.0 }
  0x1d   :  { %101 = vadd.xlane.f32.xlu1 %v100_v29 }
  0xa3   :  { %v93_v31 = vpop.xlane.xlu0 %92 }
  0xa4   :  { %v104_v32 = vmul.f32 0.001953125, %v93_v31  ;;  %v99_v34 = vpop.xlane.xlu1 %98 }
  0xa5   :  { %v106_v35 = vmul.f32 0.001953125, %v99_v34 }
  0xa6   :  { %v553_v36 = vsub.f32 %v431_v0, %v104_v32  ;;  %v556_v37 = vsub.f32 %v436_v1, %v104_v32  ;;  %v559_v39 = vsub.f32 %v441_v2, %v104_v32  ;;  %v562_v40 = vsub.f32 %v446_v3, %v104_v32 }
  0xa7   :  { %v565_v41 = vsub.f32 %v457_v7, %v106_v35  ;;  %v568_v42 = vsub.f32 %v462_v8, %v106_v35  ;;  %v571_v43 = vsub.f32 %v469_v11, %v106_v35  ;;  %v574_v0 = vsub.f32 %v474_v12, %v106_v35  ;;  %v96_v1 = vpop.xlane.xlu0 %95 }
  0xa8   :  { %v124_v2 = vmul.f32 %v553_v36, %v553_v36  ;;  %v125_v3 = vmul.f32 %v556_v37, %v556_v37  ;;  %v132_v7 = vmul.f32 %v559_v39, %v559_v39  ;;  %v133_v8 = vmul.f32 %v562_v40, %v562_v40 }
  0xa9   :  { %v128_v11 = vmul.f32 %v565_v41, %v565_v41  ;;  %v129_v12 = vmul.f32 %v568_v42, %v568_v42  ;;  %v136_v44 = vmul.f32 %v571_v43, %v571_v43  ;;  %v137_v45 = vmul.f32 %v574_v0, %v574_v0 }
  0xaa   :  { %v105_v46 = vmul.f32 0.001953125, %v96_v1  ;;  %v140_v47 = vsel %vm30_vm0, %v124_v2, 0.0  ;;  %v141_v48 = vsel %vm30_vm0, %v132_v7, 0.0  ;;  %v143_v49 = vsel %vm30_vm0, %v125_v3, 0.0 }
  0xab   :  { %v142_v50 = vadd.f32 %v141_v48, %v140_v47  ;;  %v144_v51 = vsel %vm30_vm0, %v133_v8, 0.0  ;;  %v152_v52 = vsel %vm30_vm0, %v128_v11, 0.0  ;;  %v153_v53 = vsel %vm30_vm0, %v136_v44, 0.0 }
  0xac   :  { %v599_v54 = vsub.f32 %v483_v15, %v105_v46  ;;  %v602_v55 = vsub.f32 %v492_v19, %v105_v46  ;;  %v605_v56 = vsub.f32 %v497_v20, %v105_v46  ;;  %v608_v57 = vsub.f32 %v502_v21, %v105_v46 }
  0xad   :  { %v145_v58 = vadd.f32 %v144_v51, %v143_v49  ;;  %v164_v59 = vsel %vm30_vm0, %v142_v50, 0.0  ;;  %v154_v60 = vadd.f32 %v153_v53, %v152_v52  ;;  %v155_v61 = vsel %vm30_vm0, %v129_v12, 0.0  ;;  %v389_v51 = vld [vmem:[%s771_s1 + $0x1] ss:$0 sm:$0xff]  ;;  %v390_v52 = vld [vmem:[%s771_s1 + $0x2] ss:$0 sm:$0xff] }
  0xae   :  { %v126_v62 = vmul.f32 %v599_v54, %v599_v54  ;;  %v127_v15 = vmul.f32 %v602_v55, %v602_v55  ;;  %v134_v19 = vmul.f32 %v605_v56, %v605_v56  ;;  %v135_v20 = vmul.f32 %v608_v57, %v608_v57  ;;  %v388_v53 = vld [vmem:[%s771_s1] ss:$0 sm:$0xff] }
  0xaf   :  { %v165_v21 = vsel %vm30_vm0, %v145_v58, 0.0  ;;  %v156_v63 = vsel %vm30_vm0, %v137_v45, 0.0  ;;  %v182_v4 = vsel %vm30_vm0, %v154_v60, 0.0  ;;  %v102_v58 = vpop.xlane.xlu1 %101 }
  0xb0   :  { %v166_v5 = vadd.f32 %v165_v21, %v164_v59  ;;  %v157_v6 = vadd.f32 %v156_v63, %v155_v61  ;;  %v146_v9 = vsel %vm30_vm0, %v126_v62, 0.0  ;;  %v147_v10 = vsel %vm30_vm0, %v134_v19, 0.0  ;;  %v391_v59 = vld [vmem:[%s771_s1 + $0x3] ss:$0 sm:$0xff]  ;;  %v392_v61 = vld [vmem:[%s772_s2] ss:$0 sm:$0xff] }
  0xb1   :  { %v148_v13 = vadd.f32 %v147_v10, %v146_v9  ;;  %v149_v14 = vsel %vm30_vm0, %v127_v15, 0.0  ;;  %v150_v16 = vsel %vm30_vm0, %v135_v20, 0.0  ;;  %v107_v60 = vmul.f32 0.001953125, %v102_v58  ;;  %v393_v21 = vld [vmem:[%s772_s2 + $0x1] ss:$0 sm:$0xff] }
  0xb2   :  { %v167_v17 = vrot.slane %v166_v5, 4  ;;  %v183_v18 = vsel %vm30_vm0, %v157_v6, 0.0  ;;  %v151_v22 = vadd.f32 %v150_v16, %v149_v14 }
  0xb3   :  { %v184_v23 = vadd.f32 %v183_v18, %v182_v4  ;;  %v173_v24 = vsel %vm30_vm0, %v148_v13, 0.0  ;;  %v649_v62 = vsub.f32 %v512_v27, %v107_v60  ;;  %v652_v15 = vsub.f32 %v527_v33, %v107_v60 }
  0xb4   :  { %v168_v25 = vadd.f32 %v167_v17, %v166_v5  ;;  %v174_v26 = vsel %vm30_vm0, %v151_v22, 0.0  ;;  %v655_v19 = vsub.f32 %v517_v28, %v107_v60  ;;  %v658_v20 = vsub.f32 %v534_v38, %v107_v60  ;;  %v394_v38 = vld [vmem:[%s772_s2 + $0x2] ss:$0 sm:$0xff] }
  0xb5   :  { %v185_v29 = vrot.slane %v184_v23, 4  ;;  %v175_v30 = vadd.f32 %v174_v26, %v173_v24  ;;  %v130_v63 = vmul.f32 %v649_v62, %v649_v62  ;;  %v131_v27 = vmul.f32 %v652_v15, %v652_v15 }
  0xb6   :  { %v169_v31 = vrot.slane %v168_v25, 2  ;;  %v138_v33 = vmul.f32 %v655_v19, %v655_v19  ;;  %v139_v28 = vmul.f32 %v658_v20, %v658_v20 }
  0xb7   :  { %v186_v32 = vadd.f32 %v185_v29, %v184_v23  ;;  %v176_v34 = vrot.slane %v175_v30, 4  ;;  %v158_v4 = vsel %vm30_vm0, %v130_v63, 0.0  ;;  %v161_v6 = vsel %vm30_vm0, %v131_v27, 0.0 }
  0xb8   :  { %v170_v35 = vadd.f32 %v169_v31, %v168_v25  ;;  %v159_v5 = vsel %vm30_vm0, %v138_v33, 0.0  ;;  %v162_v9 = vsel %vm30_vm0, %v139_v28, 0.0 }
  0xb9   :  { %v187_v1 = vrot.slane %v186_v32, 2  ;;  %v177_v2 = vadd.f32 %v176_v34, %v175_v30  ;;  %v160_v10 = vadd.f32 %v159_v5, %v158_v4  ;;  %v163_v13 = vadd.f32 %v162_v9, %v161_v6  ;;  %v395_v30 = vld [vmem:[%s772_s2 + $0x3] ss:$0 sm:$0xff] }
  0xba   :  { %v171_v3 = vrot.slane %v170_v35, 1 }
  0xbb   :  { %v188_v7 = vadd.f32 %v187_v1, %v186_v32  ;;  %v178_v8 = vrot.slane %v177_v2, 2  ;;  %v191_v14 = vsel %vm30_vm0, %v160_v10, 0.0  ;;  %v192_v16 = vsel %vm30_vm0, %v163_v13, 0.0 }
  0xbc   :  { %v172_v11 = vadd.f32 %v171_v3, %v170_v35  ;;  %v193_v17 = vadd.f32 %v192_v16, %v191_v14 }
  0xbd   :  { %v189_v12 = vrot.slane %v188_v7, 1  ;;  %v179_v44 = vadd.f32 %v178_v8, %v177_v2 }
  0xbe   :  { %v200_v45 = vsel %vm30_vm0, %v172_v11, 0.0  ;;  %v194_v18 = vrot.slane %v193_v17, 4 }
  0xbf   :  { %201 = vadd.xlane.f32.xlu0 %v200_v45  ;;  %v190_v46 = vadd.f32 %v189_v12, %v188_v7  ;;  %v180_v47 = vrot.slane %v179_v44, 1 }
  0xc0   :  { %v195_v22 = vadd.f32 %v194_v18, %v193_v17 }
  0xc1   :  { %v206_v48 = vsel %vm30_vm0, %v190_v46, 0.0  ;;  %v181_v49 = vadd.f32 %v180_v47, %v179_v44 }
  0xc2   :  { %v196_v23 = vrot.slane %v195_v22, 2 }
  0xc3   :  { %207 = vadd.xlane.f32.xlu0 %v206_v48  ;;  %v203_v50 = vsel %vm30_vm0, %v181_v49, 0.0 }
  0xc4   :  { %204 = vadd.xlane.f32.xlu1 %v203_v50  ;;  %v197_v24 = vadd.f32 %v196_v23, %v195_v22 }
  0xc6   :  { %v198_v25 = vrot.slane %v197_v24, 1 }
  0xc8   :  { %v199_v26 = vadd.f32 %v198_v25, %v197_v24 }
  0xca   :  { %v209_v29 = vsel %vm30_vm0, %v199_v26, 0.0 }
  0xd5   :  { %269 = vperm.xlu1 %398, %v389_v51  }
  0xd9   :  { %273 = vperm.xlu1 %398, %v390_v52   ;;  %265 = vperm.xlu0 %397, %v388_v53  }
  0xdd   :  { %277 = vperm.xlu1 %398, %v391_v59  }
  0xe1   :  { %321 = vperm.xlu1 %398, %v392_v61  }
  0xe5   :  { %325 = vperm.xlu1 %398, %v393_v21  }
  0xe9   :  { %329 = vperm.xlu1 %398, %v394_v38  }
 0x10d   :  { %210 = vadd.xlane.f32.xlu1 %v209_v29 }
 0x11e   :  { %333 = vperm.xlu1 %398, %v395_v30  }
 0x14c   :  { %v202_v31 = vpop.xlane.xlu0 %201 }
 0x14d   :  { %v212_v32 = vmul.f32 0.001953125, %v202_v31 }
 0x14f   :  { %v216_v34 = vadd.f32 1e-05, %v212_v32 }
 0x150   :  { %v208_v35 = vpop.xlane.xlu0 %207 }
 0x151   :  { %399 = vrsqrt.f32 %v216_v34  ;;  %v205_v1 = vpop.xlane.xlu1 %204  ;;  %v214_v2 = vmul.f32 0.001953125, %v208_v35 }
 0x152   :  { %v213_v3 = vmul.f32 0.001953125, %v205_v1 }
 0x153   :  { %v218_v7 = vadd.f32 1e-05, %v214_v2 }
 0x154   :  { %v217_v8 = vadd.f32 1e-05, %v213_v3 }
 0x155   :  { %401 = vrsqrt.f32 %v218_v7  ;;  %v270_v11 = vpop.permute.xlu1 %269 }
 0x156   :  { %403 = vrsqrt.f32 %v217_v8 }
 0x158   :  { %v266_v50 = vpop.permute.xlu0 %265 }
 0x159   :  { %v274_v12 = vpop.permute.xlu1 %273 }
 0x15b   :  { %v400_v44 = vpop.eup %399 }
 0x15c   :  { %v224_v45 = vmul.f32 %v400_v44, %v553_v36  ;;  %v225_v46 = vmul.f32 %v400_v44, %v556_v37  ;;  %v232_v47 = vmul.f32 %v400_v44, %v559_v39  ;;  %v233_v48 = vmul.f32 %v400_v44, %v562_v40 }
 0x15d   :  { %v688_v49 = vpop.permute.xlu1 %277 }
 0x15e   :  { %v280_v53 = vmul.f32 %v266_v50, %v224_v45  ;;  %v281_v58 = vmul.f32 %v266_v50, %v225_v46  ;;  %v288_v59 = vmul.f32 %v266_v50, %v232_v47  ;;  %v289_v60 = vmul.f32 %v266_v50, %v233_v48 }
 0x15f   :  { %v402_v51 = vpop.eup %401 }
 0x160   :  { %v404_v52 = vpop.eup %403  ;;  %v228_v40 = vmul.f32 %v402_v51, %v565_v41  ;;  %v229_v63 = vmul.f32 %v402_v51, %v568_v42  ;;  %v236_v27 = vmul.f32 %v402_v51, %v571_v43  ;;  %v237_v33 = vmul.f32 %v402_v51, %v574_v0 }
 0x161   :  { %v226_v61 = vmul.f32 %v404_v52, %v599_v54  ;;  %v227_v21 = vmul.f32 %v404_v52, %v602_v55  ;;  %v234_v36 = vmul.f32 %v404_v52, %v605_v56  ;;  %v235_v37 = vmul.f32 %v404_v52, %v608_v57  ;;  %v322_v39 = vpop.permute.xlu1 %321 }
 0x162   :  { %v336_v54 = vadd.f32 %v322_v39, %v280_v53  ;;  %v337_v6 = vadd.f32 %v322_v39, %v281_v58  ;;  %v344_v55 = vadd.f32 %v322_v39, %v288_v59  ;;  %v345_v9 = vadd.f32 %v322_v39, %v289_v60 }
 0x163   :  { %v282_v28 = vmul.f32 %v270_v11, %v226_v61  ;;  %v283_v38 = vmul.f32 %v270_v11, %v227_v21  ;;  %v290_v4 = vmul.f32 %v270_v11, %v234_v36  ;;  %v291_v5 = vmul.f32 %v270_v11, %v235_v37 }
 0x164   :  { %v352_v10 = vmax.f32 %v336_v54, 0.0  ;;  %v353_v57 = vmax.f32 %v337_v6, 0.0  ;;  %v360_v13 = vmax.f32 %v344_v55, 0.0  ;;  %v361_v14 = vmax.f32 %v345_v9, 0.0 }
 0x165   :  { %v326_v56 = vpop.permute.xlu1 %325  ;;  %v284_v43 = vmul.f32 %v274_v12, %v228_v40  ;;  %v285_v18 = vmul.f32 %v274_v12, %v229_v63  ;;  %v292_v0 = vmul.f32 %v274_v12, %v236_v27  ;;  %v293_v22 = vmul.f32 %v274_v12, %v237_v33 }
 0x166   :  { %v338_v41 = vadd.f32 %v326_v56, %v282_v28  ;;  %v339_v16 = vadd.f32 %v326_v56, %v283_v38  ;;  %v346_v42 = vadd.f32 %v326_v56, %v290_v4  ;;  %v347_v17 = vadd.f32 %v326_v56, %v291_v5  ;;  %368 = vst.msk [vmem:[%s773_s3] sm:$0xff] %vm30_vm0, %v352_v10 }
 0x167   :  { %369 = vst.msk [vmem:[%s773_s3 + $0x8] sm:$0xff] %vm30_vm0, %v353_v57  ;;  %376 = vst.msk [vmem:[%s773_s3 + $0x40] sm:$0xff] %vm30_vm0, %v360_v13 }
 0x168   :  { %377 = vst.msk [vmem:[%s773_s3 + $0x48] sm:$0xff] %vm30_vm0, %v361_v14  ;;  %v354_v23 = vmax.f32 %v338_v41, 0.0  ;;  %v355_v24 = vmax.f32 %v339_v16, 0.0  ;;  %v362_v25 = vmax.f32 %v346_v42, 0.0  ;;  %v363_v26 = vmax.f32 %v347_v17, 0.0 }
 0x169   :  { %v330_v29 = vpop.permute.xlu1 %329 }
 0x16a   :  { %v340_v30 = vadd.f32 %v330_v29, %v284_v43  ;;  %v341_v31 = vadd.f32 %v330_v29, %v285_v18  ;;  %v348_v32 = vadd.f32 %v330_v29, %v292_v0  ;;  %v349_v34 = vadd.f32 %v330_v29, %v293_v22  ;;  %370 = vst.msk [vmem:[%s773_s3 + $0x10] sm:$0xff] %vm30_vm0, %v354_v23 }
 0x16b   :  { %371 = vst.msk [vmem:[%s773_s3 + $0x18] sm:$0xff] %vm30_vm0, %v355_v24  ;;  %378 = vst.msk [vmem:[%s773_s3 + $0x50] sm:$0xff] %vm30_vm0, %v362_v25 }
 0x16c   :  { %379 = vst.msk [vmem:[%s773_s3 + $0x58] sm:$0xff] %vm30_vm0, %v363_v26  ;;  %v356_v35 = vmax.f32 %v340_v30, 0.0  ;;  %v357_v1 = vmax.f32 %v341_v31, 0.0  ;;  %v364_v2 = vmax.f32 %v348_v32, 0.0  ;;  %v365_v3 = vmax.f32 %v349_v34, 0.0 }
 0x16e   :  { %372 = vst.msk [vmem:[%s773_s3 + $0x20] sm:$0xff] %vm30_vm0, %v356_v35  ;;  %373 = vst.msk [vmem:[%s773_s3 + $0x28] sm:$0xff] %vm30_vm0, %v357_v1 }
 0x16f   :  { %380 = vst.msk [vmem:[%s773_s3 + $0x60] sm:$0xff] %vm30_vm0, %v364_v2  ;;  %381 = vst.msk [vmem:[%s773_s3 + $0x68] sm:$0xff] %vm30_vm0, %v365_v3 }
 0x19a   :  { %v211_v7 = vpop.xlane.xlu1 %210 }
 0x19b   :  { %v215_v8 = vmul.f32 0.001953125, %v211_v7 }
 0x19d   :  { %v219_v11 = vadd.f32 1e-05, %v215_v8 }
 0x19e   :  { %v334_v53 = vpop.permute.xlu1 %333 }
 0x19f   :  { %405 = vrsqrt.f32 %v219_v11 }
 0x1a9   :  { %v406_v12 = vpop.eup %405 }
 0x1aa   :  { %v230_v44 = vmul.f32 %v406_v12, %v649_v62  ;;  %v231_v45 = vmul.f32 %v406_v12, %v652_v15  ;;  %v238_v46 = vmul.f32 %v406_v12, %v655_v19  ;;  %v239_v47 = vmul.f32 %v406_v12, %v658_v20 }
 0x1ac   :  { %v286_v48 = vmul.f32 %v688_v49, %v230_v44  ;;  %v287_v50 = vmul.f32 %v688_v49, %v231_v45  ;;  %v294_v51 = vmul.f32 %v688_v49, %v238_v46  ;;  %v295_v52 = vmul.f32 %v688_v49, %v239_v47 }
 0x1ae   :  { %v342_v58 = vadd.f32 %v334_v53, %v286_v48  ;;  %v343_v59 = vadd.f32 %v334_v53, %v287_v50  ;;  %v350_v60 = vadd.f32 %v334_v53, %v294_v51  ;;  %v351_v61 = vadd.f32 %v334_v53, %v295_v52 }
 0x1b0   :  { %v358_v62 = vmax.f32 %v342_v58, 0.0  ;;  %v359_v21 = vmax.f32 %v343_v59, 0.0  ;;  %v366_v15 = vmax.f32 %v350_v60, 0.0  ;;  %v367_v36 = vmax.f32 %v351_v61, 0.0 }
 0x1b2   :  { %374 = vst.msk [vmem:[%s773_s3 + $0x30] sm:$0xff] %vm30_vm0, %v358_v62  ;;  %375 = vst.msk [vmem:[%s773_s3 + $0x38] sm:$0xff] %vm30_vm0, %v359_v21 }
 0x1b3   :  { %382 = vst.msk [vmem:[%s773_s3 + $0x70] sm:$0xff] %vm30_vm0, %v366_v15  ;;  %383 = vst.msk [vmem:[%s773_s3 + $0x78] sm:$0xff] %vm30_vm0, %v367_v36 }

// kernel: reverse.32
= control target key start
LH: loop header
LB: loop body
LE: loop exit
PB: predicated region body
PF: predicated region fallthrough
CT: control target
= control target key end

     0   :  { %v2_v0 = vlaneseq  ;;  %s378_s0 = inlined_call_operand.vmem [shape: f32[8,4,384], index: 0, kind: input, shape index: {}]   ;;  %s379_s1 = inlined_call_operand.vmem [shape: f32[8,4,384], index: 1, kind: output, shape index: {}]  }
   0x2   :  { %v334_v1 = vsub.s32 127, %v2_v0 }
   0x4   :  { %4 = vset.pattern.permute.xlu0 %v334_v1 }
   0x5   :  { %s337_s6 = smov 0   ;;  %s339_s7 = smov 0  }
   0x6   :  { %s341_s8 = smov 0  }
   0x7 LB: > { %s257_s9 = sadd.s32 4294967295, %s322_s8   ;;  %s22_s10 = sadd.s32 1, %s318_s7  ;;  %s322_s8 = sphi %s341_s8, %s10_s8   ;;  %s318_s7 = sphi %s339_s7, %s381_s7   ;;  %s314_s6 = sphi %s337_s6, %s380_s6  }
   0x8   : > { %p23_p0 = scmp.ge.s32.totalorder %s22_s10, 3  ;;  %p259_p1 = scmp.ge.s32.totalorder %s322_s8, 3 }
   0x9   : > { %s45_s11 = sand.u32 (!%p259_p1), 1, %s322_s8   ;;  %s48_s12 = ssub.s32 (!%p259_p1), 2, %s318_s7 }
   0xa   : > { %s383_s10 = smov (%p23_p0, %s22_s10), 0  ;;  %43 = sbr.rel (%p259_p1) target bundleno = 17 (0x11), region = 16 }
   0xb   : > { %s260_s13 = sshll.u32 (!%p259_p1), %s45_s11, 5  ;;  %s261_s14 = sshll.u32 (!%p259_p1), %s48_s12, 3 }
   0xc   : > { %s55_s17 = scalar_lea.vmem (!%p259_p1), %s378_s0, %s261_s14  ;;  %s47_s18 = scalar_lea.vmem (!%p259_p1), [#allocation0], %s260_s13 }
   0xd   : > { %v89_v2 = vld [vmem:[%s55_s17] sm:$0xff] (!%p259_p1)  ;;  %v91_v3 = vld [vmem:[%s55_s17 + $0x18] sm:$0xff] (!%p259_p1)  ;;  %v93_v4 = vld [vmem:[%s55_s17 + $0x30] sm:$0xff] (!%p259_p1) }
   0xe   : > { %90 = vst [vmem:[%s47_s18] sm:$0xff] (!%p259_p1), %v89_v2  ;;  %92 = vst [vmem:[%s47_s18 + $0x8] sm:$0xff] (!%p259_p1), %v91_v3  ;;  %v95_v5 = vld [vmem:[%s55_s17 + $0x48] sm:$0xff] (!%p259_p1) }
   0xf   : > { %94 = vst [vmem:[%s47_s18 + $0x10] sm:$0xff] (!%p259_p1), %v93_v4  ;;  %96 = vst [vmem:[%s47_s18 + $0x18] sm:$0xff] (!%p259_p1), %v95_v5 }
  0x11 PF: > { %p262_p2 = scmp.ge.s32.totalorder %s322_s8, 1  ;;  %p101_p3 = scmp.lt.s32.totalorder %s322_s8, 4 }
  0x13   : > { %p102_p4 = pnand %p262_p2, %p101_p3 }
  0x14   : > { %299 = vset.pattern.permute.xlu1 (!%p102_p4), %v334_v1  ;;  %s108_s19 = sand.u32 (!%p102_p4), 1, %s257_s9   ;;  %s272_s22 = sshll.u32 (!%p102_p4), %s314_s6, 3 }
  0x15   : > { %105 = sbr.rel (%p102_p4) target bundleno = 157 (0x9d), region = 54  ;;  %s263_s20 = sshll.u32 (!%p102_p4), %s108_s19, 5 }
  0x16   : > { %s110_s21 = scalar_lea.vmem (!%p102_p4), [#allocation0], %s263_s20  ;;  %s154_s25 = scalar_lea.vmem (!%p102_p4), %s379_s1, %s272_s22 }
  0x17   : > { %v267_v6 = vld [vmem:[%s110_s21 + $0x10] sm:$0xff] (!%p102_p4)  ;;  %v122_v7 = vld [vmem:[%s110_s21] sm:$0xff] (!%p102_p4)  ;;  %v269_v8 = vld [vmem:[%s110_s21 + $0x18] sm:$0xff] (!%p102_p4) }
  0x18   : > { %135 = vperm.xlu1 (!%p102_p4), %299, %v267_v6   ;;  %123 = vperm.xlu0 (!%p102_p4), %4, %v122_v7   ;;  %v265_v9 = vld [vmem:[%s110_s21 + $0x8] sm:$0xff] (!%p102_p4) }
  0x1c   : > { %141 = vperm.xlu1 %299, %v269_v8   ;;  %129 = vperm.xlu0 %4, %v265_v9  }
  0x97   : > { %v136_v10 = vpop.permute.xlu1 %135  ;;  %v124_v11 = vpop.permute.xlu0 %123 }
  0x98   : > { %193 = vst [vmem:[%s154_s25 + $0x30] sm:$0xff] %v136_v10  ;;  %189 = vst [vmem:[%s154_s25] sm:$0xff] %v124_v11 }
  0x9b   : > { %v142_v12 = vpop.permute.xlu1 %141  ;;  %v130_v13 = vpop.permute.xlu0 %129 }
  0x9c   : > { %195 = vst [vmem:[%s154_s25 + $0x48] sm:$0xff] %v142_v12  ;;  %191 = vst [vmem:[%s154_s25 + $0x18] sm:$0xff] %v130_v13 }
  0x9d PF: > { %s10_s8 = sadd.s32 1, %s322_s8   ;;  %s380_s6 = smov %s318_s7 }
  0x9e   : > { %p7_p5 = scmp.ge.s32.totalorder %s10_s8, 5   ;;  %s381_s7 = smov %s383_s10 }
  0xa0   :  { %9 = sbr.rel (!%p7_p5) target bundleno = 7 (0x7), region = 124 }

// kernel: _lambda_.13
= control target key start
LH: loop header
LB: loop body
LE: loop exit
PB: predicated region body
PF: predicated region fallthrough
CT: control target
= control target key end

     0   :  { %s788_s21 = smov 0   ;;  %s1007_s0 = inlined_call_operand.vmem [shape: f32[2,4,256], index: 0, kind: input, shape index: {}]   ;;  %s1008_s1 = inlined_call_operand.vmem [shape: f32[2,4,256], index: 1, kind: input, shape index: {}]   ;;  %s1009_s2 = inlined_call_operand.vmem [shape: f32[4,8,256], index: 2, kind: input, shape index: {}]   ;;  %s1010_s3 = inlined_call_operand.vmem [shape: f32[4,8,256], index: 3, kind: input, shape index: {}]   ;;  %s1011_s4 = inlined_call_operand.vmem [shape: f32[4,8,256], index: 4, kind: input, shape index: {}]   ;;  %s1012_s5 = inlined_call_operand.vmem [shape: f32[2,8,256], index: 5, kind: output, shape index: {0}]   ;;  %s1013_s6 = inlined_call_operand.vmem [shape: f32[2,8,256], index: 6, kind: output, shape index: {1}]  }
   0x1 LB: > { %s700_s22 = sadd.s32 4294967295, %s751_s21   ;;  %p704_p0 = scmp.ge.s32.totalorder %s751_s21, 1  ;;  %s751_s21 = sphi %s788_s21, %s17_s21  }
   0x2   : > { %p225_p1 = scmp.lt.s32.totalorder %s751_s21, 3 }
   0x4   : > { %p226_p2 = pnand %p704_p0, %p225_p1 }
   0x5   : > { %p265_p3 = scmp.lt.s32.totalorder (!%p226_p2), %s700_s22, 1  ;;  %v299_v0 = vlaneseq (!%p226_p2)  ;;  %v294_v19 = vld [vmem:[%s1010_s3] sm:$0xff] (!%p226_p2)  ;;  %v715_v20 = vld [vmem:[%s1010_s3 + $0x10] sm:$0xff] (!%p226_p2)  ;;  %v295_v47 = vld [vmem:[%s1010_s3 + $0x8] sm:$0xff] (!%p226_p2) }
   0x6   : > { %229 = sbr.rel (%p226_p2) target bundleno = 53 (0x35), region = 40  ;;  %v721_v29 = vld [vmem:[%s1010_s3 + $0x20] sm:$0xff] (!%p226_p2)  ;;  %v727_v30 = vld [vmem:[%s1010_s3 + $0x30] sm:$0xff] (!%p226_p2)  ;;  %v716_v52 = vld [vmem:[%s1010_s3 + $0x18] sm:$0xff] (!%p226_p2) }
   0x7   : > { %v300_v1 = vshrl.u32 (!%p226_p2), %v299_v0, 7  ;;  %v292_v31 = vld [vmem:[%s1009_s2] sm:$0xff] (!%p226_p2)  ;;  %v713_v32 = vld [vmem:[%s1009_s2 + $0x10] sm:$0xff] (!%p226_p2)  ;;  %v293_v55 = vld [vmem:[%s1009_s2 + $0x8] sm:$0xff] (!%p226_p2) }
   0x8   : > { %v719_v41 = vld [vmem:[%s1009_s2 + $0x20] sm:$0xff] (!%p226_p2)  ;;  %v725_v42 = vld [vmem:[%s1009_s2 + $0x30] sm:$0xff] (!%p226_p2)  ;;  %v714_v62 = vld [vmem:[%s1009_s2 + $0x18] sm:$0xff] (!%p226_p2) }
   0x9   : > { %v805_v5 = vsub.s32 (!%p226_p2), 0, %v300_v1  ;;  %v807_v6 = vsub.s32 (!%p226_p2), 1, %v300_v1  ;;  %v809_v7 = vsub.s32 (!%p226_p2), 2, %v300_v1  ;;  %v811_v8 = vsub.s32 (!%p226_p2), 3, %v300_v1 }
   0xa   : > { %v813_v9 = vsub.s32 (!%p226_p2), 4, %v300_v1  ;;  %v815_v10 = vsub.s32 (!%p226_p2), 5, %v300_v1  ;;  %v817_v11 = vsub.s32 (!%p226_p2), 6, %v300_v1  ;;  %v823_v14 = vsub.s32 (!%p226_p2), 7, %v300_v1 }
   0xd   : > { %s1015_s22 = smov (!%p265_p3, %s700_s22), 1 }
   0xe   : > { %s733_s23 = sshll.u32 %s1015_s22, 3  ;;  %s735_s10 = sshll.u32 %s1015_s22, 4 }
   0xf   : > { %s269_s26 = scalar_lea.vmem %s1007_s0, %s733_s23  ;;  %s274_s29 = scalar_lea.vmem %s1008_s1, %s733_s23 }
  0x10   : > { %v285_v2 = vld [vmem:[%s269_s26] sm:$0xff]  ;;  %s946_s23 = scalar_lea.vmem %s1012_s5, %s735_s10  ;;  %s284_s17 = scalar_lea.vmem %s1013_s6, %s735_s10 }
  0x11   : > { %v286_v3 = vld [vmem:[%s274_s29] sm:$0xff]  ;;  %v287_v4 = vand.u32 2147483647, %v285_v2 }
  0x13   : > { %vm288_vm0 = vcmp.ge.f32.partialorder %v287_v4, 0.5 }
  0x14   : > { %v819_v12 = vsel %vm288_vm0, %v285_v2, 0.0  ;;  %v821_v13 = vsel %vm288_vm0, %v286_v3, 0.0  ;;  %v722_v3 = vld [vmem:[%s1010_s3 + $0x28] sm:$0xff] }
  0x15   : > { %v827_v15 = vadd.f32 %v821_v13, %v819_v12  ;;  %v323_v16 = vrot.slane %v821_v13, %v805_v5  ;;  %v397_v17 = vrot.slane %v821_v13, %v807_v6  ;;  %v474_v18 = vrot.slane %v821_v13, %v809_v7 }
  0x16   : > { %v551_v21 = vrot.slane %v821_v13, %v811_v8  ;;  %v327_v22 = vrot.slane %v821_v13, %v813_v9  ;;  %v401_v23 = vrot.slane %v821_v13, %v815_v10  ;;  %v478_v24 = vrot.slane %v821_v13, %v817_v11 }
  0x17   : > { %v302_v25 = vrot.slane %v827_v15, %v805_v5  ;;  %v333_v26 = vrot.slane %v323_v16, %v805_v5  ;;  %v377_v27 = vrot.slane %v827_v15, %v807_v6  ;;  %v407_v28 = vrot.slane %v397_v17, %v807_v6 }
  0x18   : > { %v454_v33 = vrot.slane %v827_v15, %v809_v7  ;;  %v484_v34 = vrot.slane %v474_v18, %v809_v7  ;;  %v531_v35 = vrot.slane %v827_v15, %v811_v8  ;;  %v561_v36 = vrot.slane %v551_v21, %v811_v8 }
  0x19   : > { %v312_v37 = vrot.slane %v302_v25, %v805_v5  ;;  %v338_v38 = vmul.f32 %v333_v26, %v294_v19  ;;  %v387_v39 = vrot.slane %v377_v27, %v807_v6  ;;  %v412_v40 = vmul.f32 %v715_v20, %v407_v28  ;;  %v720_v20 = vld [vmem:[%s1009_s2 + $0x28] sm:$0xff]  ;;  %v726_v28 = vld [vmem:[%s1009_s2 + $0x38] sm:$0xff] }
  0x1a   : > { %v464_v43 = vrot.slane %v454_v33, %v809_v7  ;;  %v489_v44 = vmul.f32 %v721_v29, %v484_v34  ;;  %v541_v45 = vrot.slane %v531_v35, %v811_v8  ;;  %v566_v46 = vmul.f32 %v727_v30, %v561_v36 }
  0x1b   : > { %v317_v48 = vmul.f32 %v312_v37, %v292_v31  ;;  %v886_v49 = vmul.f32 %v713_v32, %v387_v39  ;;  %v306_v50 = vrot.slane %v827_v15, %v813_v9  ;;  %v337_v51 = vrot.slane %v327_v22, %v805_v5 }
  0x1c   : > { %v894_v53 = vmul.f32 %v719_v41, %v464_v43  ;;  %v896_v54 = vmul.f32 %v725_v42, %v541_v45  ;;  %v381_v56 = vrot.slane %v827_v15, %v815_v10  ;;  %v411_v57 = vrot.slane %v401_v23, %v807_v6  ;;  %v717_v41 = vld [vmem:[%s1011_s4 + $0x10] sm:$0xff]  ;;  %v723_v42 = vld [vmem:[%s1011_s4 + $0x20] sm:$0xff] }
  0x1d   : > { %v340_v58 = vsub.f32 %v317_v48, %v338_v38  ;;  %v414_v59 = vsub.f32 %v886_v49, %v412_v40  ;;  %v316_v60 = vrot.slane %v306_v50, %v805_v5  ;;  %v339_v61 = vmul.f32 %v337_v51, %v295_v47  ;;  %v729_v51 = vld [vmem:[%s1011_s4 + $0x30] sm:$0xff] }
  0x1e   : > { %v491_v63 = vsub.f32 %v894_v53, %v489_v44  ;;  %v568_v0 = vsub.f32 %v896_v54, %v566_v46  ;;  %v391_v1 = vrot.slane %v381_v56, %v807_v6  ;;  %v413_v2 = vmul.f32 %v716_v52, %v411_v57 }
  0x1f   : > { %v438_v4 = vadd.f32 %v414_v59, %v340_v58  ;;  %v916_v16 = vmul.f32 %v316_v60, %v293_v55  ;;  %v458_v17 = vrot.slane %v827_v15, %v817_v11  ;;  %v488_v18 = vrot.slane %v478_v24, %v809_v7  ;;  %v297_v60 = vld [vmem:[%s1011_s4 + $0x8] sm:$0xff] }
  0x20   : > { %v393_v19 = vmul.f32 %v714_v62, %v391_v1  ;;  %v535_v21 = vrot.slane %v827_v15, %v823_v14  ;;  %v555_v22 = vrot.slane %v821_v13, %v823_v14  ;;  %v346_v23 = vrot.slane %v819_v12, %v805_v5  ;;  %v728_v15 = vld [vmem:[%s1010_s3 + $0x38] sm:$0xff]  ;;  %v296_v13 = vld [vmem:[%s1011_s4] sm:$0xff] }
  0x21   : > { %v515_v25 = vadd.f32 %v491_v63, %v438_v4  ;;  %v341_v26 = vsub.f32 %v916_v16, %v339_v61  ;;  %v468_v27 = vrot.slane %v458_v17, %v809_v7  ;;  %v490_v24 = vmul.f32 %v722_v3, %v488_v18  ;;  %v724_v3 = vld [vmem:[%s1011_s4 + $0x28] sm:$0xff] }
  0x22   : > { %v415_v29 = vsub.f32 %v393_v19, %v413_v2  ;;  %v545_v30 = vrot.slane %v535_v21, %v811_v8  ;;  %v565_v31 = vrot.slane %v555_v22, %v811_v8  ;;  %v356_v32 = vrot.slane %v346_v23, %v805_v5 }
  0x23   : > { %v592_v33 = vadd.f32 %v568_v0, %v515_v25  ;;  %v470_v34 = vmul.f32 %v720_v20, %v468_v27  ;;  %v419_v35 = vrot.slane %v819_v12, %v807_v6  ;;  %v496_v36 = vrot.slane %v819_v12, %v809_v7 }
  0x24   : > { %v439_v37 = vadd.f32 %v415_v29, %v341_v26  ;;  %v547_v38 = vmul.f32 %v726_v28, %v545_v30  ;;  %v567_v39 = vmul.f32 %v728_v15, %v565_v31  ;;  %v361_v40 = vmul.f32 %v356_v32, %v296_v13 }
  0x25   : > { %596 = vst [vmem:[%s946_s23] sm:$0xff] %v592_v33  ;;  %v492_v43 = vsub.f32 %v470_v34, %v490_v24  ;;  %v429_v44 = vrot.slane %v419_v35, %v807_v6  ;;  %v506_v45 = vrot.slane %v496_v36, %v809_v7  ;;  %v573_v46 = vrot.slane %v819_v12, %v811_v8 }
  0x26   : > { %v569_v47 = vsub.f32 %v547_v38, %v567_v39  ;;  %v363_v50 = vadd.f32 %v361_v40, %v317_v48  ;;  %v350_v52 = vrot.slane %v819_v12, %v813_v9  ;;  %v423_v55 = vrot.slane %v819_v12, %v815_v10  ;;  %v718_v48 = vld [vmem:[%s1011_s4 + $0x18] sm:$0xff] }
  0x27   : > { %v516_v56 = vadd.f32 %v492_v43, %v439_v37  ;;  %v434_v57 = vmul.f32 %v717_v41, %v429_v44  ;;  %v511_v58 = vmul.f32 %v723_v42, %v506_v45  ;;  %v583_v59 = vrot.slane %v573_v46, %v811_v8 }
  0x28   : > { %v360_v61 = vrot.slane %v350_v52, %v805_v5  ;;  %v433_v9 = vrot.slane %v423_v55, %v807_v6  ;;  %v500_v10 = vrot.slane %v819_v12, %v817_v11  ;;  %v577_v62 = vrot.slane %v819_v12, %v823_v14  ;;  %v730_v5 = vld [vmem:[%s1011_s4 + $0x38] sm:$0xff] }
  0x29   : > { %v593_v63 = vadd.f32 %v569_v47, %v516_v56  ;;  %v436_v0 = vadd.f32 %v434_v57, %v886_v49  ;;  %v513_v1 = vadd.f32 %v511_v58, %v894_v53  ;;  %v588_v2 = vmul.f32 %v729_v51, %v583_v59 }
  0x2a   : > { %v362_v6 = vmul.f32 %v360_v61, %v297_v60  ;;  %v435_v11 = vmul.f32 %v718_v48, %v433_v9  ;;  %v510_v4 = vrot.slane %v500_v10, %v809_v7  ;;  %v587_v12 = vrot.slane %v577_v62, %v811_v8 }
  0x2b   : > { %597 = vst [vmem:[%s946_s23 + $0x8] sm:$0xff] %v593_v63  ;;  %v440_v14 = vadd.f32 %v436_v0, %v363_v50  ;;  %v590_v49 = vadd.f32 %v588_v2, %v896_v54 }
  0x2c   : > { %v364_v53 = vadd.f32 %v362_v6, %v916_v16  ;;  %v437_v17 = vadd.f32 %v435_v11, %v393_v19  ;;  %v512_v18 = vmul.f32 %v724_v3, %v510_v4  ;;  %v589_v20 = vmul.f32 %v730_v5, %v587_v12 }
  0x2d   : > { %v517_v21 = vadd.f32 %v513_v1, %v440_v14 }
  0x2e   : > { %v441_v22 = vadd.f32 %v437_v17, %v364_v53  ;;  %v514_v23 = vadd.f32 %v512_v18, %v470_v34  ;;  %v591_v7 = vadd.f32 %v589_v20, %v547_v38 }
  0x2f   : > { %v594_v25 = vadd.f32 %v590_v49, %v517_v21 }
  0x30   : > { %v518_v8 = vadd.f32 %v514_v23, %v441_v22 }
  0x31   : > { %598 = vst [vmem:[%s284_s17] sm:$0xff] %v594_v25 }
  0x32   : > { %v595_v26 = vadd.f32 %v591_v7, %v518_v8 }
  0x34   : > { %599 = vst [vmem:[%s284_s17 + $0x8] sm:$0xff] %v595_v26 }
  0x35 PF: > { %s17_s21 = sadd.s32 1, %s751_s21  }
  0x36   : > { %p14_p4 = scmp.ge.s32.totalorder %s17_s21, 4  }
  0x38   :  { %16 = sbr.rel (!%p14_p4) target bundleno = 1 (0x1), region = 94 }

// kernel: reverse.33
= control target key start
LH: loop header
LB: loop body
LE: loop exit
PB: predicated region body
PF: predicated region fallthrough
CT: control target
= control target key end

     0   :  { %v2_v0 = vlaneseq  ;;  %s341_s0 = inlined_call_operand.vmem [shape: f32[2,8,256], index: 0, kind: input, shape index: {}]   ;;  %s342_s1 = inlined_call_operand.vmem [shape: f32[2,8,256], index: 1, kind: output, shape index: {}]  }
   0x2   :  { %v3_v1 = vsub.s32 127, %v2_v0 }
   0x4   :  { %4 = vset.pattern.permute.xlu0 %v3_v1 }
   0x5   :  { %s301_s6 = smov 0   ;;  %s303_s7 = smov 0  }
   0x6   :  { %s305_s8 = smov 0  }
   0x7 LB: > { %s229_s9 = sadd.s32 4294967295, %s289_s8   ;;  %s22_s10 = sadd.s32 1, %s285_s7  ;;  %s289_s8 = sphi %s305_s8, %s10_s8   ;;  %s285_s7 = sphi %s303_s7, %s344_s7   ;;  %s281_s6 = sphi %s301_s6, %s343_s6  }
   0x8   : > { %p23_p0 = scmp.ge.s32.totalorder %s22_s10, 2  ;;  %p231_p1 = scmp.ge.s32.totalorder %s289_s8, 2 }
   0x9   : > { %s45_s11 = sand.u32 (!%p231_p1), 1, %s289_s8   ;;  %s48_s12 = ssub.s32 (!%p231_p1), 1, %s285_s7 }
   0xa   : > { %s346_s10 = smov (%p23_p0, %s22_s10), 0  ;;  %43 = sbr.rel (%p231_p1) target bundleno = 17 (0x11), region = 16 }
   0xb   : > { %s232_s13 = sshll.u32 (!%p231_p1), %s45_s11, 4  ;;  %s233_s14 = sshll.u32 (!%p231_p1), %s48_s12, 3 }
   0xc   : > { %s55_s17 = scalar_lea.vmem (!%p231_p1), %s341_s0, %s233_s14  ;;  %s47_s18 = scalar_lea.vmem (!%p231_p1), [#allocation0], %s232_s13 }
   0xd   : > { %v85_v2 = vld [vmem:[%s55_s17] sm:$0xff] (!%p231_p1)  ;;  %v87_v3 = vld [vmem:[%s55_s17 + $0x10] sm:$0xff] (!%p231_p1) }
   0xe   : > { %86 = vst [vmem:[%s47_s18] sm:$0xff] (!%p231_p1), %v85_v2  ;;  %88 = vst [vmem:[%s47_s18 + $0x8] sm:$0xff] (!%p231_p1), %v87_v3 }
  0x11 PF: > { %p234_p2 = scmp.ge.s32.totalorder %s289_s8, 1  ;;  %p93_p3 = scmp.lt.s32.totalorder %s289_s8, 3 }
  0x13   : > { %p94_p4 = pnand %p234_p2, %p93_p3 }
  0x14   : > { %s100_s19 = sand.u32 (!%p94_p4), 1, %s229_s9   ;;  %s240_s22 = sshll.u32 (!%p94_p4), %s281_s6, 3 }
  0x15   : > { %97 = sbr.rel (%p94_p4) target bundleno = 157 (0x9d), region = 54  ;;  %s235_s20 = sshll.u32 (!%p94_p4), %s100_s19, 4 }
  0x16   : > { %s102_s21 = scalar_lea.vmem (!%p94_p4), [#allocation0], %s235_s20  ;;  %s134_s25 = scalar_lea.vmem (!%p94_p4), %s342_s1, %s240_s22 }
  0x17   : > { %v114_v4 = vld [vmem:[%s102_s21] sm:$0xff] (!%p94_p4)  ;;  %v237_v5 = vld [vmem:[%s102_s21 + $0x8] sm:$0xff] (!%p94_p4) }
  0x18   : > { %115 = vperm.xlu0 (!%p94_p4), %4, %v114_v4  }
  0x1c   : > { %121 = vperm.xlu0 %4, %v237_v5  }
  0x97   : > { %v116_v6 = vpop.permute.xlu0 %115 }
  0x98   : > { %165 = vst [vmem:[%s134_s25] sm:$0xff] %v116_v6 }
  0x9b   : > { %v122_v7 = vpop.permute.xlu0 %121 }
  0x9c   : > { %167 = vst [vmem:[%s134_s25 + $0x10] sm:$0xff] %v122_v7 }
  0x9d PF: > { %s10_s8 = sadd.s32 1, %s289_s8   ;;  %s343_s6 = smov %s285_s7 }
  0x9e   : > { %p7_p5 = scmp.ge.s32.totalorder %s10_s8, 4   ;;  %s344_s7 = smov %s346_s10 }
  0xa0   :  { %9 = sbr.rel (!%p7_p5) target bundleno = 7 (0x7), region = 120 }

// kernel: _lambda_.14
= control target key start
LH: loop header
LB: loop body
LE: loop exit
PB: predicated region body
PF: predicated region fallthrough
CT: control target
= control target key end

     0   :  { %vm46_vm0 = vcmask 130048   ;;  %v791_v3 = vmov 0   ;;  %s1589_s0 = inlined_call_operand.vmem [shape: f32[2,8,18,18], index: 0, kind: input, shape index: {}]   ;;  %s1590_s1 = inlined_call_operand.vmem [shape: f32[1,8,1,1], index: 1, kind: input, shape index: {}]   ;;  %s1591_s2 = inlined_call_operand.vmem [shape: f32[1,8,1,1], index: 2, kind: input, shape index: {}]   ;;  %s1592_s3 = inlined_call_operand.vmem [shape: f32[2,8,16,16], index: 3, kind: output, shape index: {}]  }
   0x1   :  { %v815_v0 = vld [vmem:[%s1589_s0 + $0x30] sm:$0xff]  ;;  %v820_v1 = vld [vmem:[%s1589_s0 + $0x38] sm:$0xff]  ;;  %774 = vset.pattern.permute.xlu1 %v791_v3  ;;  %773 = vset.pattern.permute.xlu0 %v791_v3  ;;  %v841_v8 = vld [vmem:[%s1589_s0] sm:$0xff] }
   0x2   :  { %v825_v2 = vld [vmem:[%s1589_s0 + $0xf0] sm:$0xff]  ;;  %v830_v4 = vld [vmem:[%s1589_s0 + $0xf8] sm:$0xff]  ;;  %v59_v5 = vsel %vm46_vm0, %v815_v0, 0.0  ;;  %v62_v7 = vsel %vm46_vm0, %v820_v1, 0.0  ;;  %v846_v9 = vld [vmem:[%s1589_s0 + $0x8] sm:$0xff]  ;;  %v47_v14 = vsel %vm46_vm0, %v841_v8, 0.0 }
   0x3   :  { %v60_v6 = vsel %vm46_vm0, %v825_v2, 0.0  ;;  %v63_v11 = vsel %vm46_vm0, %v830_v4, 0.0  ;;  %v853_v12 = vld [vmem:[%s1589_s0 + $0xc0] sm:$0xff]  ;;  %v858_v13 = vld [vmem:[%s1589_s0 + $0xc8] sm:$0xff]  ;;  %v50_v15 = vsel %vm46_vm0, %v846_v9, 0.0  ;;  %v876_v20 = vld [vmem:[%s1589_s0 + $0x50] sm:$0xff] }
   0x4   :  { %v61_v10 = vadd.f32 %v60_v6, %v59_v5  ;;  %v867_v16 = vld [vmem:[%s1589_s0 + $0x48] sm:$0xff]  ;;  %v64_v17 = vadd.f32 %v63_v11, %v62_v7  ;;  %v48_v18 = vsel %vm46_vm0, %v853_v12, 0.0  ;;  %v51_v19 = vsel %vm46_vm0, %v858_v13, 0.0  ;;  %v886_v22 = vld [vmem:[%s1589_s0 + $0x110] sm:$0xff]  ;;  %v896_v28 = vld [vmem:[%s1589_s0 + $0x18] sm:$0xff] }
   0x5   :  { %v881_v21 = vld [vmem:[%s1589_s0 + $0x108] sm:$0xff]  ;;  %v65_v23 = vsel %vm46_vm0, %v867_v16, 0.0  ;;  %v49_v25 = vadd.f32 %v48_v18, %v47_v14  ;;  %v52_v26 = vadd.f32 %v51_v19, %v50_v15  ;;  %v901_v29 = vld [vmem:[%s1589_s0 + $0xd8] sm:$0xff]  ;;  %v68_v32 = vsel %vm46_vm0, %v876_v20, 0.0  ;;  %v911_v34 = vld [vmem:[%s1589_s0 + $0x20] sm:$0xff] }
   0x6   :  { %v113_v24 = vsel %vm46_vm0, %v61_v10, 0.0  ;;  %v66_v27 = vsel %vm46_vm0, %v881_v21, 0.0  ;;  %v114_v30 = vsel %vm46_vm0, %v64_v17, 0.0  ;;  %v69_v33 = vsel %vm46_vm0, %v886_v22, 0.0  ;;  %v918_v39 = vld [vmem:[%s1589_s0 + $0xe0] sm:$0xff]  ;;  %v923_v40 = vld [vmem:[%s1589_s0 + $0x78] sm:$0xff] }
   0x7   :  { %v67_v31 = vadd.f32 %v66_v27, %v65_v23  ;;  %v115_v35 = vadd.f32 %v114_v30, %v113_v24  ;;  %v95_v36 = vsel %vm46_vm0, %v49_v25, 0.0  ;;  %v96_v37 = vsel %vm46_vm0, %v52_v26, 0.0  ;;  %v933_v45 = vld [vmem:[%s1589_s0 + $0x138] sm:$0xff]  ;;  %v941_v50 = vld [vmem:[%s1589_s0 + $0x80] sm:$0xff]  ;;  %v965_v5 = vld [vmem:[%s1589_s0 + $0x68] sm:$0xff] }
   0x8   :  { %v70_v38 = vadd.f32 %v69_v33, %v68_v32  ;;  %v97_v41 = vadd.f32 %v96_v37, %v95_v36  ;;  %v53_v43 = vsel %vm46_vm0, %v896_v28, 0.0  ;;  %v54_v44 = vsel %vm46_vm0, %v901_v29, 0.0  ;;  %v948_v54 = vld [vmem:[%s1589_s0 + $0x140] sm:$0xff]  ;;  %v980_v23 = vld [vmem:[%s1589_s0 + $0x128] sm:$0xff] }
   0x9   :  { %v122_v42 = vsel %vm46_vm0, %v67_v31, 0.0  ;;  %v116_v46 = vrot.slane %v115_v35, 4  ;;  %v55_v48 = vadd.f32 %v54_v44, %v53_v43  ;;  %v56_v49 = vsel %vm46_vm0, %v911_v34, 0.0  ;;  %v955_v56 = vld [vmem:[%s1589_s0 + $0x60] sm:$0xff] }
   0xa   :  { %v123_v47 = vsel %vm46_vm0, %v70_v38, 0.0  ;;  %v98_v51 = vrot.slane %v97_v41, 4  ;;  %v57_v53 = vsel %vm46_vm0, %v918_v39, 0.0  ;;  %v77_v55 = vsel %vm46_vm0, %v923_v40, 0.0  ;;  %v970_v6 = vld [vmem:[%s1589_s0 + $0x120] sm:$0xff] }
   0xb   :  { %v124_v52 = vadd.f32 %v123_v47, %v122_v42  ;;  %v117_v57 = vadd.f32 %v116_v46, %v115_v35  ;;  %v58_v58 = vadd.f32 %v57_v53, %v56_v49  ;;  %v104_v59 = vsel %vm46_vm0, %v55_v48, 0.0  ;;  %v991_v35 = vld [vmem:[%s1589_s0 + $0xa8] sm:$0xff] }
   0xc   :  { %v78_v60 = vsel %vm46_vm0, %v933_v45, 0.0  ;;  %v99_v61 = vadd.f32 %v98_v51, %v97_v41  ;;  %v80_v3 = vsel %vm46_vm0, %v941_v50, 0.0  ;;  %v81_v11 = vsel %vm46_vm0, %v948_v54, 0.0  ;;  %v998_v47 = vld [vmem:[%s1589_s0 + $0x168] sm:$0xff] }
   0xd   :  { %v125_v62 = vrot.slane %v124_v52, 4  ;;  %v79_v63 = vadd.f32 %v78_v60, %v77_v55  ;;  %v118_v7 = vrot.slane %v117_v57, 2  ;;  %v105_v10 = vsel %vm46_vm0, %v58_v58, 0.0  ;;  %v1012_v60 = vld [vmem:[%s1589_s0 + $0x170] sm:$0xff] }
   0xe   :  { %v71_v14 = vsel %vm46_vm0, %v955_v56, 0.0  ;;  %v100_v15 = vrot.slane %v99_v61, 2  ;;  %v106_v18 = vadd.f32 %v105_v10, %v104_v59  ;;  %v82_v19 = vadd.f32 %v81_v11, %v80_v3  ;;  %v1007_v59 = vld [vmem:[%s1589_s0 + $0xb0] sm:$0xff] }
   0xf   :  { %v126_v17 = vadd.f32 %v125_v62, %v124_v52  ;;  %v119_v24 = vadd.f32 %v118_v7, %v117_v57  ;;  %v140_v25 = vsel %vm46_vm0, %v79_v63, 0.0  ;;  %v72_v26 = vsel %vm46_vm0, %v970_v6, 0.0 }
  0x10   :  { %v74_v27 = vsel %vm46_vm0, %v965_v5, 0.0  ;;  %v101_v30 = vadd.f32 %v100_v15, %v99_v61  ;;  %v107_v32 = vrot.slane %v106_v18, 4  ;;  %v141_v33 = vsel %vm46_vm0, %v82_v19, 0.0  ;;  %v1021_v15 = vld [vmem:[%s1589_s0 + $0x90] sm:$0xff] }
  0x11   :  { %v127_v31 = vrot.slane %v126_v17, 2  ;;  %v120_v36 = vrot.slane %v119_v24, 1  ;;  %v142_v37 = vadd.f32 %v141_v33, %v140_v25  ;;  %v73_v38 = vadd.f32 %v72_v26, %v71_v14  ;;  %v1035_v26 = vld [vmem:[%s1589_s0 + $0x98] sm:$0xff] }
  0x12   :  { %v75_v41 = vsel %vm46_vm0, %v980_v23, 0.0  ;;  %v102_v42 = vrot.slane %v101_v30, 1  ;;  %v108_v44 = vadd.f32 %v107_v32, %v106_v18  ;;  %v89_v52 = vsel %vm46_vm0, %v991_v35, 0.0  ;;  %v1042_v33 = vld [vmem:[%s1589_s0 + $0x158] sm:$0xff] }
  0x13   :  { %v128_v43 = vadd.f32 %v127_v31, %v126_v17  ;;  %v76_v46 = vadd.f32 %v75_v41, %v74_v27  ;;  %v121_v48 = vadd.f32 %v120_v36, %v119_v24  ;;  %v143_v49 = vrot.slane %v142_v37, 4  ;;  %v1026_v17 = vld [vmem:[%s1589_s0 + $0x150] sm:$0xff] }
  0x14   :  { %v131_v51 = vsel %vm46_vm0, %v73_v38, 0.0  ;;  %v103_v53 = vadd.f32 %v102_v42, %v101_v30  ;;  %v109_v57 = vrot.slane %v108_v44, 2  ;;  %v90_v3 = vsel %vm46_vm0, %v998_v47, 0.0 }
  0x15   :  { %v129_v55 = vrot.slane %v128_v43, 1  ;;  %v132_v58 = vsel %vm46_vm0, %v76_v46, 0.0  ;;  %v173_v61 = vsel %vm46_vm0, %v121_v48, 0.0  ;;  %v144_v62 = vadd.f32 %v143_v49, %v142_v37 }
  0x16   :  { %v133_v63 = vadd.f32 %v132_v58, %v131_v51  ;;  %174 = vadd.xlane.f32.xlu1 %v173_v61  ;;  %v167_v7 = vsel %vm46_vm0, %v103_v53, 0.0  ;;  %v110_v11 = vadd.f32 %v109_v57, %v108_v44  ;;  %v91_v14 = vadd.f32 %v90_v3, %v89_v52 }
  0x17   :  { %v130_v10 = vadd.f32 %v129_v55, %v128_v43  ;;  %168 = vadd.xlane.f32.xlu0 %v167_v7  ;;  %v145_v18 = vrot.slane %v144_v62, 2  ;;  %v92_v24 = vsel %vm46_vm0, %v1007_v59, 0.0  ;;  %v93_v25 = vsel %vm46_vm0, %v1012_v60, 0.0 }
  0x18   :  { %v134_v19 = vrot.slane %v133_v63, 4  ;;  %v111_v30 = vrot.slane %v110_v11, 1  ;;  %v94_v31 = vadd.f32 %v93_v25, %v92_v24  ;;  %v158_v32 = vsel %vm46_vm0, %v91_v14, 0.0 }
  0x19   :  { %v176_v27 = vsel %vm46_vm0, %v130_v10, 0.0  ;;  %v146_v36 = vadd.f32 %v145_v18, %v144_v62  ;;  %v83_v38 = vsel %vm46_vm0, %v1021_v15, 0.0  ;;  %v84_v41 = vsel %vm46_vm0, %v1026_v17, 0.0 }
  0x1a   :  { %v135_v37 = vadd.f32 %v134_v19, %v133_v63  ;;  %177 = vadd.xlane.f32.xlu1 %v176_v27  ;;  %v112_v42 = vadd.f32 %v111_v30, %v110_v11  ;;  %v159_v43 = vsel %vm46_vm0, %v94_v31, 0.0  ;;  %v85_v44 = vadd.f32 %v84_v41, %v83_v38 }
  0x1b   :  { %v86_v46 = vsel %vm46_vm0, %v1035_v26, 0.0  ;;  %v147_v48 = vrot.slane %v146_v36, 1  ;;  %v160_v51 = vadd.f32 %v159_v43, %v158_v32  ;;  %v87_v52 = vsel %vm46_vm0, %v1042_v33, 0.0  ;;  %v757_v43 = vld [vmem:[%s1590_s1 + $0x1] ss:$0 sm:$0xff] }
  0x1c   :  { %v136_v49 = vrot.slane %v135_v37, 2  ;;  %v170_v53 = vsel %vm46_vm0, %v112_v42, 0.0  ;;  %v88_v55 = vadd.f32 %v87_v52, %v86_v46  ;;  %v149_v57 = vsel %vm46_vm0, %v85_v44, 0.0  ;;  %v758_v44 = vld [vmem:[%s1590_s1 + $0x2] ss:$0 sm:$0xff] }
  0x1d   :  { %171 = vadd.xlane.f32.xlu0 %v170_v53  ;;  %v148_v58 = vadd.f32 %v147_v48, %v146_v36  ;;  %v161_v62 = vrot.slane %v160_v51, 4  ;;  %v759_v46 = vld [vmem:[%s1590_s1 + $0x3] ss:$0 sm:$0xff]  ;;  %v756_v48 = vld [vmem:[%s1590_s1] ss:$0 sm:$0xff] }
  0x1e   :  { %v137_v61 = vadd.f32 %v136_v49, %v135_v37  ;;  %v150_v63 = vsel %vm46_vm0, %v88_v55, 0.0  ;;  %v760_v49 = vld [vmem:[%s1590_s1 + $0x4] ss:$0 sm:$0xff]  ;;  %v761_v52 = vld [vmem:[%s1590_s1 + $0x5] ss:$0 sm:$0xff] }
  0x1f   :  { %v182_v3 = vsel %vm46_vm0, %v148_v58, 0.0  ;;  %v162_v10 = vadd.f32 %v161_v62, %v160_v51  ;;  %v151_v11 = vadd.f32 %v150_v63, %v149_v57  ;;  %v765_v51 = vld [vmem:[%s1591_s2 + $0x1] ss:$0 sm:$0xff]  ;;  %v767_v53 = vld [vmem:[%s1591_s2 + $0x3] ss:$0 sm:$0xff] }
  0x20   :  { %v138_v7 = vrot.slane %v137_v61, 1  ;;  %183 = vadd.xlane.f32.xlu1 %v182_v3  ;;  %v762_v55 = vld [vmem:[%s1590_s1 + $0x6] ss:$0 sm:$0xff]  ;;  %v769_v57 = vld [vmem:[%s1591_s2 + $0x5] ss:$0 sm:$0xff] }
  0x21   :  { %v163_v18 = vrot.slane %v162_v10, 2  ;;  %v152_v19 = vrot.slane %v151_v11, 4  ;;  %v763_v58 = vld [vmem:[%s1590_s1 + $0x7] ss:$0 sm:$0xff]  ;;  %v766_v62 = vld [vmem:[%s1591_s2 + $0x2] ss:$0 sm:$0xff] }
  0x22   :  { %v139_v14 = vadd.f32 %v138_v7, %v137_v61  ;;  %v764_v61 = vld [vmem:[%s1591_s2] ss:$0 sm:$0xff]  ;;  %v768_v63 = vld [vmem:[%s1591_s2 + $0x4] ss:$0 sm:$0xff] }
  0x23   :  { %v164_v25 = vadd.f32 %v163_v18, %v162_v10  ;;  %v153_v27 = vadd.f32 %v152_v19, %v151_v11 }
  0x24   :  { %v179_v24 = vsel %vm46_vm0, %v139_v14, 0.0 }
  0x25   :  { %180 = vadd.xlane.f32.xlu0 %v179_v24  ;;  %v165_v30 = vrot.slane %v164_v25, 1  ;;  %v154_v31 = vrot.slane %v153_v27, 2 }
  0x27   :  { %v166_v32 = vadd.f32 %v165_v30, %v164_v25  ;;  %v155_v36 = vadd.f32 %v154_v31, %v153_v27 }
  0x29   :  { %v188_v37 = vsel %vm46_vm0, %v166_v32, 0.0  ;;  %v156_v38 = vrot.slane %v155_v36, 1 }
  0x2a   :  { %189 = vadd.xlane.f32.xlu1 %v188_v37 }
  0x2b   :  { %v157_v41 = vadd.f32 %v156_v38, %v155_v36 }
  0x2d   :  { %v185_v42 = vsel %vm46_vm0, %v157_v41, 0.0 }
  0x2e   :  { %186 = vadd.xlane.f32.xlu0 %v185_v42 }
  0x3b   :  { %517 = vperm.xlu1 %774, %v757_v43  }
  0x3f   :  { %521 = vperm.xlu1 %774, %v758_v44  }
  0x43   :  { %525 = vperm.xlu1 %774, %v759_v46  }
  0x44   :  { %513 = vperm.xlu0 %773, %v756_v48  }
  0x47   :  { %529 = vperm.xlu1 %774, %v760_v49  }
  0x48   :  { %629 = vperm.xlu0 %773, %v765_v51  }
  0x4b   :  { %533 = vperm.xlu1 %774, %v761_v52  }
  0x4c   :  { %637 = vperm.xlu0 %773, %v767_v53  }
  0x4f   :  { %537 = vperm.xlu1 %774, %v762_v55  }
  0x50   :  { %645 = vperm.xlu0 %773, %v769_v57  }
  0x53   :  { %541 = vperm.xlu1 %774, %v763_v58  }
  0x57   :  { %625 = vperm.xlu1 %774, %v764_v61  }
  0x5b   :  { %633 = vperm.xlu1 %774, %v766_v62  }
  0x5f   :  { %641 = vperm.xlu1 %774, %v768_v63  }
  0xa3   :  { %v175_v3 = vpop.xlane.xlu1 %174 }
  0xa4   :  { %v194_v7 = vmul.f32 0.001953125, %v175_v3  ;;  %v169_v10 = vpop.xlane.xlu0 %168 }
  0xa5   :  { %v192_v11 = vmul.f32 0.001953125, %v169_v10 }
  0xa6   :  { %v1103_v14 = vsub.f32 %v815_v0, %v194_v7  ;;  %v1106_v18 = vsub.f32 %v820_v1, %v194_v7  ;;  %v1109_v19 = vsub.f32 %v825_v2, %v194_v7  ;;  %v1112_v24 = vsub.f32 %v830_v4, %v194_v7 }
  0xa7   :  { %v1115_v25 = vsub.f32 %v841_v8, %v192_v11  ;;  %v1118_v27 = vsub.f32 %v846_v9, %v192_v11  ;;  %v1121_v30 = vsub.f32 %v853_v12, %v192_v11  ;;  %v1124_v0 = vsub.f32 %v858_v13, %v192_v11  ;;  %v178_v1 = vpop.xlane.xlu1 %177 }
  0xa8   :  { %v236_v2 = vmul.f32 %v1103_v14, %v1103_v14  ;;  %v237_v4 = vmul.f32 %v1106_v18, %v1106_v18  ;;  %v252_v8 = vmul.f32 %v1109_v19, %v1109_v19  ;;  %v253_v9 = vmul.f32 %v1112_v24, %v1112_v24 }
  0xa9   :  { %v232_v12 = vmul.f32 %v1115_v25, %v1115_v25  ;;  %v233_v13 = vmul.f32 %v1118_v27, %v1118_v27  ;;  %v248_v31 = vmul.f32 %v1121_v30, %v1121_v30  ;;  %v249_v32 = vmul.f32 %v1124_v0, %v1124_v0 }
  0xaa   :  { %v195_v36 = vmul.f32 0.001953125, %v178_v1  ;;  %v172_v37 = vpop.xlane.xlu0 %171  ;;  %v276_v38 = vsel %vm46_vm0, %v236_v2, 0.0  ;;  %v277_v41 = vsel %vm46_vm0, %v252_v8, 0.0  ;;  %v279_v42 = vsel %vm46_vm0, %v237_v4, 0.0 }
  0xab   :  { %v193_v43 = vmul.f32 0.001953125, %v172_v37  ;;  %v264_v44 = vsel %vm46_vm0, %v232_v12, 0.0  ;;  %v265_v46 = vsel %vm46_vm0, %v248_v31, 0.0  ;;  %v267_v48 = vsel %vm46_vm0, %v233_v13, 0.0 }
  0xac   :  { %v1149_v49 = vsub.f32 %v867_v16, %v195_v36  ;;  %v1152_v51 = vsub.f32 %v876_v20, %v195_v36  ;;  %v1155_v52 = vsub.f32 %v881_v21, %v195_v36  ;;  %v1158_v53 = vsub.f32 %v886_v22, %v195_v36 }
  0xad   :  { %v1161_v55 = vsub.f32 %v896_v28, %v193_v43  ;;  %v1164_v57 = vsub.f32 %v911_v34, %v193_v43  ;;  %v1167_v58 = vsub.f32 %v901_v29, %v193_v43  ;;  %v1170_v16 = vsub.f32 %v918_v39, %v193_v43  ;;  %v184_v20 = vpop.xlane.xlu1 %183 }
  0xae   :  { %v238_v21 = vmul.f32 %v1149_v49, %v1149_v49  ;;  %v1176_v22 = vmul.f32 %v1152_v51, %v1152_v51  ;;  %v254_v28 = vmul.f32 %v1155_v52, %v1155_v52  ;;  %v1182_v34 = vmul.f32 %v1158_v53, %v1158_v53 }
  0xaf   :  { %v234_v29 = vmul.f32 %v1161_v55, %v1161_v55  ;;  %v235_v39 = vmul.f32 %v1164_v57, %v1164_v57  ;;  %v250_v61 = vmul.f32 %v1167_v58, %v1167_v58  ;;  %v251_v62 = vmul.f32 %v1170_v16, %v1170_v16 }
  0xb0   :  { %v197_v63 = vmul.f32 0.001953125, %v184_v20  ;;  %v266_v3 = vadd.f32 %v265_v46, %v264_v44  ;;  %v268_v7 = vsel %vm46_vm0, %v249_v32, 0.0  ;;  %v278_v10 = vadd.f32 %v277_v41, %v276_v38 }
  0xb1   :  { %v269_v1 = vadd.f32 %v268_v7, %v267_v48  ;;  %v280_v2 = vsel %vm46_vm0, %v253_v9, 0.0  ;;  %v270_v4 = vsel %vm46_vm0, %v234_v29, 0.0  ;;  %v271_v8 = vsel %vm46_vm0, %v250_v61, 0.0 }
  0xb2   :  { %v181_v11 = vpop.xlane.xlu0 %180  ;;  %v1197_v12 = vsub.f32 %v923_v40, %v197_v63  ;;  %v1200_v13 = vsub.f32 %v941_v50, %v197_v63  ;;  %v1203_v31 = vsub.f32 %v933_v45, %v197_v63  ;;  %v1206_v32 = vsub.f32 %v948_v54, %v197_v63 }
  0xb3   :  { %v196_v36 = vmul.f32 0.001953125, %v181_v11  ;;  %v312_v37 = vsel %vm46_vm0, %v266_v3, 0.0  ;;  %v313_v9 = vsel %vm46_vm0, %v269_v1, 0.0  ;;  %v281_v38 = vadd.f32 %v280_v2, %v279_v42 }
  0xb4   :  { %v1212_v41 = vmul.f32 %v1197_v12, %v1197_v12  ;;  %v1216_v40 = vmul.f32 %v1200_v13, %v1200_v13  ;;  %v1220_v45 = vmul.f32 %v1203_v31, %v1203_v31  ;;  %v1224_v50 = vmul.f32 %v1206_v32, %v1206_v32 }
  0xb5   :  { %v1227_v54 = vsub.f32 %v955_v56, %v196_v36  ;;  %v1230_v42 = vsub.f32 %v965_v5, %v196_v36  ;;  %v1233_v43 = vsub.f32 %v970_v6, %v196_v36  ;;  %v1236_v44 = vsub.f32 %v980_v23, %v196_v36 }
  0xb6   :  { %v314_v46 = vadd.f32 %v313_v9, %v312_v37  ;;  %v330_v48 = vsel %vm46_vm0, %v278_v10, 0.0  ;;  %v331_v20 = vsel %vm46_vm0, %v281_v38, 0.0  ;;  %v272_v29 = vadd.f32 %v271_v8, %v270_v4 }
  0xb7   :  { %v240_v61 = vmul.f32 %v1227_v54, %v1227_v54  ;;  %v241_v56 = vmul.f32 %v1230_v42, %v1230_v42  ;;  %v256_v5 = vmul.f32 %v1233_v43, %v1233_v43  ;;  %v257_v6 = vmul.f32 %v1236_v44, %v1236_v44  ;;  %v190_v23 = vpop.xlane.xlu1 %189 }
  0xb8   :  { %v199_v63 = vmul.f32 0.001953125, %v190_v23  ;;  %v315_v3 = vrot.slane %v314_v46, 4  ;;  %v332_v7 = vadd.f32 %v331_v20, %v330_v48  ;;  %v273_v10 = vsel %vm46_vm0, %v235_v39, 0.0 }
  0xb9   :  { %v274_v11 = vsel %vm46_vm0, %v251_v62, 0.0  ;;  %v321_v1 = vsel %vm46_vm0, %v272_v29, 0.0  ;;  %v282_v2 = vsel %vm46_vm0, %v238_v21, 0.0  ;;  %v283_v4 = vsel %vm46_vm0, %v254_v28, 0.0 }
  0xba   :  { %v1254_v8 = vsub.f32 %v991_v35, %v199_v63  ;;  %v1257_v36 = vsub.f32 %v1007_v59, %v199_v63  ;;  %v1260_v37 = vsub.f32 %v998_v47, %v199_v63  ;;  %v1263_v9 = vsub.f32 %v1012_v60, %v199_v63 }
  0xbb   :  { %v187_v39 = vpop.xlane.xlu0 %186  ;;  %v316_v62 = vadd.f32 %v315_v3, %v314_v46  ;;  %v333_v38 = vrot.slane %v332_v7, 4  ;;  %v275_v48 = vadd.f32 %v274_v11, %v273_v10  ;;  %v284_v20 = vadd.f32 %v283_v4, %v282_v2 }
  0xbc   :  { %1598 = vst [vmem:[#allocation2_spill] sm:$0xff] %v1254_v8  ;;  %1599 = vst [vmem:[#allocation3_spill] sm:$0xff] %v1257_v36  ;;  %v1267_v21 = vmul.f32 %v1254_v8, %v1254_v8  ;;  %v1271_v35 = vmul.f32 %v1257_v36, %v1257_v36  ;;  %v1275_v47 = vmul.f32 %v1260_v37, %v1260_v37  ;;  %v198_v60 = vmul.f32 0.001953125, %v187_v39 }
  0xbd   :  { %1600 = vst [vmem:[#allocation4_spill] sm:$0xff] %v1260_v37  ;;  %1601 = vst [vmem:[#allocation5_spill] sm:$0xff] %v1263_v9  ;;  %v1279_v59 = vmul.f32 %v1263_v9, %v1263_v9  ;;  %v317_v28 = vrot.slane %v316_v62, 2  ;;  %v334_v46 = vadd.f32 %v333_v38, %v332_v7  ;;  %v322_v29 = vsel %vm46_vm0, %v275_v48, 0.0 }
  0xbe   :  { %v323_v23 = vadd.f32 %v322_v29, %v321_v1  ;;  %v285_v63 = vsel %vm46_vm0, %v1176_v22, 0.0  ;;  %v286_v3 = vsel %vm46_vm0, %v1182_v34, 0.0  ;;  %v339_v10 = vsel %vm46_vm0, %v284_v20, 0.0 }
  0xbf   :  { %v1288_v11 = vsub.f32 %v1021_v15, %v198_v60  ;;  %v1291_v2 = vsub.f32 %v1035_v26, %v198_v60  ;;  %v1294_v4 = vsub.f32 %v1026_v17, %v198_v60  ;;  %v1297_v7 = vsub.f32 %v1042_v33, %v198_v60 }
  0xc0   :  { %v318_v1 = vadd.f32 %v317_v28, %v316_v62  ;;  %v335_v39 = vrot.slane %v334_v46, 2  ;;  %v324_v22 = vrot.slane %v323_v23, 4  ;;  %v287_v38 = vadd.f32 %v286_v3, %v285_v63 }
  0xc1   :  { %1602 = vst [vmem:[#allocation6_spill] sm:$0xff] %v1294_v4  ;;  %v244_v34 = vmul.f32 %v1288_v11, %v1288_v11  ;;  %v245_v15 = vmul.f32 %v1291_v2, %v1291_v2  ;;  %v260_v26 = vmul.f32 %v1294_v4, %v1294_v4  ;;  %v261_v17 = vmul.f32 %v1297_v7, %v1297_v7 }
  0xc2   :  { %v319_v48 = vrot.slane %v318_v1, 1  ;;  %v336_v20 = vadd.f32 %v335_v39, %v334_v46  ;;  %v325_v33 = vadd.f32 %v324_v22, %v323_v23  ;;  %v340_v62 = vsel %vm46_vm0, %v287_v38, 0.0 }
  0xc3   :  { %v341_v60 = vadd.f32 %v340_v62, %v339_v10  ;;  %v288_v28 = vsel %vm46_vm0, %v240_v61, 0.0  ;;  %v289_v29 = vsel %vm46_vm0, %v256_v5, 0.0  ;;  %v291_v63 = vsel %vm46_vm0, %v241_v56, 0.0 }
  0xc4   :  { %v320_v3 = vadd.f32 %v319_v48, %v318_v1  ;;  %v337_v9 = vrot.slane %v336_v20, 1  ;;  %v326_v37 = vrot.slane %v325_v33, 2  ;;  %v290_v36 = vadd.f32 %v289_v29, %v288_v28 }
  0xc5   :  { %v342_v8 = vrot.slane %v341_v60, 4  ;;  %v292_v4 = vsel %vm46_vm0, %v257_v6, 0.0  ;;  %v294_v46 = vsel %vm46_vm0, %v1212_v41, 0.0  ;;  %v295_v23 = vsel %vm46_vm0, %v1220_v45, 0.0 }
  0xc6   :  { %v384_v10 = vsel %vm46_vm0, %v320_v3, 0.0  ;;  %v338_v61 = vadd.f32 %v337_v9, %v336_v20  ;;  %v327_v39 = vadd.f32 %v326_v37, %v325_v33  ;;  %v293_v5 = vadd.f32 %v292_v4, %v291_v63 }
  0xc7   :  { %385 = vadd.xlane.f32.xlu0 %v384_v10  ;;  %v343_v56 = vadd.f32 %v342_v8, %v341_v60  ;;  %v348_v1 = vsel %vm46_vm0, %v290_v36, 0.0  ;;  %v296_v22 = vadd.f32 %v295_v23, %v294_v46  ;;  %v297_v38 = vsel %vm46_vm0, %v1216_v40, 0.0 }
  0xc8   :  { %v390_v6 = vsel %vm46_vm0, %v338_v61, 0.0  ;;  %v328_v48 = vrot.slane %v327_v39, 1  ;;  %v349_v41 = vsel %vm46_vm0, %v293_v5, 0.0  ;;  %v298_v45 = vsel %vm46_vm0, %v1224_v50, 0.0 }
  0xc9   :  { %v344_v62 = vrot.slane %v343_v56, 2  ;;  %v350_v9 = vadd.f32 %v349_v41, %v348_v1  ;;  %v299_v37 = vadd.f32 %v298_v45, %v297_v38  ;;  %v357_v4 = vsel %vm46_vm0, %v296_v22, 0.0 }
  0xca   :  { %v329_v8 = vadd.f32 %v328_v48, %v327_v39  ;;  %v300_v36 = vsel %vm46_vm0, %v244_v34, 0.0  ;;  %v301_v20 = vsel %vm46_vm0, %v260_v26, 0.0  ;;  %v303_v40 = vsel %vm46_vm0, %v245_v15, 0.0 }
  0xcb   :  { %391 = vadd.xlane.f32.xlu0 %v390_v6  ;;  %v345_v33 = vadd.f32 %v344_v62, %v343_v56  ;;  %v351_v60 = vrot.slane %v350_v9, 4  ;;  %v358_v28 = vsel %vm46_vm0, %v299_v37, 0.0  ;;  %v302_v29 = vadd.f32 %v301_v20, %v300_v36 }
  0xcc   :  { %v387_v50 = vsel %vm46_vm0, %v329_v8, 0.0  ;;  %v359_v63 = vadd.f32 %v358_v28, %v357_v4  ;;  %v304_v3 = vsel %vm46_vm0, %v261_v17, 0.0  ;;  %v306_v46 = vsel %vm46_vm0, %v1267_v21, 0.0 }
  0xcd   :  { %388 = vadd.xlane.f32.xlu1 %v387_v50  ;;  %v346_v34 = vrot.slane %v345_v33, 1  ;;  %v352_v23 = vadd.f32 %v351_v60, %v350_v9  ;;  %v305_v26 = vadd.f32 %v304_v3, %v303_v40  ;;  %v366_v15 = vsel %vm46_vm0, %v302_v29, 0.0 }
  0xce   :  { %v360_v10 = vrot.slane %v359_v63, 4  ;;  %v307_v61 = vsel %vm46_vm0, %v1275_v47, 0.0  ;;  %v309_v39 = vsel %vm46_vm0, %v1271_v35, 0.0  ;;  %v310_v5 = vsel %vm46_vm0, %v1279_v59, 0.0 }
  0xcf   :  { %v347_v17 = vadd.f32 %v346_v34, %v345_v33  ;;  %v353_v56 = vrot.slane %v352_v23, 2  ;;  %v367_v21 = vsel %vm46_vm0, %v305_v26, 0.0  ;;  %v308_v1 = vadd.f32 %v307_v61, %v306_v46  ;;  %v770_v61 = vld [vmem:[%s1591_s2 + $0x6] ss:$0 sm:$0xff] }
  0xd0   :  { %v361_v22 = vadd.f32 %v360_v10, %v359_v63  ;;  %v368_v38 = vadd.f32 %v367_v21, %v366_v15  ;;  %v311_v6 = vadd.f32 %v310_v5, %v309_v39  ;;  %v771_v39 = vld [vmem:[%s1591_s2 + $0x7] ss:$0 sm:$0xff]  ;;  %v1354_v5 = vpop.permute.xlu1 %517 }
  0xd1   :  { %v393_v48 = vsel %vm46_vm0, %v347_v17, 0.0  ;;  %v354_v41 = vadd.f32 %v353_v56, %v352_v23  ;;  %v375_v45 = vsel %vm46_vm0, %v308_v1, 0.0 }
  0xd2   :  { %394 = vadd.xlane.f32.xlu1 %v393_v48  ;;  %v362_v47 = vrot.slane %v361_v22, 2  ;;  %v369_v62 = vrot.slane %v368_v38, 4  ;;  %v376_v35 = vsel %vm46_vm0, %v311_v6, 0.0 }
  0xd3   :  { %v355_v9 = vrot.slane %v354_v41, 1  ;;  %v377_v59 = vadd.f32 %v376_v35, %v375_v45 }
  0xd4   :  { %v363_v37 = vadd.f32 %v362_v47, %v361_v22  ;;  %v370_v4 = vadd.f32 %v369_v62, %v368_v38  ;;  %v1356_v17 = vpop.permute.xlu1 %521  ;;  %v514_v38 = vpop.permute.xlu0 %513 }
  0xd5   :  { %v356_v8 = vadd.f32 %v355_v9, %v354_v41  ;;  %v378_v36 = vrot.slane %v377_v59, 4 }
  0xd6   :  { %v364_v20 = vrot.slane %v363_v37, 1  ;;  %v371_v40 = vrot.slane %v370_v4, 2 }
  0xd7   :  { %v396_v33 = vsel %vm46_vm0, %v356_v8, 0.0  ;;  %v379_v60 = vadd.f32 %v378_v36, %v377_v59 }
  0xd8   :  { %397 = vadd.xlane.f32.xlu0 %v396_v33  ;;  %v365_v28 = vadd.f32 %v364_v20, %v363_v37  ;;  %v372_v29 = vadd.f32 %v371_v40, %v370_v4  ;;  %v1358_v56 = vpop.permute.xlu1 %525  ;;  %v1368_v48 = vpop.permute.xlu0 %629 }
  0xd9   :  { %v380_v50 = vrot.slane %v379_v60, 2 }
  0xda   :  { %v399_v63 = vsel %vm46_vm0, %v365_v28, 0.0  ;;  %v373_v3 = vrot.slane %v372_v29, 1 }
  0xdb   :  { %400 = vadd.xlane.f32.xlu1 %v399_v63  ;;  %v381_v46 = vadd.f32 %v380_v50, %v379_v60 }
  0xdc   :  { %v374_v34 = vadd.f32 %v373_v3, %v372_v29  ;;  %v1360_v21 = vpop.permute.xlu1 %529  ;;  %v1370_v45 = vpop.permute.xlu0 %637 }
  0xdd   :  { %v382_v23 = vrot.slane %v381_v46, 1 }
  0xde   :  { %v402_v26 = vsel %vm46_vm0, %v374_v34, 0.0 }
  0xdf   :  { %403 = vadd.xlane.f32.xlu0 %v402_v26  ;;  %v383_v15 = vadd.f32 %v382_v23, %v381_v46 }
  0xe0   :  { %v1362_v1 = vpop.permute.xlu1 %533  ;;  %v1374_v62 = vpop.permute.xlu0 %645 }
  0xe1   :  { %v405_v10 = vsel %vm46_vm0, %v383_v15, 0.0 }
  0xe2   :  { %406 = vadd.xlane.f32.xlu1 %v405_v10 }
  0xe4   :  { %v1364_v22 = vpop.permute.xlu1 %537 }
  0xe8   :  { %v1366_v6 = vpop.permute.xlu1 %541 }
  0xec   :  { %v626_v41 = vpop.permute.xlu1 %625 }
  0xf0   :  { %v1372_v47 = vpop.permute.xlu1 %633 }
  0xf3   :  { %649 = vperm.xlu1 %774, %v770_v61  }
  0xf4   :  { %v1376_v59 = vpop.permute.xlu1 %641 }
  0xf5   :  { %653 = vperm.xlu0 %773, %v771_v39  }
 0x154   :  { %v386_v35 = vpop.xlane.xlu0 %385 }
 0x155   :  { %v408_v9 = vmul.f32 0.001953125, %v386_v35 }
 0x157   :  { %v416_v37 = vadd.f32 1e-05, %v408_v9 }
 0x158   :  { %v392_v4 = vpop.xlane.xlu0 %391 }
 0x159   :  { %775 = vrsqrt.f32 %v416_v37  ;;  %v410_v8 = vmul.f32 0.001953125, %v392_v4 }
 0x15a   :  { %v389_v36 = vpop.xlane.xlu1 %388 }
 0x15b   :  { %v409_v20 = vmul.f32 0.001953125, %v389_v36  ;;  %v418_v40 = vadd.f32 1e-05, %v410_v8 }
 0x15d   :  { %v417_v33 = vadd.f32 1e-05, %v409_v20  ;;  %777 = vrsqrt.f32 %v418_v40 }
 0x15f   :  { %779 = vrsqrt.f32 %v417_v33  ;;  %v395_v60 = vpop.xlane.xlu1 %394 }
 0x160   :  { %v411_v28 = vmul.f32 0.001953125, %v395_v60 }
 0x162   :  { %v419_v29 = vadd.f32 1e-05, %v411_v28 }
 0x163   :  { %v776_v50 = vpop.eup %775 }
 0x164   :  { %v432_v63 = vmul.f32 %v776_v50, %v1115_v25  ;;  %v433_v3 = vmul.f32 %v776_v50, %v1118_v27  ;;  %v448_v46 = vmul.f32 %v776_v50, %v1121_v30  ;;  %v449_v34 = vmul.f32 %v776_v50, %v1124_v0 }
 0x165   :  { %781 = vrsqrt.f32 %v419_v29  ;;  %v398_v23 = vpop.xlane.xlu0 %397 }
 0x166   :  { %v544_v26 = vmul.f32 %v514_v38, %v432_v63  ;;  %v545_v15 = vmul.f32 %v514_v38, %v433_v3  ;;  %v560_v10 = vmul.f32 %v514_v38, %v448_v46  ;;  %v561_v61 = vmul.f32 %v514_v38, %v449_v34 }
 0x167   :  { %v778_v39 = vpop.eup %777  ;;  %v1382_v35 = vmul.f32 0.001953125, %v398_v23 }
 0x168   :  { %v656_v9 = vadd.f32 %v626_v41, %v544_v26  ;;  %v657_v37 = vadd.f32 %v626_v41, %v545_v15  ;;  %v672_v4 = vadd.f32 %v626_v41, %v560_v10  ;;  %v673_v8 = vadd.f32 %v626_v41, %v561_v61 }
 0x169   :  { %v780_v25 = vpop.eup %779  ;;  %v436_v27 = vmul.f32 %v778_v39, %v1103_v14  ;;  %v437_v30 = vmul.f32 %v778_v39, %v1106_v18  ;;  %v452_v0 = vmul.f32 %v778_v39, %v1109_v19  ;;  %v453_v36 = vmul.f32 %v778_v39, %v1112_v24 }
 0x16a   :  { %v688_v20 = vmax.f32 %v656_v9, 0.0  ;;  %v689_v40 = vmax.f32 %v657_v37, 0.0  ;;  %v704_v33 = vmax.f32 %v672_v4, 0.0  ;;  %v705_v38 = vmax.f32 %v673_v8, 0.0 }
 0x16b   :  { %v434_v60 = vmul.f32 %v780_v25, %v1161_v55  ;;  %v435_v28 = vmul.f32 %v780_v25, %v1164_v57  ;;  %v450_v29 = vmul.f32 %v780_v25, %v1167_v58  ;;  %v451_v41 = vmul.f32 %v780_v25, %v1170_v16  ;;  %v401_v55 = vpop.xlane.xlu1 %400 }
 0x16c   :  { %720 = vst.msk [vmem:[%s1592_s3] sm:$0xff] %vm46_vm0, %v688_v20  ;;  %721 = vst.msk [vmem:[%s1592_s3 + $0x8] sm:$0xff] %vm46_vm0, %v689_v40  ;;  %v548_v14 = vmul.f32 %v1356_v17, %v436_v27  ;;  %v549_v18 = vmul.f32 %v1356_v17, %v437_v30  ;;  %v564_v19 = vmul.f32 %v1356_v17, %v452_v0  ;;  %v404_v37 = vpop.xlane.xlu0 %403 }
 0x16d   :  { %736 = vst.msk [vmem:[%s1592_s3 + $0x80] sm:$0xff] %vm46_vm0, %v704_v33  ;;  %737 = vst.msk [vmem:[%s1592_s3 + $0x88] sm:$0xff] %vm46_vm0, %v705_v38  ;;  %v565_v24 = vmul.f32 %v1356_v17, %v453_v36  ;;  %v546_v57 = vmul.f32 %v1354_v5, %v434_v60  ;;  %v547_v58 = vmul.f32 %v1354_v5, %v435_v28 }
 0x16e   :  { %v562_v16 = vmul.f32 %v1354_v5, %v450_v29  ;;  %v563_v50 = vmul.f32 %v1354_v5, %v451_v41  ;;  %v660_v63 = vadd.f32 %v1372_v47, %v548_v14  ;;  %v661_v3 = vadd.f32 %v1372_v47, %v549_v18 }
 0x16f   :  { %v676_v46 = vadd.f32 %v1372_v47, %v564_v19  ;;  %v677_v34 = vadd.f32 %v1372_v47, %v565_v24  ;;  %v782_v23 = vpop.eup %781  ;;  %v658_v17 = vadd.f32 %v1368_v48, %v546_v57  ;;  %v659_v26 = vadd.f32 %v1368_v48, %v547_v58  ;;  %v407_v36 = vpop.xlane.xlu1 %406 }
 0x170   :  { %v674_v15 = vadd.f32 %v1368_v48, %v562_v16  ;;  %v675_v10 = vadd.f32 %v1368_v48, %v563_v50  ;;  %v692_v61 = vmax.f32 %v660_v63, 0.0  ;;  %v693_v39 = vmax.f32 %v661_v3, 0.0 }
 0x171   :  { %v708_v5 = vmax.f32 %v676_v46, 0.0  ;;  %v709_v9 = vmax.f32 %v677_v34, 0.0  ;;  %v690_v4 = vmax.f32 %v658_v17, 0.0  ;;  %v691_v8 = vmax.f32 %v659_v26, 0.0 }
 0x172   :  { %v706_v25 = vmax.f32 %v674_v15, 0.0  ;;  %v707_v27 = vmax.f32 %v675_v10, 0.0  ;;  %724 = vst.msk [vmem:[%s1592_s3 + $0x20] sm:$0xff] %vm46_vm0, %v692_v61  ;;  %725 = vst.msk [vmem:[%s1592_s3 + $0x28] sm:$0xff] %vm46_vm0, %v693_v39  ;;  %v438_v48 = vmul.f32 %v782_v23, %v1149_v49  ;;  %v439_v47 = vmul.f32 %v782_v23, %v1152_v51 }
 0x173   :  { %740 = vst.msk [vmem:[%s1592_s3 + $0xa0] sm:$0xff] %vm46_vm0, %v708_v5  ;;  %741 = vst.msk [vmem:[%s1592_s3 + $0xa8] sm:$0xff] %vm46_vm0, %v709_v9  ;;  %v454_v30 = vmul.f32 %v782_v23, %v1155_v52  ;;  %v455_v0 = vmul.f32 %v782_v23, %v1158_v53  ;;  %v420_v49 = vadd.f32 1e-05, %v1382_v35  ;;  %v413_v51 = vmul.f32 0.001953125, %v401_v55 }
 0x174   :  { %722 = vst.msk [vmem:[%s1592_s3 + $0x10] sm:$0xff] %vm46_vm0, %v690_v4  ;;  %723 = vst.msk [vmem:[%s1592_s3 + $0x18] sm:$0xff] %vm46_vm0, %v691_v8  ;;  %v414_v52 = vmul.f32 0.001953125, %v404_v37  ;;  %v550_v53 = vmul.f32 %v1358_v56, %v438_v48  ;;  %v551_v20 = vmul.f32 %v1358_v56, %v439_v47  ;;  %v415_v60 = vmul.f32 0.001953125, %v407_v36 }
 0x175   :  { %738 = vst.msk [vmem:[%s1592_s3 + $0x90] sm:$0xff] %vm46_vm0, %v706_v25  ;;  %739 = vst.msk [vmem:[%s1592_s3 + $0x98] sm:$0xff] %vm46_vm0, %v707_v27  ;;  %v566_v40 = vmul.f32 %v1358_v56, %v454_v30  ;;  %v567_v33 = vmul.f32 %v1358_v56, %v455_v0  ;;  %783 = vrsqrt.f32 %v420_v49  ;;  %v421_v38 = vadd.f32 1e-05, %v413_v51  ;;  %v1603_v27 = vld [vmem:[#allocation6_spill] sm:$0xff] }
 0x176   :  { %v662_v28 = vadd.f32 %v1370_v45, %v550_v53  ;;  %v663_v29 = vadd.f32 %v1370_v45, %v551_v20  ;;  %v422_v14 = vadd.f32 1e-05, %v414_v52  ;;  %v423_v56 = vadd.f32 1e-05, %v415_v60  ;;  %v1607_v60 = vld [vmem:[#allocation5_spill] sm:$0xff] }
 0x177   :  { %v678_v41 = vadd.f32 %v1370_v45, %v566_v40  ;;  %v679_v35 = vadd.f32 %v1370_v45, %v567_v33  ;;  %785 = vrsqrt.f32 %v421_v38  ;;  %v1606_v33 = vld [vmem:[#allocation4_spill] sm:$0xff] }
 0x178   :  { %v694_v18 = vmax.f32 %v662_v28, 0.0  ;;  %v695_v19 = vmax.f32 %v663_v29, 0.0  ;;  %787 = vrsqrt.f32 %v422_v14 }
 0x179   :  { %v710_v24 = vmax.f32 %v678_v41, 0.0  ;;  %v711_v55 = vmax.f32 %v679_v35, 0.0  ;;  %789 = vrsqrt.f32 %v423_v56 }
 0x17a   :  { %726 = vst.msk [vmem:[%s1592_s3 + $0x30] sm:$0xff] %vm46_vm0, %v694_v18  ;;  %727 = vst.msk [vmem:[%s1592_s3 + $0x38] sm:$0xff] %vm46_vm0, %v695_v19 }
 0x17b   :  { %742 = vst.msk [vmem:[%s1592_s3 + $0xb0] sm:$0xff] %vm46_vm0, %v710_v24  ;;  %743 = vst.msk [vmem:[%s1592_s3 + $0xb8] sm:$0xff] %vm46_vm0, %v711_v55 }
 0x17f   :  { %v784_v45 = vpop.eup %783 }
 0x180   :  { %v440_v57 = vmul.f32 %v784_v45, %v1227_v54  ;;  %v441_v58 = vmul.f32 %v784_v45, %v1230_v42  ;;  %v456_v16 = vmul.f32 %v784_v45, %v1233_v43  ;;  %v457_v50 = vmul.f32 %v784_v45, %v1236_v44 }
 0x181   :  { %v786_v63 = vpop.eup %785 }
 0x182   :  { %v552_v3 = vmul.f32 %v1360_v21, %v440_v57  ;;  %v553_v46 = vmul.f32 %v1360_v21, %v441_v58  ;;  %v568_v34 = vmul.f32 %v1360_v21, %v456_v16  ;;  %v569_v23 = vmul.f32 %v1360_v21, %v457_v50  ;;  %v788_v61 = vpop.eup %787  ;;  %v654_v16 = vpop.permute.xlu0 %653 }
 0x183   :  { %v442_v17 = vmul.f32 %v786_v63, %v1197_v12  ;;  %v443_v26 = vmul.f32 %v786_v63, %v1200_v13  ;;  %v458_v54 = vmul.f32 %v786_v63, %v1203_v31  ;;  %v459_v42 = vmul.f32 %v786_v63, %v1206_v32  ;;  %v790_v25 = vpop.eup %789 }
 0x184   :  { %v664_v43 = vadd.f32 %v1376_v59, %v552_v3  ;;  %v665_v44 = vadd.f32 %v1376_v59, %v553_v46  ;;  %v680_v15 = vadd.f32 %v1376_v59, %v568_v34  ;;  %v681_v10 = vadd.f32 %v1376_v59, %v569_v23 }
 0x185   :  { %v554_v39 = vmul.f32 %v1362_v1, %v442_v17  ;;  %v555_v21 = vmul.f32 %v1362_v1, %v443_v26  ;;  %v570_v12 = vmul.f32 %v1362_v1, %v458_v54  ;;  %v571_v13 = vmul.f32 %v1362_v1, %v459_v42 }
 0x186   :  { %v696_v31 = vmax.f32 %v664_v43, 0.0  ;;  %v697_v5 = vmax.f32 %v665_v44, 0.0  ;;  %v712_v32 = vmax.f32 %v680_v15, 0.0  ;;  %v713_v9 = vmax.f32 %v681_v10, 0.0 }
 0x187   :  { %v666_v37 = vadd.f32 %v1374_v62, %v554_v39  ;;  %v667_v4 = vadd.f32 %v1374_v62, %v555_v21  ;;  %v682_v8 = vadd.f32 %v1374_v62, %v570_v12  ;;  %v683_v59 = vadd.f32 %v1374_v62, %v571_v13 }
 0x188   :  { %728 = vst.msk [vmem:[%s1592_s3 + $0x40] sm:$0xff] %vm46_vm0, %v696_v31  ;;  %729 = vst.msk [vmem:[%s1592_s3 + $0x48] sm:$0xff] %vm46_vm0, %v697_v5  ;;  %v444_v1 = vmul.f32 %v788_v61, %v1288_v11  ;;  %v445_v62 = vmul.f32 %v788_v61, %v1291_v2  ;;  %v460_v48 = vmul.f32 %v788_v61, %v1603_v27  ;;  %v650_v11 = vpop.permute.xlu1 %649  ;;  %v1604_v2 = vld [vmem:[#allocation2_spill] sm:$0xff] }
 0x189   :  { %744 = vst.msk [vmem:[%s1592_s3 + $0xc0] sm:$0xff] %vm46_vm0, %v712_v32  ;;  %745 = vst.msk [vmem:[%s1592_s3 + $0xc8] sm:$0xff] %vm46_vm0, %v713_v9  ;;  %v461_v47 = vmul.f32 %v788_v61, %v1297_v7  ;;  %v698_v30 = vmax.f32 %v666_v37, 0.0  ;;  %v699_v0 = vmax.f32 %v667_v4, 0.0  ;;  %v714_v36 = vmax.f32 %v682_v8, 0.0 }
 0x18a   :  { %v715_v49 = vmax.f32 %v683_v59, 0.0  ;;  %v556_v51 = vmul.f32 %v1364_v22, %v444_v1  ;;  %v557_v52 = vmul.f32 %v1364_v22, %v445_v62  ;;  %v572_v53 = vmul.f32 %v1364_v22, %v460_v48 }
 0x18b   :  { %v573_v20 = vmul.f32 %v1364_v22, %v461_v47  ;;  %730 = vst.msk [vmem:[%s1592_s3 + $0x50] sm:$0xff] %vm46_vm0, %v698_v30  ;;  %731 = vst.msk [vmem:[%s1592_s3 + $0x58] sm:$0xff] %vm46_vm0, %v699_v0  ;;  %v446_v7 = vmul.f32 %v790_v25, %v1604_v2  ;;  %v1605_v22 = vld [vmem:[#allocation3_spill] sm:$0xff]  ;;  %v462_v38 = vmul.f32 %v790_v25, %v1606_v33 }
 0x18c   :  { %746 = vst.msk [vmem:[%s1592_s3 + $0xd0] sm:$0xff] %vm46_vm0, %v714_v36  ;;  %747 = vst.msk [vmem:[%s1592_s3 + $0xd8] sm:$0xff] %vm46_vm0, %v715_v49  ;;  %v447_v40 = vmul.f32 %v790_v25, %v1605_v22  ;;  %v463_v28 = vmul.f32 %v790_v25, %v1607_v60  ;;  %v668_v29 = vadd.f32 %v650_v11, %v556_v51 }
 0x18d   :  { %v669_v41 = vadd.f32 %v650_v11, %v557_v52  ;;  %v684_v35 = vadd.f32 %v650_v11, %v572_v53  ;;  %v685_v14 = vadd.f32 %v650_v11, %v573_v20  ;;  %v558_v18 = vmul.f32 %v1366_v6, %v446_v7 }
 0x18e   :  { %v559_v19 = vmul.f32 %v1366_v6, %v447_v40  ;;  %v574_v24 = vmul.f32 %v1366_v6, %v462_v38  ;;  %v575_v55 = vmul.f32 %v1366_v6, %v463_v28  ;;  %v700_v56 = vmax.f32 %v668_v29, 0.0 }
 0x18f   :  { %v701_v45 = vmax.f32 %v669_v41, 0.0  ;;  %v716_v57 = vmax.f32 %v684_v35, 0.0  ;;  %v717_v58 = vmax.f32 %v685_v14, 0.0  ;;  %v670_v50 = vadd.f32 %v654_v16, %v558_v18 }
 0x190   :  { %v671_v63 = vadd.f32 %v654_v16, %v559_v19  ;;  %v686_v3 = vadd.f32 %v654_v16, %v574_v24  ;;  %v687_v46 = vadd.f32 %v654_v16, %v575_v55  ;;  %732 = vst.msk [vmem:[%s1592_s3 + $0x60] sm:$0xff] %vm46_vm0, %v700_v56 }
 0x191   :  { %733 = vst.msk [vmem:[%s1592_s3 + $0x68] sm:$0xff] %vm46_vm0, %v701_v45  ;;  %748 = vst.msk [vmem:[%s1592_s3 + $0xe0] sm:$0xff] %vm46_vm0, %v716_v57  ;;  %v702_v6 = vmax.f32 %v670_v50, 0.0 }
 0x192   :  { %749 = vst.msk [vmem:[%s1592_s3 + $0xe8] sm:$0xff] %vm46_vm0, %v717_v58  ;;  %v703_v34 = vmax.f32 %v671_v63, 0.0  ;;  %v718_v23 = vmax.f32 %v686_v3, 0.0  ;;  %v719_v17 = vmax.f32 %v687_v46, 0.0 }
 0x193   :  { %734 = vst.msk [vmem:[%s1592_s3 + $0x70] sm:$0xff] %vm46_vm0, %v702_v6 }
 0x194   :  { %735 = vst.msk [vmem:[%s1592_s3 + $0x78] sm:$0xff] %vm46_vm0, %v703_v34  ;;  %750 = vst.msk [vmem:[%s1592_s3 + $0xf0] sm:$0xff] %vm46_vm0, %v718_v23 }
 0x195   :  { %751 = vst.msk [vmem:[%s1592_s3 + $0xf8] sm:$0xff] %vm46_vm0, %v719_v17 }

</bundles_post_ra>
